<compile_context>
chip_gen: v6e
topology: v6e:2x2x1
jax: 0.10.0
libtpu: 0.0.40
codegen_flags: <defaults>
</compile_context>

<pallas_src>
import jax
import jax.numpy as jnp
from jax import lax
from jax.experimental import pallas as pl
from jax.experimental.pallas import tpu as pltpu


# ---------------------------------------------------------------------------
# Problem sizes
# ---------------------------------------------------------------------------
N = 128              # samples per CLIP batch (fills MXU rows / VPU lanes)
IMG_D_IN = 32        # config.image_d_input
GENE_D_IN = 16       # config.gene_d_input
D_MODEL = 128        # config.d_model
TEMPERATURE = 1.0    # config.temperature
LN_EPS = 1e-5


# ---------------------------------------------------------------------------
# Kernel: one grid step == one full CLIP forward (loss) for one batch of N.
# ---------------------------------------------------------------------------
def clip_loss_kernel(img_ref, gene_ref, w1_ref, vecs_ref, w2_ref, out_ref):
    f32 = jnp.float32
    bf16 = jnp.bfloat16

    vecs = vecs_ref[...]          # [8, D_MODEL] f32: ib1, ig, ibt, ib2, gb1, gg, gbt, gb2
    w1 = w1_ref[...]              # [IMG_D_IN + GENE_D_IN, D_MODEL] bf16

    def projection(x, w1_b, row0, w2_b):
        """fc1 -> GELU -> LayerNorm -> fc2 for one branch ([N, d_in] -> [N, D])."""
        b1 = vecs[row0:row0 + 1, :]
        gamma = vecs[row0 + 1:row0 + 2, :]
        beta = vecs[row0 + 2:row0 + 3, :]
        b2 = vecs[row0 + 3:row0 + 4, :]
        h = jnp.dot(x.astype(bf16), w1_b, preferred_element_type=f32) + b1
        h = jax.nn.gelu(h, approximate=True)
        mu = jnp.mean(h, axis=-1, keepdims=True)
        var = jnp.mean((h - mu) ** 2, axis=-1, keepdims=True)
        h = (h - mu) * lax.rsqrt(var + LN_EPS) * gamma + beta
        return jnp.dot(h.astype(bf16), w2_b, preferred_element_type=f32) + b2

    img_emb = projection(img_ref[...], w1[:IMG_D_IN, :], 0, w2_ref[0])     # [N, D]
    gene_emb = projection(gene_ref[...], w1[IMG_D_IN:, :], 4, w2_ref[1])   # [N, D]

    # ---- single fused similarity matmul: S = E @ E.T on stacked embeddings ----
    emb = jnp.concatenate([img_emb.astype(bf16), gene_emb.astype(bf16)], axis=0)  # [2N, D]
    dn = (((1,), (1,)), ((), ()))
    s = lax.dot_general(emb, emb, dn, preferred_element_type=f32)                 # [2N, 2N]

    inv_t = 1.0 / TEMPERATURE
    logits = s[N:, :N] * inv_t        # gene_emb @ img_emb.T / T
    logits_t = s[:N, N:] * inv_t      # == logits.T, free block of S
    tmat = (s[:N, :N] + s[N:, N:]) * (0.5 * TEMPERATURE)   # (img_sim + gene_sim)/2 * T

    # ---- targets = softmax(tmat, dim=-1) ----
    tmat = tmat - jnp.max(tmat, axis=-1, keepdims=True)
    te = jnp.exp(tmat)
    targets = te / jnp.sum(te, axis=-1, keepdims=True)

    # ---- cross entropy, consumed eagerly to limit live [128,128] tiles ----
    lr = logits - jnp.max(logits, axis=-1, keepdims=True)
    lsm_r = lr - jnp.log(jnp.sum(jnp.exp(lr), axis=-1, keepdims=True))
    part = jnp.sum(targets * lsm_r, axis=-1, keepdims=True)               # [N, 1]

    lc = logits_t - jnp.max(logits_t, axis=-1, keepdims=True)             # column LSM as lane reduce
    lsm_c = lc - jnp.log(jnp.sum(jnp.exp(lc), axis=-1, keepdims=True))
    part = part + jnp.sum(jnp.transpose(targets) * lsm_c, axis=-1, keepdims=True)

    tot = jnp.sum(part, axis=0, keepdims=True)                            # [1, 1]
    loss = tot * (-0.5 / N)

    # Lane-dense full-tile store; scalar sliced outside the kernel.
    out_ref[...] = jnp.broadcast_to(loss, (8, 128))


# ---------------------------------------------------------------------------
# One-time parameter packing (hoisted out of the per-call path; cache result).
# ---------------------------------------------------------------------------
def pack_params(p):
    return {
        "w1": jnp.concatenate([p["iw1"], p["gw1"]], axis=0).astype(jnp.bfloat16),  # [48, 128]
        "vecs": jnp.stack([p["ib1"], p["ig"], p["ibt"], p["ib2"],
                           p["gb1"], p["gg"], p["gbt"], p["gb2"]], axis=0),        # [8, 128] f32
        "w2": jnp.stack([p["iw2"], p["gw2"]], axis=0).astype(jnp.bfloat16),        # [2, 128, 128]
    }


# ---------------------------------------------------------------------------
# Forward: grid over G independent batches per pallas_call.
# ---------------------------------------------------------------------------
@jax.jit
def clip_forward_batched(image_features, gene_features, packed):
    g = image_features.shape[0]
    out = pl.pallas_call(
        clip_loss_kernel,
        out_shape=jax.ShapeDtypeStruct((g, 8, 128), jnp.float32),
        grid_spec=pltpu.PrefetchScalarGridSpec(
            num_scalar_prefetch=0,
            grid=(g,),
            in_specs=[
                pl.BlockSpec((None, N, IMG_D_IN), lambda i: (i, 0, 0)),
                pl.BlockSpec((None, N, GENE_D_IN), lambda i: (i, 0, 0)),
                # weight slabs: constant block index -> resident in VMEM across steps
                pl.BlockSpec((IMG_D_IN + GENE_D_IN, D_MODEL), lambda i: (0, 0)),
                pl.BlockSpec((8, D_MODEL), lambda i: (0, 0)),
                pl.BlockSpec((2, D_MODEL, D_MODEL), lambda i: (0, 0, 0)),
            ],
            out_specs=pl.BlockSpec((None, 8, 128), lambda i: (i, 0, 0)),
        ),
        compiler_params=pltpu.CompilerParams(dimension_semantics=("parallel",)),
    )(image_features, gene_features, packed["w1"], packed["vecs"], packed["w2"])
    return out[:, 0, 0]


def clip_forward(image_features, gene_features, packed):
    """Original single-batch module semantics: ([N, d_img], [N, d_gene]) -> scalar loss."""
    return clip_forward_batched(image_features[None], gene_features[None], packed)[0]


# ---------------------------------------------------------------------------
# Pure-JAX mixed-precision reference (bf16 MXU operands, f32 accumulation),
# matching the kernel's numerics for the correctness check.
# ---------------------------------------------------------------------------
def _ref_projection(x, w1, b1, gamma, beta, w2, b2):
    bf16, f32 = jnp.bfloat16, jnp.float32
    h = jnp.dot(x.astype(bf16), w1.astype(bf16), preferred_element_type=f32) + b1
    h = jax.nn.gelu(h, approximate=True)
    mu = jnp.mean(h, axis=-1, keepdims=True)
    var = jnp.mean((h - mu) ** 2, axis=-1, keepdims=True)
    h = (h - mu) * lax.rsqrt(var + LN_EPS) * gamma + beta
    return jnp.dot(h.astype(bf16), w2.astype(bf16), preferred_element_type=f32) + b2


def clip_forward_ref(img, gene, p):
    bf16, f32 = jnp.bfloat16, jnp.float32
    ie = _ref_projection(img, p["iw1"], p["ib1"], p["ig"], p["ibt"], p["iw2"], p["ib2"])
    ge = _ref_projection(gene, p["gw1"], p["gb1"], p["gg"], p["gbt"], p["gw2"], p["gb2"])
    ie_b, ge_b = ie.astype(bf16), ge.astype(bf16)
    logits = jnp.dot(ge_b, ie_b.T, preferred_element_type=f32) / TEMPERATURE
    img_sim = jnp.dot(ie_b, ie_b.T, preferred_element_type=f32)
    gene_sim = jnp.dot(ge_b, ge_b.T, preferred_element_type=f32)
    targets = jax.nn.softmax((img_sim + gene_sim) / 2 * TEMPERATURE, axis=-1)
    genes_loss = -(targets * jax.nn.log_softmax(logits, axis=-1)).sum(1)
    images_loss = -(targets.T * jax.nn.log_softmax(logits.T, axis=-1)).sum(1)
    return ((genes_loss + images_loss) / 2.0).mean()


def make_params(key):
    ks = jax.random.split(key, 8)
    f32 = jnp.float32
    return {
        # image projection
        "iw1": 0.02 * jax.random.normal(ks[0], (IMG_D_IN, D_MODEL), f32),
        "ib1": 0.02 * jax.random.normal(ks[1], (D_MODEL,), f32),
        "ig":  jnp.ones((D_MODEL,), f32),
        "ibt": jnp.zeros((D_MODEL,), f32),
        "iw2": 0.02 * jax.random.normal(ks[2], (D_MODEL, D_MODEL), f32),
        "ib2": 0.02 * jax.random.normal(ks[3], (D_MODEL,), f32),
        # gene projection
        "gw1": 0.02 * jax.random.normal(ks[4], (GENE_D_IN, D_MODEL), f32),
        "gb1": 0.02 * jax.random.normal(ks[5], (D_MODEL,), f32),
        "gg":  jnp.ones((D_MODEL,), f32),
        "gbt": jnp.zeros((D_MODEL,), f32),
        "gw2": 0.02 * jax.random.normal(ks[6], (D_MODEL, D_MODEL), f32),
        "gb2": 0.02 * jax.random.normal(ks[7], (D_MODEL,), f32),
    }


if __name__ == "__main__":
    key = jax.random.PRNGKey(0)
    k_img, k_gene, k_par = jax.random.split(key, 3)

    G = 4  # independent CLIP batches processed by one pallas_call (grid axis)
    image_features = jax.random.normal(k_img, (G, N, IMG_D_IN), jnp.float32)
    gene_features = jax.random.normal(k_gene, (G, N, GENE_D_IN), jnp.float32)
    params = make_params(k_par)
    packed = pack_params(params)   # pack once; reused across all calls

    losses = jax.block_until_ready(
        clip_forward_batched(image_features, gene_features, packed))
    single = jax.block_until_ready(
        clip_forward(image_features[0], gene_features[0], packed))

    losses_ref = jax.block_until_ready(
        jax.vmap(clip_forward_ref, in_axes=(0, 0, None))(
            image_features, gene_features, params))

    assert jnp.all(jnp.isfinite(losses)), "kernel produced non-finite loss"
    assert jnp.allclose(losses, losses_ref, rtol=2e-3, atol=2e-3), (losses, losses_ref)
    assert jnp.allclose(single, losses_ref[0], rtol=2e-3, atol=2e-3), (single, losses_ref[0])
    print("KERNEL_OK")
</pallas_src>

<mosaic_0001>
module attributes {stable_mosaic.version = 11 : i64} {
  func.func @clip_loss_kernel(%arg0: i32, %arg1: memref<1x128x32xf32, #tpu.memory_space<vmem>>, %arg2: memref<1x128x16xf32, #tpu.memory_space<vmem>>, %arg3: memref<48x128xbf16, #tpu.memory_space<vmem>>, %arg4: memref<8x128xf32, #tpu.memory_space<vmem>>, %arg5: memref<2x128x128xbf16, #tpu.memory_space<vmem>>, %arg6: memref<1x8x128xf32, #tpu.memory_space<vmem>>) attributes {dimension_semantics = [#tpu.dimension_semantics<parallel>], iteration_bounds = array<i64: 4>, scalar_prefetch = 0 : i64, scratch_operands = 0 : i64, tpu.core_type = #tpu.core_type<tc>, window_params = [{transform_indices = @transform_0, window_bounds = array<i64: 1, 128, 32>}, {transform_indices = @transform_1, window_bounds = array<i64: 1, 128, 16>}, {pipeline_mode = #tpu.pipeline_mode<synchronous>, transform_indices = @transform_2, window_bounds = array<i64: 48, 128>}, {pipeline_mode = #tpu.pipeline_mode<synchronous>, transform_indices = @transform_3, window_bounds = array<i64: 8, 128>}, {pipeline_mode = #tpu.pipeline_mode<synchronous>, transform_indices = @transform_4, window_bounds = array<i64: 2, 128, 128>}, {transform_indices = @transform_5, window_bounds = array<i64: 1, 8, 128>}]} {
    %c0 = arith.constant 0 : index
    %c0_0 = arith.constant 0 : index
    %0 = vector.load %arg4[%c0, %c0_0] : memref<8x128xf32, #tpu.memory_space<vmem>>, vector<8x128xf32>
    %c0_1 = arith.constant 0 : index
    %c0_2 = arith.constant 0 : index
    %1 = vector.load %arg3[%c0_1, %c0_2] : memref<48x128xbf16, #tpu.memory_space<vmem>>, vector<48x128xbf16>
    %c0_3 = arith.constant 0 : index
    %c0_4 = arith.constant 0 : index
    %c0_5 = arith.constant 0 : index
    %2 = vector.load %arg1[%c0_3, %c0_4, %c0_5] : memref<1x128x32xf32, #tpu.memory_space<vmem>>, vector<1x128x32xf32>
    %3 = vector.shape_cast %2 : vector<1x128x32xf32> to vector<128x32xf32>
    %4 = vector.extract_strided_slice %1 {offsets = [0, 0], sizes = [32, 128], strides = [1, 1]} : vector<48x128xbf16> to vector<32x128xbf16>
    %c0_6 = arith.constant 0 : index
    %c0_7 = arith.constant 0 : index
    %c0_8 = arith.constant 0 : index
    %5 = vector.load %arg5[%c0_6, %c0_7, %c0_8] : memref<2x128x128xbf16, #tpu.memory_space<vmem>>, vector<1x128x128xbf16>
    %6 = vector.shape_cast %5 : vector<1x128x128xbf16> to vector<128x128xbf16>
    %7 = vector.extract_strided_slice %0 {offsets = [0, 0], sizes = [1, 128], strides = [1, 1]} : vector<8x128xf32> to vector<1x128xf32>
    %8 = vector.extract_strided_slice %0 {offsets = [1, 0], sizes = [1, 128], strides = [1, 1]} : vector<8x128xf32> to vector<1x128xf32>
    %9 = vector.extract_strided_slice %0 {offsets = [2, 0], sizes = [1, 128], strides = [1, 1]} : vector<8x128xf32> to vector<1x128xf32>
    %10 = vector.extract_strided_slice %0 {offsets = [3, 0], sizes = [1, 128], strides = [1, 1]} : vector<8x128xf32> to vector<1x128xf32>
    %11 = arith.truncf %3 : vector<128x32xf32> to vector<128x32xbf16>
    %cst = arith.constant dense<0.000000e+00> : vector<128x128xf32>
    %12 = tpu.matmul %11, %4, %cst {dimension_numbers = #tpu.dot_dimension_numbers<[1], [0], [0], [1], [0, 0, 1, 1], [], []>} : vector<128x32xbf16>, vector<32x128xbf16>, vector<128x128xf32> -> vector<128x128xf32>
    %13 = vector.broadcast %7 : vector<1x128xf32> to vector<128x128xf32>
    %14 = arith.addf %12, %13 : vector<128x128xf32>
    %15 = arith.mulf %14, %14 : vector<128x128xf32>
    %16 = arith.mulf %14, %15 : vector<128x128xf32>
    %cst_9 = arith.constant 4.471500e-02 : f32
    %17 = vector.broadcast %cst_9 : f32 to vector<128x128xf32>
    %18 = arith.mulf %17, %16 : vector<128x128xf32>
    %19 = arith.addf %14, %18 : vector<128x128xf32>
    %cst_10 = arith.constant 0.797884583 : f32
    %20 = vector.broadcast %cst_10 : f32 to vector<128x128xf32>
    %21 = arith.mulf %20, %19 : vector<128x128xf32>
    %22 = math.tanh %21 : vector<128x128xf32>
    %cst_11 = arith.constant 1.000000e+00 : f32
    %23 = vector.broadcast %cst_11 : f32 to vector<128x128xf32>
    %24 = arith.addf %23, %22 : vector<128x128xf32>
    %cst_12 = arith.constant 5.000000e-01 : f32
    %25 = vector.broadcast %cst_12 : f32 to vector<128x128xf32>
    %26 = arith.mulf %25, %24 : vector<128x128xf32>
    %27 = arith.mulf %14, %26 : vector<128x128xf32>
    %cst_13 = arith.constant dense<0.000000e+00> : vector<128xf32>
    %28 = vector.multi_reduction <add>, %27, %cst_13 [1] : vector<128x128xf32> to vector<128xf32>
    %29 = vector.shape_cast %28 : vector<128xf32> to vector<128x1xf32>
    %cst_14 = arith.constant 1.280000e+02 : f32
    %30 = vector.broadcast %cst_14 : f32 to vector<128x1xf32>
    %31 = arith.divf %29, %30 : vector<128x1xf32>
    %32 = vector.broadcast %31 : vector<128x1xf32> to vector<128x128xf32>
    %33 = arith.subf %27, %32 : vector<128x128xf32>
    %34 = arith.mulf %33, %33 : vector<128x128xf32>
    %cst_15 = arith.constant dense<0.000000e+00> : vector<128xf32>
    %35 = vector.multi_reduction <add>, %34, %cst_15 [1] : vector<128x128xf32> to vector<128xf32>
    %36 = vector.shape_cast %35 : vector<128xf32> to vector<128x1xf32>
    %cst_16 = arith.constant 1.280000e+02 : f32
    %37 = vector.broadcast %cst_16 : f32 to vector<128x1xf32>
    %38 = arith.divf %36, %37 : vector<128x1xf32>
    %39 = vector.broadcast %31 : vector<128x1xf32> to vector<128x128xf32>
    %40 = arith.subf %27, %39 : vector<128x128xf32>
    %cst_17 = arith.constant 9.99999974E-6 : f32
    %41 = vector.broadcast %cst_17 : f32 to vector<128x1xf32>
    %42 = arith.addf %38, %41 : vector<128x1xf32>
    %43 = math.rsqrt %42 : vector<128x1xf32>
    %44 = vector.broadcast %43 : vector<128x1xf32> to vector<128x128xf32>
    %45 = arith.mulf %40, %44 : vector<128x128xf32>
    %46 = vector.broadcast %8 : vector<1x128xf32> to vector<128x128xf32>
    %47 = arith.mulf %45, %46 : vector<128x128xf32>
    %48 = vector.broadcast %9 : vector<1x128xf32> to vector<128x128xf32>
    %49 = arith.addf %47, %48 : vector<128x128xf32>
    %50 = arith.truncf %49 : vector<128x128xf32> to vector<128x128xbf16>
    %cst_18 = arith.constant dense<0.000000e+00> : vector<128x128xf32>
    %51 = tpu.matmul %50, %6, %cst_18 {dimension_numbers = #tpu.dot_dimension_numbers<[1], [0], [0], [1], [0, 0, 1, 1], [], []>} : vector<128x128xbf16>, vector<128x128xbf16>, vector<128x128xf32> -> vector<128x128xf32>
    %52 = vector.broadcast %10 : vector<1x128xf32> to vector<128x128xf32>
    %53 = arith.addf %51, %52 : vector<128x128xf32>
    %c0_19 = arith.constant 0 : index
    %c0_20 = arith.constant 0 : index
    %c0_21 = arith.constant 0 : index
    %54 = vector.load %arg2[%c0_19, %c0_20, %c0_21] : memref<1x128x16xf32, #tpu.memory_space<vmem>>, vector<1x128x16xf32>
    %55 = vector.shape_cast %54 : vector<1x128x16xf32> to vector<128x16xf32>
    %56 = vector.extract_strided_slice %1 {offsets = [32, 0], sizes = [16, 128], strides = [1, 1]} : vector<48x128xbf16> to vector<16x128xbf16>
    %c1 = arith.constant 1 : index
    %c0_22 = arith.constant 0 : index
    %c0_23 = arith.constant 0 : index
    %57 = vector.load %arg5[%c1, %c0_22, %c0_23] : memref<2x128x128xbf16, #tpu.memory_space<vmem>>, vector<1x128x128xbf16>
    %58 = vector.shape_cast %57 : vector<1x128x128xbf16> to vector<128x128xbf16>
    %59 = vector.extract_strided_slice %0 {offsets = [4, 0], sizes = [1, 128], strides = [1, 1]} : vector<8x128xf32> to vector<1x128xf32>
    %60 = vector.extract_strided_slice %0 {offsets = [5, 0], sizes = [1, 128], strides = [1, 1]} : vector<8x128xf32> to vector<1x128xf32>
    %61 = vector.extract_strided_slice %0 {offsets = [6, 0], sizes = [1, 128], strides = [1, 1]} : vector<8x128xf32> to vector<1x128xf32>
    %62 = vector.extract_strided_slice %0 {offsets = [7, 0], sizes = [1, 128], strides = [1, 1]} : vector<8x128xf32> to vector<1x128xf32>
    %63 = arith.truncf %55 : vector<128x16xf32> to vector<128x16xbf16>
    %cst_24 = arith.constant dense<0.000000e+00> : vector<128x128xf32>
    %64 = tpu.matmul %63, %56, %cst_24 {dimension_numbers = #tpu.dot_dimension_numbers<[1], [0], [0], [1], [0, 0, 1, 1], [], []>} : vector<128x16xbf16>, vector<16x128xbf16>, vector<128x128xf32> -> vector<128x128xf32>
    %65 = vector.broadcast %59 : vector<1x128xf32> to vector<128x128xf32>
    %66 = arith.addf %64, %65 : vector<128x128xf32>
    %67 = arith.mulf %66, %66 : vector<128x128xf32>
    %68 = arith.mulf %66, %67 : vector<128x128xf32>
    %cst_25 = arith.constant 4.471500e-02 : f32
    %69 = vector.broadcast %cst_25 : f32 to vector<128x128xf32>
    %70 = arith.mulf %69, %68 : vector<128x128xf32>
    %71 = arith.addf %66, %70 : vector<128x128xf32>
    %cst_26 = arith.constant 0.797884583 : f32
    %72 = vector.broadcast %cst_26 : f32 to vector<128x128xf32>
    %73 = arith.mulf %72, %71 : vector<128x128xf32>
    %74 = math.tanh %73 : vector<128x128xf32>
    %cst_27 = arith.constant 1.000000e+00 : f32
    %75 = vector.broadcast %cst_27 : f32 to vector<128x128xf32>
    %76 = arith.addf %75, %74 : vector<128x128xf32>
    %cst_28 = arith.constant 5.000000e-01 : f32
    %77 = vector.broadcast %cst_28 : f32 to vector<128x128xf32>
    %78 = arith.mulf %77, %76 : vector<128x128xf32>
    %79 = arith.mulf %66, %78 : vector<128x128xf32>
    %cst_29 = arith.constant dense<0.000000e+00> : vector<128xf32>
    %80 = vector.multi_reduction <add>, %79, %cst_29 [1] : vector<128x128xf32> to vector<128xf32>
    %81 = vector.shape_cast %80 : vector<128xf32> to vector<128x1xf32>
    %cst_30 = arith.constant 1.280000e+02 : f32
    %82 = vector.broadcast %cst_30 : f32 to vector<128x1xf32>
    %83 = arith.divf %81, %82 : vector<128x1xf32>
    %84 = vector.broadcast %83 : vector<128x1xf32> to vector<128x128xf32>
    %85 = arith.subf %79, %84 : vector<128x128xf32>
    %86 = arith.mulf %85, %85 : vector<128x128xf32>
    %cst_31 = arith.constant dense<0.000000e+00> : vector<128xf32>
    %87 = vector.multi_reduction <add>, %86, %cst_31 [1] : vector<128x128xf32> to vector<128xf32>
    %88 = vector.shape_cast %87 : vector<128xf32> to vector<128x1xf32>
    %cst_32 = arith.constant 1.280000e+02 : f32
    %89 = vector.broadcast %cst_32 : f32 to vector<128x1xf32>
    %90 = arith.divf %88, %89 : vector<128x1xf32>
    %91 = vector.broadcast %83 : vector<128x1xf32> to vector<128x128xf32>
    %92 = arith.subf %79, %91 : vector<128x128xf32>
    %cst_33 = arith.constant 9.99999974E-6 : f32
    %93 = vector.broadcast %cst_33 : f32 to vector<128x1xf32>
    %94 = arith.addf %90, %93 : vector<128x1xf32>
    %95 = math.rsqrt %94 : vector<128x1xf32>
    %96 = vector.broadcast %95 : vector<128x1xf32> to vector<128x128xf32>
    %97 = arith.mulf %92, %96 : vector<128x128xf32>
    %98 = vector.broadcast %60 : vector<1x128xf32> to vector<128x128xf32>
    %99 = arith.mulf %97, %98 : vector<128x128xf32>
    %100 = vector.broadcast %61 : vector<1x128xf32> to vector<128x128xf32>
    %101 = arith.addf %99, %100 : vector<128x128xf32>
    %102 = arith.truncf %101 : vector<128x128xf32> to vector<128x128xbf16>
    %cst_34 = arith.constant dense<0.000000e+00> : vector<128x128xf32>
    %103 = tpu.matmul %102, %58, %cst_34 {dimension_numbers = #tpu.dot_dimension_numbers<[1], [0], [0], [1], [0, 0, 1, 1], [], []>} : vector<128x128xbf16>, vector<128x128xbf16>, vector<128x128xf32> -> vector<128x128xf32>
    %104 = vector.broadcast %62 : vector<1x128xf32> to vector<128x128xf32>
    %105 = arith.addf %103, %104 : vector<128x128xf32>
    %106 = arith.truncf %53 : vector<128x128xf32> to vector<128x128xbf16>
    %107 = arith.truncf %105 : vector<128x128xf32> to vector<128x128xbf16>
    %108 = tpu.concatenate %106, %107 in 0 : vector<128x128xbf16>, vector<128x128xbf16> -> vector<256x128xbf16>
    %cst_35 = arith.constant dense<0.000000e+00> : vector<256x256xf32>
    %109 = tpu.matmul %108, %108, %cst_35 {dimension_numbers = #tpu.dot_dimension_numbers<[1], [1], [0], [0], [0, 0, 1, 0], [], []>} : vector<256x128xbf16>, vector<256x128xbf16>, vector<256x256xf32> -> vector<256x256xf32>
    %110 = vector.extract_strided_slice %109 {offsets = [128, 0], sizes = [128, 128], strides = [1, 1]} : vector<256x256xf32> to vector<128x128xf32>
    %cst_36 = arith.constant 1.000000e+00 : f32
    %111 = vector.broadcast %cst_36 : f32 to vector<128x128xf32>
    %112 = arith.mulf %110, %111 : vector<128x128xf32>
    %113 = vector.extract_strided_slice %109 {offsets = [0, 128], sizes = [128, 128], strides = [1, 1]} : vector<256x256xf32> to vector<128x128xf32>
    %cst_37 = arith.constant 1.000000e+00 : f32
    %114 = vector.broadcast %cst_37 : f32 to vector<128x128xf32>
    %115 = arith.mulf %113, %114 : vector<128x128xf32>
    %116 = vector.extract_strided_slice %109 {offsets = [0, 0], sizes = [128, 128], strides = [1, 1]} : vector<256x256xf32> to vector<128x128xf32>
    %117 = vector.extract_strided_slice %109 {offsets = [128, 128], sizes = [128, 128], strides = [1, 1]} : vector<256x256xf32> to vector<128x128xf32>
    %118 = arith.addf %116, %117 : vector<128x128xf32>
    %cst_38 = arith.constant 5.000000e-01 : f32
    %119 = vector.broadcast %cst_38 : f32 to vector<128x128xf32>
    %120 = arith.mulf %118, %119 : vector<128x128xf32>
    %cst_39 = arith.constant dense<0xFF800000> : vector<128xf32>
    %121 = vector.multi_reduction <maximumf>, %120, %cst_39 [1] : vector<128x128xf32> to vector<128xf32>
    %122 = vector.shape_cast %121 : vector<128xf32> to vector<128x1xf32>
    %123 = vector.broadcast %122 : vector<128x1xf32> to vector<128x128xf32>
    %124 = arith.subf %120, %123 : vector<128x128xf32>
    %125 = math.exp %124 : vector<128x128xf32>
    %cst_40 = arith.constant dense<0.000000e+00> : vector<128xf32>
    %126 = vector.multi_reduction <add>, %125, %cst_40 [1] : vector<128x128xf32> to vector<128xf32>
    %127 = vector.shape_cast %126 : vector<128xf32> to vector<128x1xf32>
    %128 = vector.broadcast %127 : vector<128x1xf32> to vector<128x128xf32>
    %129 = arith.divf %125, %128 : vector<128x128xf32>
    %cst_41 = arith.constant dense<0xFF800000> : vector<128xf32>
    %130 = vector.multi_reduction <maximumf>, %112, %cst_41 [1] : vector<128x128xf32> to vector<128xf32>
    %131 = vector.shape_cast %130 : vector<128xf32> to vector<128x1xf32>
    %132 = vector.broadcast %131 : vector<128x1xf32> to vector<128x128xf32>
    %133 = arith.subf %112, %132 : vector<128x128xf32>
    %134 = math.exp %133 : vector<128x128xf32>
    %cst_42 = arith.constant dense<0.000000e+00> : vector<128xf32>
    %135 = vector.multi_reduction <add>, %134, %cst_42 [1] : vector<128x128xf32> to vector<128xf32>
    %136 = vector.shape_cast %135 : vector<128xf32> to vector<128x1xf32>
    %137 = math.log %136 : vector<128x1xf32>
    %138 = vector.broadcast %137 : vector<128x1xf32> to vector<128x128xf32>
    %139 = arith.subf %133, %138 : vector<128x128xf32>
    %140 = arith.mulf %129, %139 : vector<128x128xf32>
    %cst_43 = arith.constant dense<0.000000e+00> : vector<128xf32>
    %141 = vector.multi_reduction <add>, %140, %cst_43 [1] : vector<128x128xf32> to vector<128xf32>
    %142 = vector.shape_cast %141 : vector<128xf32> to vector<128x1xf32>
    %cst_44 = arith.constant dense<0xFF800000> : vector<128xf32>
    %143 = vector.multi_reduction <maximumf>, %115, %cst_44 [1] : vector<128x128xf32> to vector<128xf32>
    %144 = vector.shape_cast %143 : vector<128xf32> to vector<128x1xf32>
    %145 = vector.broadcast %144 : vector<128x1xf32> to vector<128x128xf32>
    %146 = arith.subf %115, %145 : vector<128x128xf32>
    %147 = math.exp %146 : vector<128x128xf32>
    %cst_45 = arith.constant dense<0.000000e+00> : vector<128xf32>
    %148 = vector.multi_reduction <add>, %147, %cst_45 [1] : vector<128x128xf32> to vector<128xf32>
    %149 = vector.shape_cast %148 : vector<128xf32> to vector<128x1xf32>
    %150 = math.log %149 : vector<128x1xf32>
    %151 = vector.broadcast %150 : vector<128x1xf32> to vector<128x128xf32>
    %152 = arith.subf %146, %151 : vector<128x128xf32>
    %153 = tpu.transpose %129, [1, 0] : vector<128x128xf32> -> vector<128x128xf32>
    %154 = arith.mulf %153, %152 : vector<128x128xf32>
    %cst_46 = arith.constant dense<0.000000e+00> : vector<128xf32>
    %155 = vector.multi_reduction <add>, %154, %cst_46 [1] : vector<128x128xf32> to vector<128xf32>
    %156 = vector.shape_cast %155 : vector<128xf32> to vector<128x1xf32>
    %157 = arith.addf %142, %156 : vector<128x1xf32>
    %cst_47 = arith.constant dense<0.000000e+00> : vector<1xf32>
    %158 = vector.multi_reduction <add>, %157, %cst_47 [0] : vector<128x1xf32> to vector<1xf32>
    %159 = vector.shape_cast %158 : vector<1xf32> to vector<1x1xf32>
    %cst_48 = arith.constant -3.906250e-03 : f32
    %160 = vector.broadcast %cst_48 : f32 to vector<1x1xf32>
    %161 = arith.mulf %159, %160 : vector<1x1xf32>
    %162 = vector.shape_cast %161 : vector<1x1xf32> to vector<1x1xf32>
    %163 = vector.broadcast %162 : vector<1x1xf32> to vector<8x128xf32>
    %c0_49 = arith.constant 0 : index
    %c0_50 = arith.constant 0 : index
    %c0_51 = arith.constant 0 : index
    %164 = vector.load %arg6[%c0_49, %c0_50, %c0_51] : memref<1x8x128xf32, #tpu.memory_space<vmem>>, vector<1x8x128xf32>
    %165 = vector.shape_cast %164 : vector<1x8x128xf32> to vector<8x128xf32>
    %166 = vector.shape_cast %163 : vector<8x128xf32> to vector<1x8x128xf32>
    tpu.vector_store %arg6[%c0_49, %c0_50, %c0_51], %166 {strides = array<i32>} : memref<1x8x128xf32, #tpu.memory_space<vmem>>, vector<1x8x128xf32>,
    return
  }
  func.func @transform_0(%arg0: i32) -> (i32, i32, i32) {
    %c0_i32 = arith.constant 0 : i32
    %c0_i32_0 = arith.constant 0 : i32
    %c0_i32_1 = arith.constant 0 : i32
    return %arg0, %c0_i32, %c0_i32_0 : i32, i32, i32
  }
  func.func @transform_1(%arg0: i32) -> (i32, i32, i32) {
    %c0_i32 = arith.constant 0 : i32
    %c0_i32_0 = arith.constant 0 : i32
    %c0_i32_1 = arith.constant 0 : i32
    return %arg0, %c0_i32, %c0_i32_0 : i32, i32, i32
  }
  func.func @transform_2(%arg0: i32) -> (i32, i32) {
    %c0_i32 = arith.constant 0 : i32
    %c0_i32_0 = arith.constant 0 : i32
    %c0_i32_1 = arith.constant 0 : i32
    return %c0_i32, %c0_i32_0 : i32, i32
  }
  func.func @transform_3(%arg0: i32) -> (i32, i32) {
    %c0_i32 = arith.constant 0 : i32
    %c0_i32_0 = arith.constant 0 : i32
    %c0_i32_1 = arith.constant 0 : i32
    return %c0_i32, %c0_i32_0 : i32, i32
  }
  func.func @transform_4(%arg0: i32) -> (i32, i32, i32) {
    %c0_i32 = arith.constant 0 : i32
    %c0_i32_0 = arith.constant 0 : i32
    %c0_i32_1 = arith.constant 0 : i32
    %c0_i32_2 = arith.constant 0 : i32
    return %c0_i32, %c0_i32_0, %c0_i32_1 : i32, i32, i32
  }
  func.func @transform_5(%arg0: i32) -> (i32, i32, i32) {
    %c0_i32 = arith.constant 0 : i32
    %c0_i32_0 = arith.constant 0 : i32
    %c0_i32_1 = arith.constant 0 : i32
    return %arg0, %c0_i32, %c0_i32_0 : i32, i32, i32
  }
}

</mosaic_0001>

<bundles_post_ra>
// kernel: clip_forward_batched.1
= control target key start
LH: loop header
LB: loop body
LE: loop exit
PB: predicated region body
PF: predicated region fallthrough
CT: control target
= control target key end

     0   :  { %s3242_s18 = smov 0   ;;  %s4609_s0 = inlined_call_operand.vmem [shape: f32[4,128,32], index: 0, kind: input, shape index: {}]   ;;  %s4610_s1 = inlined_call_operand.vmem [shape: f32[4,128,16], index: 1, kind: input, shape index: {}]   ;;  %s4611_s2 = inlined_call_operand.vmem [shape: bf16[48,128], index: 2, kind: input, shape index: {}]   ;;  %s4612_s3 = inlined_call_operand.vmem [shape: f32[8,128], index: 3, kind: input, shape index: {}]   ;;  %s4613_s4 = inlined_call_operand.vmem [shape: bf16[2,128,128], index: 4, kind: input, shape index: {}]   ;;  %s4614_s5 = inlined_call_operand.vmem [shape: f32[4,8,128], index: 5, kind: output, shape index: {}]  }
   0x1 LB: > { %s2574_s19 = sadd.s32 4294967295, %s3210_s18   ;;  %p2578_p0 = scmp.ge.s32.totalorder %s3210_s18, 1  ;;  %s3210_s18 = sphi %s3242_s18, %s15_s18  }
   0x2   : > { %p197_p1 = scmp.lt.s32.totalorder %s3210_s18, 5 }
   0x4   : > { %p198_p2 = pnand %p2578_p0, %p197_p1 }
   0x6   : > { %201 = sbr.rel (%p198_p2) target bundleno = 1820 (0x71c), region = 40 }
   0xb   : > { %v2864_v0 = vld [vmem:[%s4611_s2 + $0x8] sm:$0xff]   ;;  %p229_p3 = scmp.lt.s32.totalorder %s2574_s19, 3  ;;  %v2865_v1 = vld [vmem:[%s4611_s2] sm:$0xff]   ;;  %v2866_v2 = vld [vmem:[%s4611_s2 + $0x10] sm:$0xff]   ;;  %vm307_vm0 = vcmask 261120   ;;  %vm998_vm1 = vcmask 130048   ;;  %v291_v51 = vlaneseq }
   0xc   : > { %2738 = vmatprep.subr.bf16.mxu0 %v2864_v0  ;;  %v3330_v54 = vld [vmem:[%s4612_s3] sm:$0xff] }
   0xd   : > { %s4658_s19 = smov (!%p229_p3, %s2574_s19), 3  ;;  %2739 = vmatpush3.bf16.msra.mxu0 %v2864_v0  ;;  %v3324_v52 = vshrl.u32 %v291_v51, 7 }
   0xe   : > { %2740 = vmatprep.subr.bf16.mxu0 %v2865_v1  ;;  %s2637_s24 = sshll.u32 %s4658_s19, 7  ;;  %s2583_s23 = sshll.u32 %s4658_s19, 3 }
   0xf   : > { %s3267_s29 = scalar_lea.vmem %s4609_s0, %s2637_s24  ;;  %s3293_s7 = scalar_lea.vmem %s4610_s1, %s2637_s24  ;;  %v293_v53 = vsub.s32 0, %v3324_v52 }
  0x10   : > { %v251_v3 = vld [vmem:[%s3267_s29] sm:$0xff]  ;;  %v252_v4 = vld [vmem:[%s3267_s29 + $0x8] sm:$0xff]  ;;  %v253_v5 = vld [vmem:[%s3267_s29 + $0x10] sm:$0xff]  ;;  %s242_s26 = scalar_lea.vmem %s4614_s5, %s2583_s23 }
  0x11   : > { %2741 = vmatpush3.bf16.msra.mxu0 %v2865_v1  ;;  %v283_v6 = vpack.c.bf16 %v252_v4, %v251_v3  ;;  %v254_v7 = vld [vmem:[%s3267_s29 + $0x18] sm:$0xff]  ;;  %v255_v8 = vld [vmem:[%s3267_s29 + $0x20] sm:$0xff]  ;;  %v256_v9 = vld [vmem:[%s3267_s29 + $0x28] sm:$0xff]  ;;  %v3333_v55 = vrot.slane %v3330_v54, %v293_v53 }
  0x12   : > { %v284_v10 = vpack.c.bf16 %v254_v7, %v253_v5  ;;  %2790 = vmatprep.subr.bf16.mxu0 %v2866_v2  ;;  %v285_v11 = vpack.c.bf16 %v256_v9, %v255_v8  ;;  %v257_v12 = vld [vmem:[%s3267_s29 + $0x30] sm:$0xff]  ;;  %v258_v13 = vld [vmem:[%s3267_s29 + $0x38] sm:$0xff]  ;;  %v259_v14 = vld [vmem:[%s3267_s29 + $0x40] sm:$0xff] }
  0x13   : > { %2742 = vmatprep.mubr.msk.bf16.mxu0 %vm307_vm0, %v283_v6  ;;  %v260_v15 = vld [vmem:[%s3267_s29 + $0x48] sm:$0xff]  ;;  %v286_v16 = vpack.c.bf16 %v258_v13, %v257_v12  ;;  %v261_v18 = vld [vmem:[%s3267_s29 + $0x50] sm:$0xff]  ;;  %v262_v19 = vld [vmem:[%s3267_s29 + $0x58] sm:$0xff] }
  0x14   : > { %2743 = vmatmul.mubr.msk.bf16.vlgmr.msra.gmra.mxu0 %vm307_vm0, %v284_v10  ;;  %v287_v17 = vpack.c.bf16 %v260_v15, %v259_v14  ;;  %v263_v20 = vld [vmem:[%s3267_s29 + $0x60] sm:$0xff]  ;;  %v264_v21 = vld [vmem:[%s3267_s29 + $0x68] sm:$0xff]  ;;  %v288_v22 = vpack.c.bf16 %v262_v19, %v261_v18  ;;  %v265_v24 = vld [vmem:[%s3267_s29 + $0x70] sm:$0xff] }
  0x15   : > { %2791 = vmatpush3.bf16.msra.mxu0 %v2866_v2  ;;  %2746 = vmatprep.mubr.msk.bf16.mxu0 %vm307_vm0, %v285_v11  ;;  %v289_v23 = vpack.c.bf16 %v264_v21, %v263_v20  ;;  %v266_v25 = vld [vmem:[%s3267_s29 + $0x78] sm:$0xff]  ;;  %v947_v26 = vld [vmem:[%s3293_s7] sm:$0xff]  ;;  %v948_v27 = vld [vmem:[%s3293_s7 + $0x8] sm:$0xff] }
  0x16   : > { %v290_v28 = vpack.c.bf16 %v266_v25, %v265_v24  ;;  %v980_v29 = vpack.c.bf16 %v948_v27, %v947_v26  ;;  %v949_v30 = vld [vmem:[%s3293_s7 + $0x10] sm:$0xff]  ;;  %v950_v31 = vld [vmem:[%s3293_s7 + $0x18] sm:$0xff]  ;;  %v951_v32 = vld [vmem:[%s3293_s7 + $0x20] sm:$0xff] }
  0x17   : > { %v952_v33 = vld [vmem:[%s3293_s7 + $0x28] sm:$0xff]  ;;  %v981_v34 = vpack.c.bf16 %v950_v31, %v949_v30  ;;  %v953_v36 = vld [vmem:[%s3293_s7 + $0x30] sm:$0xff]  ;;  %v954_v37 = vld [vmem:[%s3293_s7 + $0x38] sm:$0xff] }
  0x18   : > { %v982_v35 = vpack.c.bf16 %v952_v33, %v951_v32  ;;  %v955_v38 = vld [vmem:[%s3293_s7 + $0x40] sm:$0xff]  ;;  %v956_v39 = vld [vmem:[%s3293_s7 + $0x48] sm:$0xff]  ;;  %v983_v40 = vpack.c.bf16 %v954_v37, %v953_v36  ;;  %v957_v42 = vld [vmem:[%s3293_s7 + $0x50] sm:$0xff] }
  0x19   : > { %v984_v41 = vpack.c.bf16 %v956_v39, %v955_v38  ;;  %v958_v43 = vld [vmem:[%s3293_s7 + $0x58] sm:$0xff]  ;;  %v959_v44 = vld [vmem:[%s3293_s7 + $0x60] sm:$0xff]  ;;  %v960_v45 = vld [vmem:[%s3293_s7 + $0x68] sm:$0xff] }
  0x1a   : > { %v985_v46 = vpack.c.bf16 %v958_v43, %v957_v42  ;;  %v986_v47 = vpack.c.bf16 %v960_v45, %v959_v44  ;;  %v961_v48 = vld [vmem:[%s3293_s7 + $0x70] sm:$0xff]  ;;  %v962_v49 = vld [vmem:[%s3293_s7 + $0x78] sm:$0xff] }
  0x1b   : > { %v987_v50 = vpack.c.bf16 %v962_v49, %v961_v48 }
  0x1c   : > { %2747 = vmatmul.mubr.msk.bf16.gmra.mxu0 %vm307_vm0, %v286_v16 }
  0x1d   : > { %2750 = vmatprep.mubr.msk.bf16.mxu0 %vm307_vm0, %v287_v17 }
  0x24   : > { %2751 = vmatmul.mubr.msk.bf16.gmra.mxu0 %vm307_vm0, %v288_v22 }
  0x25   : > { %2754 = vmatprep.mubr.msk.bf16.mxu0 %vm307_vm0, %v289_v23 }
  0x2c   : > { %2755 = vmatmul.mubr.msk.bf16.gmra.mxu0 %vm307_vm0, %v290_v28 }
  0x2d   : > { %2792 = vmatprep.mubr.msk.bf16.mxu0 %vm998_vm1, %v980_v29 }
  0x34   : > { %2793 = vmatmul.mubr.msk.bf16.vlgmr.msra.gmra.mxu0 %vm998_vm1, %v981_v34 }
  0x35   : > { %2796 = vmatprep.mubr.msk.bf16.mxu0 %vm998_vm1, %v982_v35 }
  0x3c   : > { %2797 = vmatmul.mubr.msk.bf16.gmra.mxu0 %vm998_vm1, %v983_v40 }
  0x3d   : > { %2800 = vmatprep.mubr.msk.bf16.mxu0 %vm998_vm1, %v984_v41 }
  0x44   : > { %2801 = vmatmul.mubr.msk.bf16.gmra.mxu0 %vm998_vm1, %v985_v46 }
  0x45   : > { %2804 = vmatprep.mubr.msk.bf16.mxu0 %vm998_vm1, %v986_v47 }
  0x4c   : > { %2805 = vmatmul.mubr.msk.bf16.gmra.mxu0 %vm998_vm1, %v987_v50 }
  0xd4   : > { %v2744_v56 = vpop.f32.mrf.mxu0 }
  0xd5   : > { %v3336_v57 = vadd.f32 %v2744_v56, %v3333_v55  ;;  %v990_v56 = vsub.s32 4, %v3324_v52 }
  0xd6   : > { %v366_v58 = vpop.f32.mrf.mxu0 }
  0xd7   : > { %v431_v59 = vmul.f32 %v3336_v57, %v3336_v57  ;;  %v3341_v60 = vadd.f32 %v366_v58, %v3333_v55 }
  0xd8   : > { %v2745_v61 = vpop.f32.mrf.mxu0 }
  0xd9   : > { %v447_v62 = vmul.f32 %v431_v59, %v3336_v57  ;;  %v429_v63 = vmul.f32 %v3341_v60, %v3341_v60  ;;  %v3347_v0 = vadd.f32 %v2745_v61, %v3333_v55 }
  0xda   : > { %v369_v1 = vpop.f32.mrf.mxu0 }
  0xdb   : > { %v463_v2 = vmul.f32 0.044715, %v447_v62  ;;  %v445_v3 = vmul.f32 %v429_v63, %v3341_v60  ;;  %v432_v4 = vmul.f32 %v3347_v0, %v3347_v0  ;;  %v3353_v5 = vadd.f32 %v369_v1, %v3333_v55 }
  0xdc   : > { %v2748_v6 = vpop.f32.mrf.mxu0 }
  0xdd   : > { %v461_v7 = vmul.f32 0.044715, %v445_v3  ;;  %v448_v8 = vmul.f32 %v432_v4, %v3347_v0  ;;  %v430_v9 = vmul.f32 %v3353_v5, %v3353_v5  ;;  %v3359_v10 = vadd.f32 %v2748_v6, %v3333_v55 }
  0xde   : > { %v382_v11 = vpop.f32.mrf.mxu0  ;;  %v479_v12 = vadd.f32 %v463_v2, %v3336_v57 }
  0xdf   : > { %v464_v13 = vmul.f32 0.044715, %v448_v8  ;;  %v446_v14 = vmul.f32 %v430_v9, %v3353_v5  ;;  %v435_v15 = vmul.f32 %v3359_v10, %v3359_v10  ;;  %v3366_v16 = vadd.f32 %v382_v11, %v3333_v55 }
  0xe0   : > { %v2749_v17 = vpop.f32.mrf.mxu0  ;;  %v495_v18 = vmul.f32 0.7978846, %v479_v12  ;;  %v477_v19 = vadd.f32 %v461_v7, %v3341_v60  ;;  %v3419_v12 = vrot.slane %v3330_v54, %v990_v56 }
  0xe1   : > { %v462_v20 = vmul.f32 0.044715, %v446_v14  ;;  %v451_v21 = vmul.f32 %v435_v15, %v3359_v10  ;;  %v433_v22 = vmul.f32 %v3366_v16, %v3366_v16  ;;  %v3373_v23 = vadd.f32 %v2749_v17, %v3333_v55 }
  0xe2   : > { %v385_v24 = vpop.f32.mrf.mxu0  ;;  %2883 = vtanh.f32 %v495_v18  ;;  %v493_v25 = vmul.f32 0.7978846, %v477_v19  ;;  %v480_v26 = vadd.f32 %v464_v13, %v3347_v0 }
  0xe3   : > { %v467_v27 = vmul.f32 0.044715, %v451_v21  ;;  %v449_v28 = vmul.f32 %v433_v22, %v3366_v16  ;;  %v436_v29 = vmul.f32 %v3373_v23, %v3373_v23  ;;  %v3380_v30 = vadd.f32 %v385_v24, %v3333_v55 }
  0xe4   : > { %v2752_v31 = vpop.f32.mrf.mxu0  ;;  %2885 = vtanh.f32 %v493_v25  ;;  %v496_v32 = vmul.f32 0.7978846, %v480_v26  ;;  %v478_v33 = vadd.f32 %v462_v20, %v3353_v5 }
  0xe5   : > { %v465_v34 = vmul.f32 0.044715, %v449_v28  ;;  %v452_v35 = vmul.f32 %v436_v29, %v3373_v23  ;;  %v434_v36 = vmul.f32 %v3380_v30, %v3380_v30  ;;  %v3387_v37 = vadd.f32 %v2752_v31, %v3333_v55 }
  0xe6   : > { %v398_v38 = vpop.f32.mrf.mxu0  ;;  %2887 = vtanh.f32 %v496_v32  ;;  %v494_v39 = vmul.f32 0.7978846, %v478_v33  ;;  %v483_v40 = vadd.f32 %v467_v27, %v3359_v10 }
  0xe7   : > { %v468_v41 = vmul.f32 0.044715, %v452_v35  ;;  %v450_v42 = vmul.f32 %v434_v36, %v3380_v30  ;;  %v439_v43 = vmul.f32 %v3387_v37, %v3387_v37  ;;  %v3394_v44 = vadd.f32 %v398_v38, %v3333_v55 }
  0xe8   : > { %v2753_v45 = vpop.f32.mrf.mxu0  ;;  %2889 = vtanh.f32 %v494_v39  ;;  %v481_v46 = vadd.f32 %v465_v34, %v3366_v16  ;;  %v499_v47 = vmul.f32 0.7978846, %v483_v40 }
  0xe9   : > { %v466_v48 = vmul.f32 0.044715, %v450_v42  ;;  %v455_v49 = vmul.f32 %v439_v43, %v3387_v37  ;;  %v437_v50 = vmul.f32 %v3394_v44, %v3394_v44  ;;  %v3401_v51 = vadd.f32 %v2753_v45, %v3333_v55 }
  0xea   : > { %v401_v53 = vpop.f32.mrf.mxu0  ;;  %v497_v58 = vmul.f32 0.7978846, %v481_v46  ;;  %2891 = vtanh.f32 %v499_v47  ;;  %v484_v59 = vadd.f32 %v468_v41, %v3373_v23 }
  0xeb   : > { %v471_v61 = vmul.f32 0.044715, %v455_v49  ;;  %v453_v62 = vmul.f32 %v437_v50, %v3394_v44  ;;  %v440_v63 = vmul.f32 %v3401_v51, %v3401_v51  ;;  %v3409_v1 = vadd.f32 %v401_v53, %v3333_v55 }
  0xec   : > { %v2756_v2 = vpop.f32.mrf.mxu0  ;;  %2893 = vtanh.f32 %v497_v58  ;;  %v482_v3 = vadd.f32 %v466_v48, %v3380_v30  ;;  %v500_v4 = vmul.f32 0.7978846, %v484_v59 }
  0xed   : > { %v469_v6 = vmul.f32 0.044715, %v453_v62  ;;  %v456_v7 = vmul.f32 %v440_v63, %v3401_v51  ;;  %v438_v8 = vmul.f32 %v3409_v1, %v3409_v1  ;;  %v3416_v9 = vadd.f32 %v2756_v2, %v3333_v55 }
  0xee   : > { %v414_v11 = vpop.f32.mrf.mxu0  ;;  %v498_v13 = vmul.f32 0.7978846, %v482_v3  ;;  %2895 = vtanh.f32 %v500_v4  ;;  %v487_v14 = vadd.f32 %v471_v61, %v3387_v37 }
  0xef   : > { %v2884_v15 = vpop.eup %2883  ;;  %v3422_v17 = vmul.f32 0.044715, %v456_v7  ;;  %v454_v18 = vmul.f32 %v438_v8, %v3409_v1  ;;  %v443_v19 = vmul.f32 %v3416_v9, %v3416_v9  ;;  %v3428_v20 = vadd.f32 %v414_v11, %v3333_v55 }
  0xf0   : > { %v2757_v21 = vpop.f32.mrf.mxu0  ;;  %v527_v22 = vadd.f32 1.0, %v2884_v15  ;;  %2897 = vtanh.f32 %v498_v13  ;;  %v485_v54 = vadd.f32 %v469_v6, %v3394_v44  ;;  %v503_v24 = vmul.f32 0.7978846, %v487_v14 }
  0xf1   : > { %v2886_v25 = vpop.eup %2885  ;;  %v470_v26 = vmul.f32 0.044715, %v454_v18  ;;  %v459_v27 = vmul.f32 %v443_v19, %v3416_v9  ;;  %v441_v28 = vmul.f32 %v3428_v20, %v3428_v20  ;;  %v3435_v29 = vadd.f32 %v2757_v21, %v3333_v55 }
  0xf2   : > { %v417_v31 = vpop.f32.mrf.mxu0  ;;  %v543_v32 = vmul.f32 0.5, %v527_v22  ;;  %v525_v33 = vadd.f32 1.0, %v2886_v25  ;;  %v501_v34 = vmul.f32 0.7978846, %v485_v54  ;;  %2899 = vtanh.f32 %v503_v24 }
  0xf3   : > { %v2888_v35 = vpop.eup %2887  ;;  %v3437_v36 = vmul.f32 0.044715, %v459_v27  ;;  %v457_v38 = vmul.f32 %v441_v28, %v3428_v20  ;;  %v444_v39 = vmul.f32 %v3435_v29, %v3435_v29  ;;  %v3443_v40 = vadd.f32 %v417_v31, %v3333_v55 }
  0xf4   : > { %v2794_v41 = vpop.f32.mrf.mxu0  ;;  %v3446_v42 = vmul.f32 %v543_v32, %v3336_v57  ;;  %v541_v43 = vmul.f32 0.5, %v525_v33  ;;  %v528_v45 = vadd.f32 1.0, %v2888_v35  ;;  %2901 = vtanh.f32 %v501_v34 }
  0xf5   : > { %v2890_v46 = vpop.eup %2889  ;;  %v3448_v47 = vmul.f32 0.044715, %v457_v38  ;;  %v460_v48 = vmul.f32 %v444_v39, %v3435_v29  ;;  %v442_v49 = vmul.f32 %v3443_v40, %v3443_v40  ;;  %v3454_v50 = vadd.f32 %v2794_v41, %v3419_v12 }
  0xf6   : > { %577 = vadd.xlane.f32.xlu1 %v3446_v42  ;;  %v1057_v55 = vpop.f32.mrf.mxu0  ;;  %v3458_v57 = vmul.f32 %v541_v43, %v3341_v60  ;;  %v544_v53 = vmul.f32 0.5, %v528_v45  ;;  %v526_v56 = vadd.f32 1.0, %v2890_v46  ;;  %v486_v58 = vadd.f32 %v470_v26, %v3409_v1 }
  0xf7   : > { %v2892_v59 = vpop.eup %2891  ;;  %v3461_v61 = vmul.f32 0.044715, %v460_v48  ;;  %v458_v62 = vmul.f32 %v442_v49, %v3443_v40  ;;  %v1122_v63 = vmul.f32 %v3454_v50, %v3454_v50  ;;  %v3467_v2 = vadd.f32 %v1057_v55, %v3419_v12 }
  0xf8   : > { %573 = vadd.xlane.f32.xlu0 %v3458_v57  ;;  %v2795_v3 = vpop.f32.mrf.mxu0  ;;  %v3471_v60 = vmul.f32 %v544_v53, %v3347_v0  ;;  %v542_v4 = vmul.f32 0.5, %v526_v56  ;;  %v531_v6 = vadd.f32 1.0, %v2892_v59  ;;  %v502_v7 = vmul.f32 0.7978846, %v486_v58 }
  0xf9   : > { %v2894_v8 = vpop.eup %2893  ;;  %v474_v11 = vmul.f32 0.044715, %v458_v62  ;;  %v1138_v13 = vmul.f32 %v1122_v63, %v3454_v50  ;;  %v1120_v14 = vmul.f32 %v3467_v2, %v3467_v2  ;;  %v3477_v15 = vadd.f32 %v2795_v3, %v3419_v12 }
  0xfa   : > { %579 = vadd.xlane.f32.xlu1 %v3471_v60  ;;  %v1060_v18 = vpop.f32.mrf.mxu0  ;;  %v3481_v19 = vmul.f32 %v542_v4, %v3353_v5  ;;  %v529_v0 = vadd.f32 1.0, %v2894_v8  ;;  %v547_v21 = vmul.f32 0.5, %v531_v6  ;;  %2903 = vtanh.f32 %v502_v7 }
  0xfb   : > { %v2896_v22 = vpop.eup %2895  ;;  %v3483_v54 = vmul.f32 0.044715, %v1138_v13  ;;  %v1136_v24 = vmul.f32 %v1120_v14, %v3467_v2  ;;  %v1123_v25 = vmul.f32 %v3477_v15, %v3477_v15  ;;  %v3489_v26 = vadd.f32 %v1060_v18, %v3419_v12 }
  0xfc   : > { %575 = vadd.xlane.f32.xlu0 %v3481_v19  ;;  %v2798_v27 = vpop.f32.mrf.mxu0  ;;  %v545_v28 = vmul.f32 0.5, %v529_v0  ;;  %v3493_v5 = vmul.f32 %v547_v21, %v3359_v10  ;;  %v532_v31 = vadd.f32 1.0, %v2896_v22  ;;  %v488_v32 = vadd.f32 %v3422_v17, %v3401_v51 }
  0xfd   : > { %v2898_v33 = vpop.eup %2897  ;;  %v3497_v34 = vmul.f32 0.044715, %v1136_v24  ;;  %v1139_v35 = vmul.f32 %v1123_v25, %v3477_v15  ;;  %v1121_v38 = vmul.f32 %v3489_v26, %v3489_v26  ;;  %v3503_v39 = vadd.f32 %v2798_v27, %v3419_v12 }
  0xfe   : > { %v1073_v41 = vpop.f32.mrf.mxu0  ;;  %v3506_v43 = vmul.f32 %v545_v28, %v3366_v16  ;;  %v530_v10 = vadd.f32 1.0, %v2898_v33  ;;  %v548_v45 = vmul.f32 0.5, %v532_v31  ;;  %v504_v46 = vmul.f32 0.7978846, %v488_v32 }
  0xff   : > { %v2900_v48 = vpop.eup %2899  ;;  %v3508_v17 = vmul.f32 0.044715, %v1139_v35  ;;  %v1137_v49 = vmul.f32 %v1121_v38, %v3489_v26  ;;  %v1126_v55 = vmul.f32 %v3503_v39, %v3503_v39  ;;  %v3514_v53 = vadd.f32 %v1073_v41, %v3419_v12 }
 0x100   : > { %581 = vadd.xlane.f32.xlu0 %v3506_v43  ;;  %v2799_v56 = vpop.f32.mrf.mxu0  ;;  %v546_v58 = vmul.f32 0.5, %v530_v10  ;;  %v3518_v16 = vmul.f32 %v548_v45, %v3373_v23  ;;  %v535_v59 = vadd.f32 1.0, %v2900_v48  ;;  %2905 = vtanh.f32 %v504_v46 }
 0x101   : > { %v2902_v62 = vpop.eup %2901  ;;  %v1153_v63 = vmul.f32 0.044715, %v1137_v49  ;;  %v1142_v3 = vmul.f32 %v1126_v55, %v3503_v39  ;;  %v1124_v4 = vmul.f32 %v3514_v53, %v3514_v53  ;;  %v3524_v6 = vadd.f32 %v2799_v56, %v3419_v12 }
 0x102   : > { %v1076_v7 = vpop.f32.mrf.mxu0  ;;  %v3527_v8 = vmul.f32 %v546_v58, %v3380_v30  ;;  %v533_v13 = vadd.f32 1.0, %v2902_v62  ;;  %v551_v14 = vmul.f32 0.5, %v535_v59  ;;  %v489_v23 = vadd.f32 %v3448_v47, %v3428_v20 }
 0x103   : > { %v3531_v18 = vmul.f32 0.044715, %v1142_v3  ;;  %v1140_v0 = vmul.f32 %v1124_v4, %v3514_v53  ;;  %v1127_v21 = vmul.f32 %v3524_v6, %v3524_v6  ;;  %v3537_v22 = vadd.f32 %v1076_v7, %v3419_v12 }
 0x104   : > { %583 = vadd.xlane.f32.xlu1 %v3527_v8  ;;  %585 = vadd.xlane.f32.xlu0 %v3493_v5  ;;  %v2802_v30 = vpop.f32.mrf.mxu0  ;;  %v549_v24 = vmul.f32 0.5, %v533_v13  ;;  %v3542_v25 = vmul.f32 %v551_v14, %v3387_v37  ;;  %v505_v47 = vmul.f32 0.7978846, %v489_v23  ;;  %v490_v27 = vadd.f32 %v474_v11, %v3443_v40 }
 0x105   : > { %v3545_v28 = vmul.f32 0.044715, %v1140_v0  ;;  %v1143_v31 = vmul.f32 %v1127_v21, %v3524_v6  ;;  %v1125_v32 = vmul.f32 %v3537_v22, %v3537_v22  ;;  %v3551_v33 = vadd.f32 %v2802_v30, %v3419_v12 }
 0x106   : > { %v1089_v35 = vpop.f32.mrf.mxu0  ;;  %v3554_v38 = vmul.f32 %v549_v24, %v3394_v44  ;;  %2907 = vtanh.f32 %v505_v47  ;;  %v506_v37 = vmul.f32 0.7978846, %v490_v27  ;;  %v491_v41 = vadd.f32 %v3437_v36, %v3416_v9 }
 0x107   : > { %v2904_v11 = vpop.eup %2903  ;;  %v3558_v10 = vmul.f32 0.044715, %v1143_v31  ;;  %v1141_v45 = vmul.f32 %v1125_v32, %v3537_v22  ;;  %v1130_v46 = vmul.f32 %v3551_v33, %v3551_v33  ;;  %v3564_v48 = vadd.f32 %v1089_v35, %v3419_v12 }
 0x108   : > { %587 = vadd.xlane.f32.xlu1 %v3518_v16  ;;  %589 = vadd.xlane.f32.xlu0 %v3554_v38  ;;  %v2803_v44 = vpop.f32.mrf.mxu0  ;;  %v534_v49 = vadd.f32 1.0, %v2904_v11  ;;  %2909 = vtanh.f32 %v506_v37  ;;  %v507_v55 = vmul.f32 0.7978846, %v491_v41  ;;  %v492_v36 = vadd.f32 %v3461_v61, %v3435_v29 }
 0x109   : > { %v1157_v56 = vmul.f32 0.044715, %v1141_v45  ;;  %v1146_v58 = vmul.f32 %v1130_v46, %v3551_v33  ;;  %v1128_v59 = vmul.f32 %v3564_v48, %v3564_v48  ;;  %v3574_v62 = vadd.f32 %v2803_v44, %v3419_v12 }
 0x10a   : > { %v1092_v3 = vpop.f32.mrf.mxu0  ;;  %v550_v4 = vmul.f32 0.5, %v534_v49  ;;  %2911 = vtanh.f32 %v507_v55  ;;  %v508_v7 = vmul.f32 0.7978846, %v492_v36  ;;  %v1168_v13 = vadd.f32 %v3497_v34, %v3467_v2 }
 0x10b   : > { %v3578_v14 = vmul.f32 0.044715, %v1146_v58  ;;  %v1144_v61 = vmul.f32 %v1128_v59, %v3564_v48  ;;  %v1131_v23 = vmul.f32 %v3574_v62, %v3574_v62  ;;  %v3584_v0 = vadd.f32 %v1092_v3, %v3419_v12 }
 0x10c   : > { %v3587_v21 = vmul.f32 %v550_v4, %v3409_v1  ;;  %593 = vadd.xlane.f32.xlu0 %v3542_v25  ;;  %v2806_v30 = vpop.f32.mrf.mxu0  ;;  %2913 = vtanh.f32 %v508_v7  ;;  %v1184_v24 = vmul.f32 0.7978846, %v1168_v13  ;;  %v1169_v34 = vadd.f32 %v1153_v63, %v3489_v26 }
 0x10d   : > { %v2906_v47 = vpop.eup %2905  ;;  %v1160_v27 = vmul.f32 0.044715, %v1144_v61  ;;  %v1147_v31 = vmul.f32 %v1131_v23, %v3574_v62  ;;  %v1129_v32 = vmul.f32 %v3584_v0, %v3584_v0  ;;  %v3595_v35 = vadd.f32 %v2806_v30, %v3419_v12 }
 0x10e   : > { %591 = vadd.xlane.f32.xlu1 %v3587_v21  ;;  %v1105_v1 = vpop.f32.mrf.mxu0  ;;  %v536_v37 = vadd.f32 1.0, %v2906_v47  ;;  %2915 = vtanh.f32 %v1184_v24  ;;  %v1185_v41 = vmul.f32 0.7978846, %v1169_v34  ;;  %v1170_v11 = vadd.f32 %v3483_v54, %v3454_v50 }
 0x10f   : > { %v1163_v63 = vmul.f32 0.044715, %v1147_v31  ;;  %v1145_v45 = vmul.f32 %v1129_v32, %v3584_v0  ;;  %v1134_v46 = vmul.f32 %v3595_v35, %v3595_v35  ;;  %v3604_v44 = vadd.f32 %v1105_v1, %v3419_v12 }
 0x110   : > { %v552_v49 = vmul.f32 0.5, %v536_v37  ;;  %v2807_v55 = vpop.f32.mrf.mxu0  ;;  %2917 = vtanh.f32 %v1185_v41  ;;  %v1186_v36 = vmul.f32 0.7978846, %v1170_v11  ;;  %v1171_v58 = vadd.f32 %v3508_v17, %v3477_v15 }
 0x111   : > { %v1161_v59 = vmul.f32 0.044715, %v1145_v45  ;;  %v1150_v3 = vmul.f32 %v1134_v46, %v3595_v35  ;;  %v1132_v54 = vmul.f32 %v3604_v44, %v3604_v44  ;;  %v3612_v4 = vadd.f32 %v2807_v55, %v3419_v12 }
 0x112   : > { %v3615_v7 = vmul.f32 %v552_v49, %v3401_v51  ;;  %v1108_v13 = vpop.f32.mrf.mxu0  ;;  %2919 = vtanh.f32 %v1186_v36  ;;  %v1187_v61 = vmul.f32 0.7978846, %v1171_v58  ;;  %v1172_v23 = vadd.f32 %v3545_v28, %v3514_v53 }
 0x113   : > { %v2908_v30 = vpop.eup %2907  ;;  %v1166_v17 = vmul.f32 0.044715, %v1150_v3  ;;  %v1148_v24 = vmul.f32 %v1132_v54, %v3604_v44  ;;  %v1135_v34 = vmul.f32 %v3612_v4, %v3612_v4  ;;  %v3623_v47 = vadd.f32 %v1108_v13, %v3419_v12 }
 0x114   : > { %595 = vadd.xlane.f32.xlu1 %v3615_v7  ;;  %v537_v51 = vadd.f32 1.0, %v2908_v30  ;;  %2921 = vtanh.f32 %v1187_v61  ;;  %v1188_v31 = vmul.f32 0.7978846, %v1172_v23  ;;  %v1173_v32 = vadd.f32 %v1157_v56, %v3537_v22 }
 0x115   : > { %v2910_v1 = vpop.eup %2909  ;;  %v1164_v37 = vmul.f32 0.044715, %v1148_v24  ;;  %v1151_v28 = vmul.f32 %v1135_v34, %v3612_v4  ;;  %v1133_v41 = vmul.f32 %v3623_v47, %v3623_v47  ;;  %v1174_v11 = vadd.f32 %v3531_v18, %v3503_v39 }
 0x116   : > { %v553_v45 = vmul.f32 0.5, %v537_v51  ;;  %v538_v12 = vadd.f32 1.0, %v2910_v1  ;;  %2923 = vtanh.f32 %v1188_v31  ;;  %v1189_v46 = vmul.f32 0.7978846, %v1173_v32 }
 0x117   : > { %v2912_v49 = vpop.eup %2911  ;;  %v1167_v55 = vmul.f32 0.044715, %v1151_v28  ;;  %v1149_v36 = vmul.f32 %v1133_v41, %v3623_v47  ;;  %v1190_v58 = vmul.f32 0.7978846, %v1174_v11  ;;  %v1175_v56 = vadd.f32 %v3558_v10, %v3524_v6 }
 0x118   : > { %v3636_v3 = vmul.f32 %v553_v45, %v3428_v20  ;;  %v554_v54 = vmul.f32 0.5, %v538_v12  ;;  %v539_v13 = vadd.f32 1.0, %v2912_v49  ;;  %2925 = vtanh.f32 %v1189_v46 }
 0x119   : > { %v2914_v61 = vpop.eup %2913  ;;  %v1165_v18 = vmul.f32 0.044715, %v1149_v36  ;;  %2927 = vtanh.f32 %v1190_v58  ;;  %v1191_v23 = vmul.f32 0.7978846, %v1175_v56  ;;  %v1176_v30 = vadd.f32 %v1160_v27, %v3564_v48 }
 0x11a   : > { %597 = vadd.xlane.f32.xlu0 %v3636_v3  ;;  %v3641_v24 = vmul.f32 %v554_v54, %v3443_v40  ;;  %v555_v34 = vmul.f32 0.5, %v539_v13  ;;  %v540_v51 = vadd.f32 1.0, %v2914_v61  ;;  %v1177_v10 = vadd.f32 %v1161_v59, %v3584_v0 }
 0x11b   : > { %v2916_v20 = vpop.eup %2915  ;;  %2929 = vtanh.f32 %v1191_v23  ;;  %v1192_v31 = vmul.f32 0.7978846, %v1176_v30  ;;  %v1178_v32 = vadd.f32 %v3578_v14, %v3551_v33  ;;  %v1179_v1 = vadd.f32 %v1163_v63, %v3574_v62 }
 0x11c   : > { %599 = vadd.xlane.f32.xlu1 %v3641_v24  ;;  %v3649_v27 = vmul.f32 %v555_v34, %v3416_v9  ;;  %v556_v28 = vmul.f32 0.5, %v540_v51  ;;  %v1216_v40 = vadd.f32 1.0, %v2916_v20  ;;  %v1193_v41 = vmul.f32 0.7978846, %v1177_v10 }
 0x11d   : > { %v2918_v11 = vpop.eup %2917  ;;  %2931 = vtanh.f32 %v1192_v31  ;;  %v1194_v45 = vmul.f32 0.7978846, %v1178_v32  ;;  %v1195_v59 = vmul.f32 0.7978846, %v1179_v1  ;;  %v1180_v12 = vadd.f32 %v1164_v37, %v3604_v44 }
 0x11e   : > { %601 = vadd.xlane.f32.xlu0 %v3649_v27  ;;  %v3654_v14 = vmul.f32 %v556_v28, %v3435_v29  ;;  %v1232_v63 = vmul.f32 0.5, %v1216_v40  ;;  %v1217_v46 = vadd.f32 1.0, %v2918_v11  ;;  %2933 = vtanh.f32 %v1193_v41 }
 0x11f   : > { %v2920_v49 = vpop.eup %2919  ;;  %2935 = vtanh.f32 %v1194_v45  ;;  %v1196_v9 = vmul.f32 0.7978846, %v1180_v12  ;;  %v1181_v36 = vadd.f32 %v1165_v18, %v3623_v47  ;;  %v1182_v58 = vadd.f32 %v1166_v17, %v3595_v35 }
 0x120   : > { %603 = vadd.xlane.f32.xlu1 %v3654_v14  ;;  %v3660_v56 = vmul.f32 %v1232_v63, %v3467_v2  ;;  %v1233_v37 = vmul.f32 0.5, %v1217_v46  ;;  %v1218_v54 = vadd.f32 1.0, %v2920_v49  ;;  %2937 = vtanh.f32 %v1195_v59 }
 0x121   : > { %v2922_v29 = vpop.eup %2921  ;;  %2939 = vtanh.f32 %v1196_v9  ;;  %v1197_v13 = vmul.f32 0.7978846, %v1181_v36  ;;  %v1198_v61 = vmul.f32 0.7978846, %v1182_v58  ;;  %v1183_v23 = vadd.f32 %v1167_v55, %v3612_v4 }
 0x122   : > { %1264 = vadd.xlane.f32.xlu0 %v3660_v56  ;;  %v3665_v18 = vmul.f32 %v1233_v37, %v3489_v26  ;;  %v1234_v17 = vmul.f32 0.5, %v1218_v54  ;;  %v1219_v30 = vadd.f32 1.0, %v2922_v29 }
 0x123   : > { %v2924_v34 = vpop.eup %2923  ;;  %2941 = vtanh.f32 %v1197_v13  ;;  %v1199_v2 = vmul.f32 0.7978846, %v1183_v23 }
 0x124   : > { %1266 = vadd.xlane.f32.xlu1 %v3665_v18  ;;  %v3669_v51 = vmul.f32 %v1234_v17, %v3454_v50  ;;  %v1235_v10 = vmul.f32 0.5, %v1219_v30  ;;  %v1220_v20 = vadd.f32 1.0, %v2924_v34  ;;  %2943 = vtanh.f32 %v1198_v61 }
 0x125   : > { %v2926_v31 = vpop.eup %2925  ;;  %2945 = vtanh.f32 %v1199_v2 }
 0x126   : > { %v2928_v55 = vpop.eup %2927  ;;  %1268 = vadd.xlane.f32.xlu0 %v3669_v51  ;;  %v3673_v26 = vmul.f32 %v1235_v10, %v3477_v15  ;;  %v1236_v32 = vmul.f32 0.5, %v1220_v20  ;;  %v1221_v1 = vadd.f32 1.0, %v2926_v31 }
 0x127   : > { %v1222_v28 = vadd.f32 1.0, %v2928_v55 }
 0x128   : > { %v2930_v40 = vpop.eup %2929  ;;  %1270 = vadd.xlane.f32.xlu1 %v3673_v26  ;;  %v3677_v50 = vmul.f32 %v1236_v32, %v3514_v53  ;;  %v1237_v41 = vmul.f32 0.5, %v1221_v1 }
 0x129   : > { %v1238_v11 = vmul.f32 0.5, %v1222_v28  ;;  %v1223_v45 = vadd.f32 1.0, %v2930_v40 }
 0x12a   : > { %v2932_v59 = vpop.eup %2931  ;;  %1272 = vadd.xlane.f32.xlu0 %v3677_v50  ;;  %v3681_v12 = vmul.f32 %v1237_v41, %v3537_v22 }
 0x12b   : > { %v2934_v15 = vpop.eup %2933  ;;  %v1239_v63 = vmul.f32 0.5, %v1223_v45  ;;  %v1224_v46 = vadd.f32 1.0, %v2932_v59  ;;  %v3685_v9 = vmul.f32 %v1238_v11, %v3503_v39 }
 0x12c   : > { %v2936_v49 = vpop.eup %2935  ;;  %1274 = vadd.xlane.f32.xlu1 %v3681_v12  ;;  %v1225_v53 = vadd.f32 1.0, %v2934_v15 }
 0x12d   : > { %v2938_v36 = vpop.eup %2937  ;;  %v1240_v58 = vmul.f32 0.5, %v1224_v46  ;;  %v1226_v37 = vadd.f32 1.0, %v2936_v49  ;;  %v3689_v29 = vmul.f32 %v1239_v63, %v3524_v6 }
 0x12e   : > { %v2940_v54 = vpop.eup %2939  ;;  %1276 = vadd.xlane.f32.xlu0 %v3685_v9  ;;  %v1241_v22 = vmul.f32 0.5, %v1225_v53  ;;  %v1227_v13 = vadd.f32 1.0, %v2938_v36 }
 0x12f   : > { %v3692_v61 = vmul.f32 %v1240_v58, %v3564_v48  ;;  %v1228_v23 = vadd.f32 1.0, %v2940_v54  ;;  %v1242_v30 = vmul.f32 0.5, %v1226_v37 }
 0x130   : > { %v2942_v17 = vpop.eup %2941  ;;  %1278 = vadd.xlane.f32.xlu1 %v3689_v29  ;;  %v3696_v39 = vmul.f32 %v1241_v22, %v3584_v0  ;;  %v1243_v10 = vmul.f32 0.5, %v1227_v13 }
 0x131   : > { %v2944_v34 = vpop.eup %2943  ;;  %v1229_v2 = vadd.f32 1.0, %v2942_v17  ;;  %v1244_v6 = vmul.f32 0.5, %v1228_v23  ;;  %v3701_v48 = vmul.f32 %v1242_v30, %v3551_v33 }
 0x132   : > { %1280 = vadd.xlane.f32.xlu0 %v3692_v61  ;;  %v2946_v20 = vpop.eup %2945  ;;  %v1230_v55 = vadd.f32 1.0, %v2944_v34  ;;  %v3705_v0 = vmul.f32 %v1243_v10, %v3574_v62 }
 0x133   : > { %v1245_v31 = vmul.f32 0.5, %v1229_v2  ;;  %v3708_v32 = vmul.f32 %v1244_v6, %v3604_v44  ;;  %v1231_v1 = vadd.f32 1.0, %v2946_v20 }
 0x134   : > { %1282 = vadd.xlane.f32.xlu1 %v3696_v39  ;;  %v1246_v40 = vmul.f32 0.5, %v1230_v55 }
 0x135   : > { %v3712_v28 = vmul.f32 %v1245_v31, %v3623_v47  ;;  %v1247_v33 = vmul.f32 0.5, %v1231_v1 }
 0x136   : > { %1284 = vadd.xlane.f32.xlu0 %v3701_v48  ;;  %v3717_v41 = vmul.f32 %v1246_v40, %v3595_v35 }
 0x137   : > { %v3721_v62 = vmul.f32 %v1247_v33, %v3612_v4 }
 0x138   : > { %1286 = vadd.xlane.f32.xlu1 %v3705_v0 }
 0x13a   : > { %1288 = vadd.xlane.f32.xlu0 %v3708_v32 }
 0x13c   : > { %1290 = vadd.xlane.f32.xlu1 %v3712_v28 }
 0x13e   : > { %1292 = vadd.xlane.f32.xlu0 %v3717_v41 }
 0x140   : > { %1294 = vadd.xlane.f32.xlu1 %v3721_v62 }
 0x17f   : > { %v578_v44 = vpop.xlane.xlu1 %577 }
 0x180   : > { %v608_v47 = vmul.f32 0.0078125, %v578_v44  ;;  %v2867_v44 = vld [vmem:[%s4613_s4 + $0x38] sm:$0xff]  }
 0x181   : > { %v574_v11 = vpop.xlane.xlu0 %573  ;;  %2758 = vmatprep.subr.bf16.mxu1 %v2867_v44 }
 0x182   : > { %v606_v45 = vmul.f32 0.0078125, %v574_v11  ;;  %v3730_v53 = vsub.f32 %v3446_v42, %v608_v47  ;;  %2759 = vmatpush3.bf16.msra.mxu1 %v2867_v44 }
 0x183   : > { %v580_v59 = vpop.xlane.xlu1 %579 }
 0x184   : > { %v3725_v15 = vsub.f32 %v3458_v57, %v606_v45  ;;  %v609_v46 = vmul.f32 0.0078125, %v580_v59  ;;  %v640_v37 = vmul.f32 %v3730_v53, %v3730_v53  ;;  %v2868_v59 = vld [vmem:[%s4613_s4 + $0x30] sm:$0xff]  }
 0x185   : > { %v576_v63 = vpop.xlane.xlu0 %575  ;;  %2760 = vmatprep.subr.bf16.mxu1 %v2868_v59 }
 0x186   : > { %v607_v49 = vmul.f32 0.0078125, %v576_v63  ;;  %v638_v35 = vmul.f32 %v3725_v15, %v3725_v15  ;;  %v3740_v54 = vsub.f32 %v3471_v60, %v609_v46  ;;  %2761 = vmatpush3.bf16.msra.mxu1 %v2868_v59 }
 0x188   : > { %654 = vadd.xlane.f32.xlu0 %v638_v35  ;;  %v3733_v4 = vsub.f32 %v3481_v19, %v607_v49  ;;  %v641_v17 = vmul.f32 %v3740_v54, %v3740_v54 }
 0x189   : > { %v582_v36 = vpop.xlane.xlu0 %581 }
 0x18a   : > { %v610_v58 = vmul.f32 0.0078125, %v582_v36  ;;  %v639_v57 = vmul.f32 %v3733_v4, %v3733_v4 }
 0x18c   : > { %658 = vadd.xlane.f32.xlu0 %v640_v37  ;;  %656 = vadd.xlane.f32.xlu1 %v639_v57  ;;  %v3743_v42 = vsub.f32 %v3506_v43, %v610_v58  ;;  %v2870_v58 = vld [vmem:[%s4613_s4 + $0x20] sm:$0xff]  }
 0x18d   : > { %v584_v22 = vpop.xlane.xlu1 %583  ;;  %v586_v13 = vpop.xlane.xlu0 %585 }
 0x18e   : > { %v611_v19 = vmul.f32 0.0078125, %v584_v22  ;;  %v612_v23 = vmul.f32 0.0078125, %v586_v13  ;;  %v642_v30 = vmul.f32 %v3743_v42, %v3743_v42 }
 0x190   : > { %660 = vadd.xlane.f32.xlu1 %v641_v17  ;;  %662 = vadd.xlane.f32.xlu0 %v642_v30  ;;  %v3750_v60 = vsub.f32 %v3527_v8, %v611_v19  ;;  %v3753_v34 = vsub.f32 %v3493_v5, %v612_v23  ;;  %v2871_v19 = vld [vmem:[%s4613_s4 + $0x18] sm:$0xff]  }
 0x191   : > { %v588_v43 = vpop.xlane.xlu1 %587  ;;  %v590_v2 = vpop.xlane.xlu0 %589 }
 0x192   : > { %v613_v10 = vmul.f32 0.0078125, %v588_v43  ;;  %v614_v6 = vmul.f32 0.0078125, %v590_v2  ;;  %v643_v20 = vmul.f32 %v3750_v60, %v3750_v60  ;;  %v644_v31 = vmul.f32 %v3753_v34, %v3753_v34 }
 0x194   : > { %664 = vadd.xlane.f32.xlu1 %v643_v20  ;;  %666 = vadd.xlane.f32.xlu0 %v644_v31  ;;  %v3760_v55 = vsub.f32 %v3518_v16, %v613_v10  ;;  %v3763_v8 = vsub.f32 %v3554_v38, %v614_v6 }
 0x195   : > { %v594_v5 = vpop.xlane.xlu0 %593 }
 0x196   : > { %v616_v1 = vmul.f32 0.0078125, %v594_v5  ;;  %v645_v40 = vmul.f32 %v3760_v55, %v3760_v55  ;;  %v646_v33 = vmul.f32 %v3763_v8, %v3763_v8  ;;  %v2872_v5 = vld [vmem:[%s4613_s4 + $0x10] sm:$0xff]  }
 0x197   : > { %v592_v11 = vpop.xlane.xlu1 %591 }
 0x198   : > { %v615_v47 = vmul.f32 0.0078125, %v592_v11  ;;  %668 = vadd.xlane.f32.xlu1 %v645_v40  ;;  %670 = vadd.xlane.f32.xlu0 %v646_v33  ;;  %v3773_v16 = vsub.f32 %v3542_v25, %v616_v1 }
 0x19a   : > { %v3776_v38 = vsub.f32 %v3587_v21, %v615_v47  ;;  %v648_v45 = vmul.f32 %v3773_v16, %v3773_v16  ;;  %v2869_v21 = vld [vmem:[%s4613_s4 + $0x28] sm:$0xff]  }
 0x19b   : > { %2762 = vmatprep.subr.bf16.mxu1 %v2869_v21 }
 0x19c   : > { %v647_v63 = vmul.f32 %v3776_v38, %v3776_v38  ;;  %674 = vadd.xlane.f32.xlu0 %v648_v45  ;;  %2763 = vmatpush3.bf16.msra.mxu1 %v2869_v21 }
 0x19d   : > { %v596_v46 = vpop.xlane.xlu1 %595  ;;  %2764 = vmatprep.subr.bf16.mxu1 %v2870_v58 }
 0x19e   : > { %v617_v25 = vmul.f32 0.0078125, %v596_v46  ;;  %672 = vadd.xlane.f32.xlu1 %v647_v63 }
 0x1a0   : > { %v3789_v49 = vsub.f32 %v3615_v7, %v617_v25  ;;  %2765 = vmatpush3.bf16.msra.mxu1 %v2870_v58 }
 0x1a1   : > { %2766 = vmatprep.subr.bf16.mxu1 %v2871_v19 }
 0x1a2   : > { %v649_v35 = vmul.f32 %v3789_v49, %v3789_v49 }
 0x1a3   : > { %v598_v36 = vpop.xlane.xlu0 %597 }
 0x1a4   : > { %v618_v37 = vmul.f32 0.0078125, %v598_v36  ;;  %676 = vadd.xlane.f32.xlu1 %v649_v35  ;;  %2767 = vmatpush3.bf16.msra.mxu1 %v2871_v19 }
 0x1a5   : > { %v600_v57 = vpop.xlane.xlu1 %599  ;;  %2768 = vmatprep.subr.bf16.mxu1 %v2872_v5 }
 0x1a6   : > { %v619_v22 = vmul.f32 0.0078125, %v600_v57  ;;  %v3797_v13 = vsub.f32 %v3636_v3, %v618_v37 }
 0x1a7   : > { %v602_v7 = vpop.xlane.xlu0 %601 }
 0x1a8   : > { %v620_v23 = vmul.f32 0.0078125, %v602_v7  ;;  %v650_v17 = vmul.f32 %v3797_v13, %v3797_v13  ;;  %v3805_v30 = vsub.f32 %v3641_v24, %v619_v22  ;;  %2769 = vmatpush3.bf16.msra.mxu1 %v2872_v5 }
 0x1a9   : > { %v604_v43 = vpop.xlane.xlu1 %603 }
 0x1aa   : > { %678 = vadd.xlane.f32.xlu0 %v650_v17  ;;  %v621_v2 = vmul.f32 0.0078125, %v604_v43  ;;  %v651_v3 = vmul.f32 %v3805_v30, %v3805_v30  ;;  %v3810_v10 = vsub.f32 %v3649_v27, %v620_v23 }
 0x1ab   : > { %v1265_v6 = vpop.xlane.xlu0 %1264 }
 0x1ac   : > { %v1296_v20 = vmul.f32 0.0078125, %v1265_v6  ;;  %680 = vadd.xlane.f32.xlu1 %v651_v3  ;;  %v652_v31 = vmul.f32 %v3810_v10, %v3810_v10  ;;  %v3815_v24 = vsub.f32 %v3654_v14, %v621_v2  ;;  %v2874_v6 = vld [vmem:[%s4613_s4] sm:$0xff]  }
 0x1ad   : > { %v1267_v1 = vpop.xlane.xlu1 %1266 }
 0x1ae   : > { %682 = vadd.xlane.f32.xlu0 %v652_v31  ;;  %v1297_v40 = vmul.f32 0.0078125, %v1267_v1  ;;  %v653_v27 = vmul.f32 %v3815_v24, %v3815_v24  ;;  %v3823_v33 = vsub.f32 %v3660_v56, %v1296_v20 }
 0x1af   : > { %v1269_v44 = vpop.xlane.xlu0 %1268 }
 0x1b0   : > { %v1298_v11 = vmul.f32 0.0078125, %v1269_v44  ;;  %684 = vadd.xlane.f32.xlu1 %v653_v27  ;;  %v1328_v14 = vmul.f32 %v3823_v33, %v3823_v33  ;;  %v3828_v47 = vsub.f32 %v3665_v18, %v1297_v40  ;;  %v3879_v44 = vld [vmem:[%s4613_s4 + $0x78] sm:$0xff]  }
 0x1b1   : > { %v1271_v45 = vpop.xlane.xlu1 %1270 }
 0x1b2   : > { %1344 = vadd.xlane.f32.xlu0 %v1328_v14  ;;  %v1299_v59 = vmul.f32 0.0078125, %v1271_v45  ;;  %v1329_v63 = vmul.f32 %v3828_v47, %v3828_v47  ;;  %v3833_v56 = vsub.f32 %v3669_v51, %v1298_v11 }
 0x1b3   : > { %v1273_v46 = vpop.xlane.xlu0 %1272 }
 0x1b4   : > { %v1300_v25 = vmul.f32 0.0078125, %v1273_v46  ;;  %1346 = vadd.xlane.f32.xlu1 %v1329_v63  ;;  %v1330_v21 = vmul.f32 %v3833_v56, %v3833_v56  ;;  %v3838_v35 = vsub.f32 %v3673_v26, %v1299_v59  ;;  %v2873_v26 = vld [vmem:[%s4613_s4 + $0x8] sm:$0xff]  }
 0x1b5   : > { %v1275_v18 = vpop.xlane.xlu1 %1274  ;;  %2770 = vmatprep.subr.bf16.mxu1 %v2873_v26 }
 0x1b6   : > { %1348 = vadd.xlane.f32.xlu0 %v1330_v21  ;;  %v1301_v36 = vmul.f32 0.0078125, %v1275_v18  ;;  %v1331_v58 = vmul.f32 %v3838_v35, %v3838_v35  ;;  %v3843_v37 = vsub.f32 %v3677_v50, %v1300_v25  ;;  %2771 = vmatpush3.bf16.msra.mxu1 %v2873_v26 }
 0x1b7   : > { %v1277_v51 = vpop.xlane.xlu0 %1276  ;;  %2772 = vmatprep.subr.bf16.mxu1 %v2874_v6 }
 0x1b8   : > { %v1302_v57 = vmul.f32 0.0078125, %v1277_v51  ;;  %1350 = vadd.xlane.f32.xlu1 %v1331_v58  ;;  %v1332_v22 = vmul.f32 %v3843_v37, %v3843_v37  ;;  %v3848_v7 = vsub.f32 %v3681_v12, %v1301_v36 }
 0x1b9   : > { %v1279_v19 = vpop.xlane.xlu1 %1278 }
 0x1ba   : > { %1352 = vadd.xlane.f32.xlu0 %v1332_v22  ;;  %v1303_v23 = vmul.f32 0.0078125, %v1279_v19  ;;  %v1333_v50 = vmul.f32 %v3848_v7, %v3848_v7  ;;  %v3856_v17 = vsub.f32 %v3685_v9, %v1302_v57  ;;  %2773 = vmatpush3.bf16.msra.mxu1 %v2874_v6 }
 0x1bb   : > { %v1281_v43 = vpop.xlane.xlu0 %1280  ;;  %2808 = vmatprep.subr.bf16.mxu1 %v3879_v44 }
 0x1bc   : > { %v1304_v2 = vmul.f32 0.0078125, %v1281_v43  ;;  %1354 = vadd.xlane.f32.xlu1 %v1333_v50  ;;  %v1334_v12 = vmul.f32 %v3856_v17, %v3856_v17  ;;  %v3861_v3 = vsub.f32 %v3689_v29, %v1303_v23 }
 0x1bd   : > { %v1283_v20 = vpop.xlane.xlu1 %1282 }
 0x1be   : > { %1356 = vadd.xlane.f32.xlu0 %v1334_v12  ;;  %v1305_v31 = vmul.f32 0.0078125, %v1283_v20  ;;  %v1335_v9 = vmul.f32 %v3861_v3, %v3861_v3  ;;  %v3869_v5 = vsub.f32 %v3692_v61, %v1304_v2 }
 0x1bf   : > { %v1285_v1 = vpop.xlane.xlu0 %1284 }
 0x1c0   : > { %v1306_v40 = vmul.f32 0.0078125, %v1285_v1  ;;  %1358 = vadd.xlane.f32.xlu1 %v1335_v9  ;;  %v1336_v29 = vmul.f32 %v3869_v5, %v3869_v5  ;;  %v3874_v27 = vsub.f32 %v3696_v39, %v1305_v31 }
 0x1c1   : > { %v1287_v11 = vpop.xlane.xlu1 %1286 }
 0x1c2   : > { %1360 = vadd.xlane.f32.xlu0 %v1336_v29  ;;  %v1307_v61 = vmul.f32 0.0078125, %v1287_v11  ;;  %v1337_v14 = vmul.f32 %v3874_v27, %v3874_v27  ;;  %v3884_v45 = vsub.f32 %v3701_v48, %v1306_v40 }
 0x1c3   : > { %v1289_v59 = vpop.xlane.xlu0 %1288 }
 0x1c4   : > { %v1308_v63 = vmul.f32 0.0078125, %v1289_v59  ;;  %1362 = vadd.xlane.f32.xlu1 %v1337_v14  ;;  %v1338_v39 = vmul.f32 %v3884_v45, %v3884_v45  ;;  %v3890_v46 = vsub.f32 %v3705_v0, %v1307_v61 }
 0x1c5   : > { %v1291_v25 = vpop.xlane.xlu1 %1290 }
 0x1c6   : > { %1364 = vadd.xlane.f32.xlu0 %v1338_v39  ;;  %v1309_v21 = vmul.f32 0.0078125, %v1291_v25  ;;  %v1339_v18 = vmul.f32 %v3890_v46, %v3890_v46  ;;  %v3895_v48 = vsub.f32 %v3708_v32, %v1308_v63 }
 0x1c7   : > { %v1293_v36 = vpop.xlane.xlu0 %1292 }
 0x1c8   : > { %v1310_v58 = vmul.f32 0.0078125, %v1293_v36  ;;  %1366 = vadd.xlane.f32.xlu1 %v1339_v18  ;;  %v1340_v51 = vmul.f32 %v3895_v48, %v3895_v48  ;;  %v3900_v57 = vsub.f32 %v3712_v28, %v1309_v21  ;;  %v752_v18 = vsub.s32 1, %v3324_v52 }
 0x1c9   : > { %v1295_v0 = vpop.xlane.xlu1 %1294 }
 0x1ca   : > { %1368 = vadd.xlane.f32.xlu0 %v1340_v51  ;;  %v1311_v22 = vmul.f32 0.0078125, %v1295_v0  ;;  %v1341_v26 = vmul.f32 %v3900_v57, %v3900_v57  ;;  %v3905_v19 = vsub.f32 %v3717_v41, %v1310_v58 }
 0x1cc   : > { %1370 = vadd.xlane.f32.xlu1 %v1341_v26  ;;  %v1342_v32 = vmul.f32 %v3905_v19, %v3905_v19  ;;  %v3910_v23 = vsub.f32 %v3721_v62, %v1311_v22  ;;  %v772_v26 = vsub.s32 2, %v3324_v52 }
 0x1ce   : > { %1372 = vadd.xlane.f32.xlu0 %v1342_v32  ;;  %v1343_v28 = vmul.f32 %v3910_v23, %v3910_v23 }
 0x1d0   : > { %1374 = vadd.xlane.f32.xlu1 %v1343_v28 }
 0x211   : > { %v655_v50 = vpop.xlane.xlu0 %654 }
 0x212   : > { %v686_v43 = vmul.f32 0.0078125, %v655_v50 }
 0x214   : > { %v702_v2 = vadd.f32 1e-05, %v686_v43  ;;  %v3920_v43 = vld [vmem:[%s4612_s3] sm:$0xff] }
 0x215   : > { %v657_v12 = vpop.xlane.xlu1 %656  ;;  %v659_v6 = vpop.xlane.xlu0 %658 }
 0x216   : > { %2947 = vrsqrt.f32 %v702_v2  ;;  %v687_v41 = vmul.f32 0.0078125, %v657_v12  ;;  %v688_v20 = vmul.f32 0.0078125, %v659_v6  ;;  %v3923_v2 = vrot.slane %v3920_v43, %v752_v18 }
 0x218   : > { %v703_v31 = vadd.f32 1e-05, %v687_v41  ;;  %v704_v9 = vadd.f32 1e-05, %v688_v20 }
 0x219   : > { %v661_v1 = vpop.xlane.xlu1 %660  ;;  %v663_v40 = vpop.xlane.xlu0 %662 }
 0x21a   : > { %2949 = vrsqrt.f32 %v703_v31  ;;  %v689_v62 = vmul.f32 0.0078125, %v661_v1  ;;  %v690_v29 = vmul.f32 0.0078125, %v663_v40  ;;  %v3926_v31 = vrot.slane %v3920_v43, %v772_v26 }
 0x21b   : > { %2951 = vrsqrt.f32 %v704_v9 }
 0x21c   : > { %v705_v11 = vadd.f32 1e-05, %v689_v62  ;;  %v706_v61 = vadd.f32 1e-05, %v690_v29 }
 0x21d   : > { %v665_v14 = vpop.xlane.xlu1 %664  ;;  %v667_v59 = vpop.xlane.xlu0 %666 }
 0x21e   : > { %2953 = vrsqrt.f32 %v705_v11  ;;  %v691_v63 = vmul.f32 0.0078125, %v665_v14  ;;  %v692_v39 = vmul.f32 0.0078125, %v667_v59 }
 0x21f   : > { %2955 = vrsqrt.f32 %v706_v61 }
 0x220   : > { %v707_v25 = vadd.f32 1e-05, %v691_v63  ;;  %v708_v21 = vadd.f32 1e-05, %v692_v39 }
 0x221   : > { %v669_v36 = vpop.xlane.xlu1 %668  ;;  %v671_v58 = vpop.xlane.xlu0 %670 }
 0x222   : > { %2957 = vrsqrt.f32 %v707_v25  ;;  %v693_v51 = vmul.f32 0.0078125, %v669_v36  ;;  %v694_v0 = vmul.f32 0.0078125, %v671_v58 }
 0x223   : > { %v2948_v22 = vpop.eup %2947  ;;  %2959 = vrsqrt.f32 %v708_v21 }
 0x224   : > { %v709_v32 = vadd.f32 1e-05, %v693_v51  ;;  %v710_v28 = vadd.f32 1e-05, %v694_v0  ;;  %v734_v50 = vmul.f32 %v2948_v22, %v3725_v15 }
 0x225   : > { %v675_v12 = vpop.xlane.xlu0 %674 }
 0x226   : > { %2961 = vrsqrt.f32 %v709_v32  ;;  %v696_v6 = vmul.f32 0.0078125, %v675_v12  ;;  %v754_v62 = vmul.f32 %v3923_v2, %v734_v50 }
 0x227   : > { %v2950_v41 = vpop.eup %2949  ;;  %2963 = vrsqrt.f32 %v710_v28  ;;  %v673_v20 = vpop.xlane.xlu1 %672 }
 0x228   : > { %v2952_v9 = vpop.eup %2951  ;;  %v695_v1 = vmul.f32 0.0078125, %v673_v20  ;;  %v712_v15 = vadd.f32 1e-05, %v696_v6  ;;  %v735_v40 = vmul.f32 %v2950_v41, %v3733_v4  ;;  %v774_v39 = vadd.f32 %v3926_v31, %v754_v62  ;;  %v2876_v6 = vld [vmem:[%s4613_s4 + $0x70] sm:$0xff]  }
 0x229   : > { %v736_v29 = vmul.f32 %v2952_v9, %v3730_v53 }
 0x22a   : > { %v711_v11 = vadd.f32 1e-05, %v695_v1  ;;  %v755_v61 = vmul.f32 %v3923_v2, %v735_v40  ;;  %2965 = vrsqrt.f32 %v712_v15 }
 0x22b   : > { %v2954_v14 = vpop.eup %2953  ;;  %v756_v59 = vmul.f32 %v3923_v2, %v736_v29 }
 0x22c   : > { %v2956_v63 = vpop.eup %2955  ;;  %2967 = vrsqrt.f32 %v711_v11  ;;  %v775_v25 = vadd.f32 %v3926_v31, %v755_v61  ;;  %v737_v21 = vmul.f32 %v2954_v14, %v3740_v54 }
 0x22d   : > { %v677_v4 = vpop.xlane.xlu1 %676  ;;  %v738_v18 = vmul.f32 %v2956_v63, %v3743_v42  ;;  %v776_v0 = vadd.f32 %v3926_v31, %v756_v59  ;;  %v2877_v59 = vld [vmem:[%s4613_s4 + $0x68] sm:$0xff]  }
 0x22e   : > { %v697_v36 = vmul.f32 0.0078125, %v677_v4  ;;  %v790_v53 = vpack.c.bf16 %v775_v25, %v774_v39  ;;  %v757_v58 = vmul.f32 %v3923_v2, %v737_v21 }
 0x22f   : > { %v2958_v51 = vpop.eup %2957  ;;  %v758_v50 = vmul.f32 %v3923_v2, %v738_v18 }
 0x230   : > { %v2960_v22 = vpop.eup %2959  ;;  %v713_v26 = vadd.f32 1e-05, %v697_v36  ;;  %2774 = vmatprep.mubr.bf16.mxu1 %v790_v53  ;;  %v777_v32 = vadd.f32 %v3926_v31, %v757_v58  ;;  %v739_v28 = vmul.f32 %v2958_v51, %v3750_v60 }
 0x231   : > { %v740_v54 = vmul.f32 %v2960_v22, %v3753_v34  ;;  %v778_v60 = vadd.f32 %v3926_v31, %v758_v50 }
 0x232   : > { %2969 = vrsqrt.f32 %v713_v26  ;;  %v791_v42 = vpack.c.bf16 %v777_v32, %v776_v0  ;;  %v759_v12 = vmul.f32 %v3923_v2, %v739_v28  ;;  %v2878_v0 = vld [vmem:[%s4613_s4 + $0x60] sm:$0xff]  }
 0x233   : > { %v2962_v41 = vpop.eup %2961  ;;  %v679_v20 = vpop.xlane.xlu0 %678  ;;  %v760_v9 = vmul.f32 %v3923_v2, %v740_v54 }
 0x234   : > { %v2964_v1 = vpop.eup %2963  ;;  %v698_v15 = vmul.f32 0.0078125, %v679_v20  ;;  %2775 = vmatmul.mubr.bf16.vlgmr.msra.gmra.mxu1 %v791_v42  ;;  %v779_v40 = vadd.f32 %v3926_v31, %v759_v12  ;;  %v741_v34 = vmul.f32 %v2962_v41, %v3760_v55 }
 0x235   : > { %v681_v62 = vpop.xlane.xlu1 %680  ;;  %2809 = vmatpush3.bf16.msra.mxu1 %v3879_v44  ;;  %v780_v39 = vadd.f32 %v3926_v31, %v760_v9  ;;  %v742_v25 = vmul.f32 %v2964_v1, %v3763_v8 }
 0x236   : > { %v714_v29 = vadd.f32 1e-05, %v698_v15  ;;  %v699_v11 = vmul.f32 0.0078125, %v681_v62  ;;  %v792_v61 = vpack.c.bf16 %v779_v40, %v778_v60  ;;  %2810 = vmatprep.subr.bf16.mxu1 %v2876_v6  ;;  %v761_v14 = vmul.f32 %v3923_v2, %v741_v34 }
 0x237   : > { %v683_v63 = vpop.xlane.xlu0 %682  ;;  %v2966_v21 = vpop.eup %2965  ;;  %v762_v26 = vmul.f32 %v3923_v2, %v742_v25 }
 0x238   : > { %2971 = vrsqrt.f32 %v714_v29  ;;  %v715_v55 = vadd.f32 1e-05, %v699_v11  ;;  %v700_v4 = vmul.f32 0.0078125, %v683_v63  ;;  %2778 = vmatprep.mubr.bf16.mxu1 %v792_v61  ;;  %v781_v44 = vadd.f32 %v3926_v31, %v761_v14  ;;  %v2880_v14 = vld [vmem:[%s4613_s4 + $0x50] sm:$0xff]  }
 0x239   : > { %v2968_v18 = vpop.eup %2967  ;;  %v685_v36 = vpop.xlane.xlu1 %684  ;;  %2811 = vmatpush3.bf16.msra.mxu1 %v2876_v6  ;;  %v744_v32 = vmul.f32 %v2966_v21, %v3773_v16  ;;  %v782_v16 = vadd.f32 %v3926_v31, %v762_v26 }
 0x23a   : > { %2973 = vrsqrt.f32 %v715_v55  ;;  %v716_v53 = vadd.f32 1e-05, %v700_v4  ;;  %v701_v58 = vmul.f32 0.0078125, %v685_v36  ;;  %v793_v51 = vpack.c.bf16 %v781_v44, %v780_v39  ;;  %2812 = vmatprep.subr.bf16.mxu1 %v2877_v59  ;;  %v2881_v36 = vld [vmem:[%s4613_s4 + $0x48] sm:$0xff]  }
 0x23b   : > { %v1345_v8 = vpop.xlane.xlu0 %1344  ;;  %v743_v22 = vmul.f32 %v2968_v18, %v3776_v38  ;;  %v2879_v38 = vld [vmem:[%s4613_s4 + $0x58] sm:$0xff]   ;;  %v764_v1 = vmul.f32 %v3923_v2, %v744_v32 }
 0x23c   : > { %2975 = vrsqrt.f32 %v716_v53  ;;  %v717_v28 = vadd.f32 1e-05, %v701_v58  ;;  %v1376_v50 = vmul.f32 0.0078125, %v1345_v8  ;;  %2779 = vmatmul.mubr.bf16.gmra.mxu1 %v793_v51 }
 0x23d   : > { %v1347_v54 = vpop.xlane.xlu1 %1346  ;;  %2813 = vmatpush3.bf16.msra.mxu1 %v2877_v59  ;;  %v763_v42 = vmul.f32 %v3923_v2, %v743_v22  ;;  %v784_v63 = vadd.f32 %v3926_v31, %v764_v1 }
 0x23e   : > { %2977 = vrsqrt.f32 %v717_v28  ;;  %v1392_v12 = vadd.f32 1e-05, %v1376_v50  ;;  %v1377_v6 = vmul.f32 0.0078125, %v1347_v54  ;;  %2814 = vmatprep.subr.bf16.mxu1 %v2878_v0  ;;  %v1442_v50 = vsub.s32 5, %v3324_v52 }
 0x23f   : > { %v2970_v41 = vpop.eup %2969  ;;  %v1349_v20 = vpop.xlane.xlu0 %1348  ;;  %v783_v9 = vadd.f32 %v3926_v31, %v763_v42 }
 0x240   : > { %2979 = vrsqrt.f32 %v1392_v12  ;;  %v1393_v15 = vadd.f32 1e-05, %v1377_v6  ;;  %v1378_v60 = vmul.f32 0.0078125, %v1349_v20  ;;  %v745_v40 = vmul.f32 %v2970_v41, %v3789_v49 }
 0x241   : > { %v1351_v34 = vpop.xlane.xlu1 %1350  ;;  %v794_v62 = vpack.c.bf16 %v783_v9, %v782_v16  ;;  %2815 = vmatpush3.bf16.msra.mxu1 %v2878_v0 }
 0x242   : > { %2981 = vrsqrt.f32 %v1393_v15  ;;  %v1394_v29 = vadd.f32 1e-05, %v1378_v60  ;;  %v1379_v11 = vmul.f32 0.0078125, %v1351_v34  ;;  %v765_v61 = vmul.f32 %v3923_v2, %v745_v40  ;;  %2816 = vmatprep.subr.bf16.mxu1 %v2879_v38 }
 0x243   : > { %v1353_v59 = vpop.xlane.xlu0 %1352  ;;  %2782 = vmatprep.mubr.bf16.mxu1 %v794_v62  ;;  %v3996_v34 = vrot.slane %v3920_v43, %v1442_v50  ;;  %v1462_v62 = vsub.s32 6, %v3324_v52 }
 0x244   : > { %2983 = vrsqrt.f32 %v1394_v29  ;;  %v1395_v39 = vadd.f32 1e-05, %v1379_v11  ;;  %v1380_v49 = vmul.f32 0.0078125, %v1353_v59  ;;  %v785_v25 = vadd.f32 %v3926_v31, %v765_v61 }
 0x245   : > { %v2972_v21 = vpop.eup %2971  ;;  %v1355_v55 = vpop.xlane.xlu1 %1354  ;;  %2817 = vmatpush3.bf16.msra.mxu1 %v2879_v38 }
 0x246   : > { %2985 = vrsqrt.f32 %v1395_v39  ;;  %v1396_v4 = vadd.f32 1e-05, %v1380_v49  ;;  %v1381_v44 = vmul.f32 0.0078125, %v1355_v55  ;;  %v795_v18 = vpack.c.bf16 %v785_v25, %v784_v63  ;;  %2818 = vmatprep.subr.bf16.mxu1 %v2880_v14 }
 0x247   : > { %v2974_v53 = vpop.eup %2973  ;;  %v1357_v58 = vpop.xlane.xlu0 %1356  ;;  %v746_v51 = vmul.f32 %v2972_v21, %v3797_v13  ;;  %v2882_v13 = vld [vmem:[%s4613_s4 + $0x40] sm:$0xff]  }
 0x248   : > { %2987 = vrsqrt.f32 %v1396_v4  ;;  %v1397_v0 = vadd.f32 1e-05, %v1381_v44  ;;  %v1382_v8 = vmul.f32 0.0078125, %v1357_v58  ;;  %2783 = vmatmul.mubr.bf16.gmra.mxu1 %v795_v18  ;;  %v747_v22 = vmul.f32 %v2974_v53, %v3805_v30 }
 0x249   : > { %v2976_v26 = vpop.eup %2975  ;;  %v1359_v32 = vpop.xlane.xlu1 %1358  ;;  %v766_v28 = vmul.f32 %v3923_v2, %v746_v51  ;;  %2819 = vmatpush3.bf16.msra.mxu1 %v2880_v14  ;;  %v4006_v18 = vrot.slane %v3920_v43, %v1462_v62 }
 0x24a   : > { %2989 = vrsqrt.f32 %v1397_v0  ;;  %v1398_v54 = vadd.f32 1e-05, %v1382_v8  ;;  %v1383_v42 = vmul.f32 0.0078125, %v1359_v32  ;;  %v767_v12 = vmul.f32 %v3923_v2, %v747_v22  ;;  %2820 = vmatprep.subr.bf16.mxu1 %v2881_v36 }
 0x24b   : > { %v2978_v6 = vpop.eup %2977  ;;  %v1361_v38 = vpop.xlane.xlu0 %1360  ;;  %v786_v30 = vadd.f32 %v3926_v31, %v766_v28  ;;  %v748_v41 = vmul.f32 %v2976_v26, %v3810_v10 }
 0x24c   : > { %2991 = vrsqrt.f32 %v1398_v54  ;;  %v1399_v20 = vadd.f32 1e-05, %v1383_v42  ;;  %v1384_v16 = vmul.f32 0.0078125, %v1361_v38  ;;  %v787_v9 = vadd.f32 %v3926_v31, %v767_v12 }
 0x24d   : > { %v2980_v1 = vpop.eup %2979  ;;  %v1363_v15 = vpop.xlane.xlu1 %1362  ;;  %v749_v60 = vmul.f32 %v2978_v6, %v3815_v24  ;;  %v768_v40 = vmul.f32 %v3923_v2, %v748_v41  ;;  %2821 = vmatpush3.bf16.msra.mxu1 %v2881_v36 }
 0x24e   : > { %2993 = vrsqrt.f32 %v1399_v20  ;;  %v1400_v29 = vadd.f32 1e-05, %v1384_v16  ;;  %v1385_v10 = vmul.f32 0.0078125, %v1363_v15  ;;  %v796_v11 = vpack.c.bf16 %v787_v9, %v786_v30  ;;  %2822 = vmatprep.subr.bf16.mxu1 %v2882_v13 }
 0x24f   : > { %v2982_v61 = vpop.eup %2981  ;;  %v1365_v14 = vpop.xlane.xlu0 %1364  ;;  %v769_v59 = vmul.f32 %v3923_v2, %v749_v60  ;;  %v1424_v63 = vmul.f32 %v2980_v1, %v3823_v33  ;;  %v788_v55 = vadd.f32 %v3926_v31, %v768_v40 }
 0x250   : > { %2995 = vrsqrt.f32 %v1400_v29  ;;  %v1401_v24 = vadd.f32 1e-05, %v1385_v10  ;;  %v1386_v39 = vmul.f32 0.0078125, %v1365_v14  ;;  %2786 = vmatprep.mubr.bf16.mxu1 %v796_v11  ;;  %v1425_v49 = vmul.f32 %v2982_v61, %v3828_v47 }
 0x251   : > { %v2984_v25 = vpop.eup %2983  ;;  %v1367_v21 = vpop.xlane.xlu1 %1366  ;;  %v789_v4 = vadd.f32 %v3926_v31, %v769_v59  ;;  %v1444_v44 = vmul.f32 %v3996_v34, %v1424_v63  ;;  %2823 = vmatpush3.bf16.msra.mxu1 %v2882_v13 }
 0x252   : > { %v1426_v33 = vmul.f32 %v2984_v25, %v3833_v56  ;;  %2997 = vrsqrt.f32 %v1401_v24  ;;  %v1402_v2 = vadd.f32 1e-05, %v1386_v39  ;;  %v1387_v36 = vmul.f32 0.0078125, %v1367_v21 }
 0x253   : > { %v2986_v53 = vpop.eup %2985  ;;  %v1369_v58 = vpop.xlane.xlu0 %1368  ;;  %v797_v47 = vpack.c.bf16 %v789_v4, %v788_v55  ;;  %v1445_v51 = vmul.f32 %v3996_v34, %v1425_v49  ;;  %v1464_v32 = vadd.f32 %v4006_v18, %v1444_v44 }
 0x254   : > { %v1427_v0 = vmul.f32 %v2986_v53, %v3838_v35  ;;  %2999 = vrsqrt.f32 %v1402_v2  ;;  %v1403_v31 = vadd.f32 1e-05, %v1387_v36  ;;  %v1388_v8 = vmul.f32 0.0078125, %v1369_v58 }
 0x255   : > { %v2988_v22 = vpop.eup %2987  ;;  %2787 = vmatmul.mubr.bf16.gmra.mxu1 %v797_v47  ;;  %v1371_v26 = vpop.xlane.xlu1 %1370  ;;  %v1465_v56 = vadd.f32 %v4006_v18, %v1445_v51  ;;  %v1446_v28 = vmul.f32 %v3996_v34, %v1426_v33 }
 0x256   : > { %3001 = vrsqrt.f32 %v1403_v31  ;;  %v1404_v50 = vadd.f32 1e-05, %v1388_v8  ;;  %v1389_v54 = vmul.f32 0.0078125, %v1371_v26  ;;  %v1447_v42 = vmul.f32 %v3996_v34, %v1427_v0 }
 0x257   : > { %v2990_v12 = vpop.eup %2989  ;;  %v1373_v13 = vpop.xlane.xlu0 %1372  ;;  %v1480_v35 = vpack.c.bf16 %v1465_v56, %v1464_v32  ;;  %v1466_v6 = vadd.f32 %v4006_v18, %v1446_v28  ;;  %v1428_v38 = vmul.f32 %v2988_v22, %v3843_v37 }
 0x258   : > { %3003 = vrsqrt.f32 %v1404_v50  ;;  %v1405_v30 = vadd.f32 1e-05, %v1389_v54  ;;  %v1390_v41 = vmul.f32 0.0078125, %v1373_v13  ;;  %v1467_v20 = vadd.f32 %v4006_v18, %v1447_v42 }
 0x259   : > { %v2992_v16 = vpop.eup %2991  ;;  %2824 = vmatprep.mubr.bf16.mxu1 %v1480_v35  ;;  %v1375_v9 = vpop.xlane.xlu1 %1374  ;;  %v1429_v1 = vmul.f32 %v2990_v12, %v3848_v7  ;;  %v1448_v15 = vmul.f32 %v3996_v34, %v1428_v38 }
 0x25a   : > { %3005 = vrsqrt.f32 %v1405_v30  ;;  %v1406_v60 = vadd.f32 1e-05, %v1390_v41  ;;  %v1391_v40 = vmul.f32 0.0078125, %v1375_v9  ;;  %v1481_v62 = vpack.c.bf16 %v1467_v20, %v1466_v6 }
 0x25b   : > { %v2994_v29 = vpop.eup %2993  ;;  %v1449_v10 = vmul.f32 %v3996_v34, %v1429_v1  ;;  %v1430_v37 = vmul.f32 %v2992_v16, %v3856_v17  ;;  %v1468_v59 = vadd.f32 %v4006_v18, %v1448_v15 }
 0x25c   : > { %3007 = vrsqrt.f32 %v1406_v60  ;;  %v1407_v11 = vadd.f32 1e-05, %v1391_v40  ;;  %v1431_v61 = vmul.f32 %v2994_v29, %v3861_v3 }
 0x25d   : > { %v2996_v14 = vpop.eup %2995  ;;  %2825 = vmatmul.mubr.bf16.vlgmr.msra.gmra.mxu1 %v1481_v62  ;;  %v1469_v7 = vadd.f32 %v4006_v18, %v1449_v10  ;;  %v1450_v63 = vmul.f32 %v3996_v34, %v1430_v37 }
 0x25e   : > { %3009 = vrsqrt.f32 %v1407_v11  ;;  %v1451_v24 = vmul.f32 %v3996_v34, %v1431_v61  ;;  %v1432_v39 = vmul.f32 %v2996_v14, %v3869_v5 }
 0x25f   : > { %v2998_v49 = vpop.eup %2997  ;;  %v1482_v25 = vpack.c.bf16 %v1469_v7, %v1468_v59  ;;  %v1470_v17 = vadd.f32 %v4006_v18, %v1450_v63 }
 0x260   : > { %v1471_v21 = vadd.f32 %v4006_v18, %v1451_v24  ;;  %v1433_v3 = vmul.f32 %v2998_v49, %v3874_v27  ;;  %v1452_v55 = vmul.f32 %v3996_v34, %v1432_v39 }
 0x261   : > { %v3000_v4 = vpop.eup %2999  ;;  %2828 = vmatprep.mubr.bf16.mxu1 %v1482_v25 }
 0x262   : > { %v1483_v44 = vpack.c.bf16 %v1471_v21, %v1470_v17  ;;  %v1453_v33 = vmul.f32 %v3996_v34, %v1433_v3  ;;  %v1434_v2 = vmul.f32 %v3000_v4, %v3884_v45  ;;  %v1472_v5 = vadd.f32 %v4006_v18, %v1452_v55 }
 0x263   : > { %v3002_v36 = vpop.eup %3001 }
 0x264   : > { %v1473_v53 = vadd.f32 %v4006_v18, %v1453_v33  ;;  %v1435_v58 = vmul.f32 %v3002_v36, %v3890_v46  ;;  %v1454_v47 = vmul.f32 %v3996_v34, %v1434_v2  ;;  %v1490_v33 = vsub.s32 7, %v3324_v52 }
 0x265   : > { %v3004_v51 = vpop.eup %3003  ;;  %2829 = vmatmul.mubr.bf16.gmra.mxu1 %v1483_v44 }
 0x266   : > { %v1484_v27 = vpack.c.bf16 %v1473_v53, %v1472_v5  ;;  %v1455_v0 = vmul.f32 %v3996_v34, %v1435_v58  ;;  %v1436_v31 = vmul.f32 %v3004_v51, %v3895_v48  ;;  %v1474_v45 = vadd.f32 %v4006_v18, %v1454_v47 }
 0x267   : > { %v3006_v8 = vpop.eup %3005  ;;  %v1491_v5 = vrot.slane %v3920_v43, %v1490_v33 }
 0x268   : > { %2832 = vmatprep.mubr.bf16.mxu1 %v1484_v27  ;;  %v1475_v22 = vadd.f32 %v4006_v18, %v1455_v0  ;;  %v1437_v26 = vmul.f32 %v3006_v8, %v3900_v57  ;;  %v1456_v32 = vmul.f32 %v3996_v34, %v1436_v31 }
 0x269   : > { %v3008_v46 = vpop.eup %3007 }
 0x26a   : > { %v1485_v56 = vpack.c.bf16 %v1475_v22, %v1474_v45  ;;  %v1457_v28 = vmul.f32 %v3996_v34, %v1437_v26  ;;  %v1438_v50 = vmul.f32 %v3008_v46, %v3905_v19  ;;  %v1476_v42 = vadd.f32 %v4006_v18, %v1456_v32 }
 0x26b   : > { %v3010_v54 = vpop.eup %3009  ;;  %v800_v19 = vsub.s32 3, %v3324_v52 }
 0x26c   : > { %v1477_v48 = vadd.f32 %v4006_v18, %v1457_v28  ;;  %v1439_v12 = vmul.f32 %v3010_v54, %v3910_v23  ;;  %v1458_v13 = vmul.f32 %v3996_v34, %v1438_v50 }
 0x26d   : > { %2833 = vmatmul.mubr.bf16.gmra.mxu1 %v1485_v56  ;;  %v4055_v41 = vrot.slane %v3920_v43, %v800_v19 }
 0x26e   : > { %v1486_v35 = vpack.c.bf16 %v1477_v48, %v1476_v42  ;;  %v1459_v57 = vmul.f32 %v3996_v34, %v1439_v12  ;;  %v1478_v6 = vadd.f32 %v4006_v18, %v1458_v13 }
 0x270   : > { %2836 = vmatprep.mubr.bf16.mxu1 %v1486_v35  ;;  %v1479_v38 = vadd.f32 %v4006_v18, %v1459_v57 }
 0x272   : > { %v1487_v30 = vpack.c.bf16 %v1479_v38, %v1478_v6 }
 0x275   : > { %2837 = vmatmul.mubr.bf16.gmra.mxu1 %v1487_v30 }
 0x2f4   : > { %v2776_v20 = vpop.f32.mrf.mxu1 }
 0x2f5   : > { %v893_v23 = vadd.f32 %v2776_v20, %v4055_v41 }
 0x2f6   : > { %v884_v16 = vpop.f32.mrf.mxu1 }
 0x2f7   : > { %v885_v15 = vadd.f32 %v884_v16, %v4055_v41 }
 0x2f8   : > { %v2777_v9 = vpop.f32.mrf.mxu1 }
 0x2f9   : > { %v896_v1 = vadd.f32 %v2777_v9, %v4055_v41 }
 0x2fa   : > { %v887_v34 = vpop.f32.mrf.mxu1 }
 0x2fb   : > { %v4060_v60 = vpack.c.bf16 %v896_v1, %v893_v23  ;;  %v888_v18 = vadd.f32 %v887_v34, %v4055_v41 }
 0x2fc   : > { %v2780_v40 = vpop.f32.mrf.mxu1 }
 0x2fd   : > { %v4063_v62 = vpack.c.bf16 %v888_v18, %v885_v15  ;;  %v909_v29 = vadd.f32 %v2780_v40, %v4055_v41 }
 0x2fe   : > { %v900_v10 = vpop.f32.mrf.mxu1 }
 0x2ff   : > { %v901_v37 = vadd.f32 %v900_v10, %v4055_v41  ;;  %2706 = vmatprep.mubr.bf16.mxu0 %v4063_v62 }
 0x300   : > { %v2781_v11 = vpop.f32.mrf.mxu1 }
 0x301   : > { %v912_v61 = vadd.f32 %v2781_v11, %v4055_v41 }
 0x302   : > { %v903_v14 = vpop.f32.mrf.mxu1 }
 0x303   : > { %v4069_v59 = vpack.c.bf16 %v912_v61, %v909_v29  ;;  %v904_v7 = vadd.f32 %v903_v14, %v4055_v41 }
 0x305   : > { %v4072_v63 = vpack.c.bf16 %v904_v7, %v901_v37 }
 0x308   : > { %v4074_v24 = vpop.f32.mrf.mxu1 }
 0x309   : > { %v925_v11 = vadd.f32 %v4074_v24, %v4055_v41 }
 0x30a   : > { %v916_v39 = vpop.f32.mrf.mxu1 }
 0x30b   : > { %v917_v49 = vadd.f32 %v916_v39, %v4055_v41 }
 0x30c   : > { %v2785_v25 = vpop.f32.mrf.mxu1 }
 0x30d   : > { %v928_v10 = vadd.f32 %v2785_v25, %v4055_v41 }
 0x30e   : > { %v919_v17 = vpop.f32.mrf.mxu1 }
 0x30f   : > { %v920_v21 = vadd.f32 %v919_v17, %v4055_v41  ;;  %v1642_v14 = vpack.c.bf16 %v928_v10, %v925_v11 }
 0x311   : > { %v4078_v3 = vpack.c.bf16 %v920_v21, %v917_v49 }
 0x315   : > { %v2788_v55 = vpop.f32.mrf.mxu1 }
 0x316   : > { %v941_v38 = vadd.f32 %v2788_v55, %v4055_v41 }
 0x317   : > { %v932_v4 = vpop.f32.mrf.mxu1 }
 0x318   : > { %v933_v15 = vadd.f32 %v932_v4, %v4055_v41 }
 0x319   : > { %v2789_v44 = vpop.f32.mrf.mxu1 }
 0x31a   : > { %v944_v13 = vadd.f32 %v2789_v44, %v4055_v41 }
 0x31b   : > { %v935_v2 = vpop.f32.mrf.mxu1 }
 0x31c   : > { %v4093_v16 = vpack.c.bf16 %v944_v13, %v941_v38  ;;  %v936_v1 = vadd.f32 %v935_v2, %v4055_v41 }
 0x31d   : > { %v2826_v36 = vpop.f32.mrf.mxu1 }
 0x31e   : > { %v1583_v51 = vadd.f32 %v2826_v36, %v1491_v5  ;;  %v1643_v40 = vpack.c.bf16 %v936_v1, %v933_v15 }
 0x31f   : > { %v1574_v53 = vpop.f32.mrf.mxu1 }
 0x320   : > { %v1575_v58 = vadd.f32 %v1574_v53, %v1491_v5 }
 0x321   : > { %v2827_v47 = vpop.f32.mrf.mxu1 }
 0x322   : > { %v1586_v27 = vadd.f32 %v2827_v47, %v1491_v5 }
 0x323   : > { %v1577_v0 = vpop.f32.mrf.mxu1 }
 0x324   : > { %v4082_v31 = vpack.c.bf16 %v1586_v27, %v1583_v51  ;;  %v1578_v8 = vadd.f32 %v1577_v0, %v1491_v5 }
 0x325   : > { %v2830_v45 = vpop.f32.mrf.mxu1 }
 0x326   : > { %v4084_v22 = vpack.c.bf16 %v1578_v8, %v1575_v58  ;;  %v1599_v49 = vadd.f32 %v2830_v45, %v1491_v5 }
 0x327   : > { %v1590_v26 = vpop.f32.mrf.mxu1 }
 0x328   : > { %v1591_v52 = vadd.f32 %v1590_v26, %v1491_v5 }
 0x329   : > { %v2831_v32 = vpop.f32.mrf.mxu1 }
 0x32a   : > { %v1602_v39 = vadd.f32 %v2831_v32, %v1491_v5 }
 0x32b   : > { %v1593_v46 = vpop.f32.mrf.mxu1 }
 0x32c   : > { %v1594_v56 = vadd.f32 %v1593_v46, %v1491_v5  ;;  %v1648_v17 = vpack.c.bf16 %v1602_v39, %v1599_v49 }
 0x32d   : > { %v2834_v28 = vpop.f32.mrf.mxu1 }
 0x32e   : > { %v4086_v50 = vpack.c.bf16 %v1594_v56, %v1591_v52  ;;  %v1615_v18 = vadd.f32 %v2834_v28, %v1491_v5 }
 0x32f   : > { %v1606_v43 = vpop.f32.mrf.mxu1 }
 0x330   : > { %2726 = vmatprep.mubr.bf16.mxu1 %v4086_v50  ;;  %v1607_v61 = vadd.f32 %v1606_v43, %v1491_v5 }
 0x331   : > { %v2835_v54 = vpop.f32.mrf.mxu1 }
 0x332   : > { %v1618_v34 = vadd.f32 %v2835_v54, %v1491_v5 }
 0x333   : > { %v1609_v42 = vpop.f32.mrf.mxu1 }
 0x334   : > { %v1650_v29 = vpack.c.bf16 %v1618_v34, %v1615_v18  ;;  %v1610_v37 = vadd.f32 %v1609_v42, %v1491_v5 }
 0x335   : > { %v2838_v48 = vpop.f32.mrf.mxu1 }
 0x336   : > { %v1631_v57 = vadd.f32 %v2838_v48, %v1491_v5  ;;  %v1649_v7 = vpack.c.bf16 %v1610_v37, %v1607_v61 }
 0x337   : > { %v1622_v12 = vpop.f32.mrf.mxu1 }
 0x338   : > { %v1623_v19 = vadd.f32 %v1622_v12, %v1491_v5 }
 0x339   : > { %v2839_v35 = vpop.f32.mrf.mxu1 }
 0x33a   : > { %v1634_v6 = vadd.f32 %v2839_v35, %v1491_v5 }
 0x33b   : > { %v1625_v30 = vpop.f32.mrf.mxu1 }
 0x33c   : > { %v4091_v20 = vpack.c.bf16 %v1634_v6, %v1631_v57  ;;  %v1626_v23 = vadd.f32 %v1625_v30, %v1491_v5 }
 0x33e   : > { %v4095_v9 = vpack.c.bf16 %v1626_v23, %v1623_v19  ;;  %2690 = vmatprep.subr.bf16.mxu0 %v4091_v20  ;;  %2840 = vmatprep.subr.bf16.mxu1 %v4091_v20 }
 0x33f   : > { %2691 = vmatpush3.bf16.xpose.msra.mxu0 %v4093_v16  ;;  %2848 = vmatpush3.bf16.xpose.msra.mxu1 %v4093_v16 }
 0x340   : > { %2692 = vmatprep.subr.bf16.mxu0 %v4095_v9  ;;  %2841 = vmatprep.subr.bf16.mxu1 %v4095_v9 }
 0x347   : > { %2693 = vmatpush3.bf16.xpose.msra.mxu0 %v1643_v40  ;;  %2849 = vmatpush3.bf16.xpose.msra.mxu1 %v1643_v40 }
 0x348   : > { %2694 = vmatprep.subr.bf16.mxu0 %v1650_v29  ;;  %2842 = vmatprep.subr.bf16.mxu1 %v1650_v29 }
 0x34f   : > { %2695 = vmatpush3.bf16.xpose.msra.mxu0 %v1642_v14  ;;  %2850 = vmatpush3.bf16.xpose.msra.mxu1 %v1642_v14 }
 0x350   : > { %2696 = vmatprep.subr.bf16.mxu0 %v1649_v7  ;;  %2843 = vmatprep.subr.bf16.mxu1 %v1649_v7 }
 0x357   : > { %2697 = vmatpush3.bf16.xpose.msra.mxu0 %v4078_v3  ;;  %2851 = vmatpush3.bf16.xpose.msra.mxu1 %v4078_v3 }
 0x358   : > { %2698 = vmatprep.subr.bf16.mxu0 %v1648_v17  ;;  %2844 = vmatprep.subr.bf16.mxu1 %v1648_v17 }
 0x35f   : > { %2699 = vmatpush3.bf16.xpose.msra.mxu0 %v4069_v59  ;;  %2852 = vmatpush3.bf16.xpose.msra.mxu1 %v4069_v59 }
 0x360   : > { %2700 = vmatprep.subr.bf16.mxu0 %v4086_v50  ;;  %2845 = vmatprep.subr.bf16.mxu1 %v4086_v50 }
 0x367   : > { %2701 = vmatpush3.bf16.xpose.msra.mxu0 %v4072_v63  ;;  %2853 = vmatpush3.bf16.xpose.msra.mxu1 %v4072_v63 }
 0x368   : > { %2702 = vmatprep.subr.bf16.mxu0 %v4082_v31  ;;  %2846 = vmatprep.subr.bf16.mxu1 %v4082_v31 }
 0x36f   : > { %2703 = vmatpush3.bf16.xpose.msra.mxu0 %v4060_v60  ;;  %2854 = vmatpush3.bf16.xpose.msra.mxu1 %v4060_v60 }
 0x370   : > { %2704 = vmatprep.subr.bf16.mxu0 %v4084_v22  ;;  %2847 = vmatprep.subr.bf16.mxu1 %v4084_v22 }
 0x377   : > { %2705 = vmatpush3.bf16.xpose.msra.mxu0 %v4063_v62  ;;  %2855 = vmatpush3.bf16.xpose.msra.mxu1 %v4063_v62 }
 0x37e   : > { %2707 = vmatmul.mubr.bf16.vlgmr.msra.gmra.mxu0 %v4063_v62  ;;  %2727 = vmatmul.mubr.bf16.vlgmr.msra.gmra.mxu1 %v4086_v50 }
 0x37f   : > { %2708 = vmatprep.mubr.bf16.mxu0 %v4060_v60  ;;  %2728 = vmatprep.mubr.bf16.mxu1 %v1648_v17 }
 0x386   : > { %2709 = vmatmul.mubr.bf16.gmra.mxu0 %v4060_v60  ;;  %2729 = vmatmul.mubr.bf16.gmra.mxu1 %v1648_v17 }
 0x387   : > { %2710 = vmatprep.mubr.bf16.mxu0 %v4072_v63  ;;  %2730 = vmatprep.mubr.bf16.mxu1 %v1649_v7 }
 0x38e   : > { %2711 = vmatmul.mubr.bf16.gmra.mxu0 %v4072_v63  ;;  %2731 = vmatmul.mubr.bf16.gmra.mxu1 %v1649_v7 }
 0x38f   : > { %2712 = vmatprep.mubr.bf16.mxu0 %v4069_v59  ;;  %2732 = vmatprep.mubr.bf16.mxu1 %v1650_v29 }
 0x396   : > { %2713 = vmatmul.mubr.bf16.gmra.mxu0 %v4069_v59  ;;  %2733 = vmatmul.mubr.bf16.gmra.mxu1 %v1650_v29 }
 0x397   : > { %2714 = vmatprep.mubr.bf16.mxu0 %v4078_v3  ;;  %2734 = vmatprep.mubr.bf16.mxu1 %v4095_v9 }
 0x39e   : > { %2715 = vmatmul.mubr.bf16.gmra.mxu0 %v4078_v3  ;;  %2735 = vmatmul.mubr.bf16.gmra.mxu1 %v4095_v9 }
 0x39f   : > { %2716 = vmatprep.mubr.bf16.mxu0 %v1642_v14  ;;  %2736 = vmatprep.mubr.bf16.mxu1 %v4091_v20 }
 0x3a6   : > { %2717 = vmatmul.mubr.bf16.gmra.mxu0 %v1642_v14  ;;  %2737 = vmatmul.mubr.bf16.gmra.mxu1 %v4091_v20 }
 0x3a7   : > { %2718 = vmatprep.mubr.bf16.mxu0 %v1643_v40 }
 0x3ae   : > { %2719 = vmatmul.mubr.bf16.gmra.mxu0 %v1643_v40 }
 0x3af   : > { %2720 = vmatprep.mubr.bf16.mxu0 %v4093_v16 }
 0x3b6   : > { %2721 = vmatmul.mubr.bf16.gmra.mxu0 %v4093_v16 }
 0x3b7   : > { %2722 = vmatprep.mubr.bf16.mxu0 %v4084_v22 }
 0x3be   : > { %2723 = vmatmul.mubr.bf16.gmra.mxu0 %v4084_v22 }
 0x3bf   : > { %2724 = vmatprep.mubr.bf16.mxu0 %v4082_v31 }
 0x3c6   : > { %2725 = vmatmul.mubr.bf16.gmra.mxu0 %v4082_v31 }
 0x43e   : > { %v4144_v41 = vpop.f32.mrf.mxu0  ;;  %v4146_v60 = vpop.f32.mrf.mxu1 }
 0x43f   : > { %2030 = vmax.xlane.f32.xlu0 %v4146_v60 }
 0x440   : > { %v4149_v62 = vpop.f32.mrf.mxu0  ;;  %v1789_v59 = vpop.f32.mrf.mxu1 }
 0x442   : > { %v4151_v63 = vpop.f32.mrf.mxu0  ;;  %v4153_v24 = vpop.f32.mrf.mxu1 }
 0x443   : > { %2230 = vmax.xlane.f32.xlu0 %v4149_v62 }
 0x444   : > { %v4156_v25 = vpop.f32.mrf.mxu0  ;;  %v1793_v21 = vpop.f32.mrf.mxu1 }
 0x445   : > { %2232 = vmax.xlane.f32.xlu1 %v4156_v25 }
 0x446   : > { %v4159_v3 = vpop.f32.mrf.mxu0  ;;  %v4161_v55 = vpop.f32.mrf.mxu1 }
 0x447   : > { %2032 = vmax.xlane.f32.xlu0 %v4153_v24 }
 0x448   : > { %v4164_v4 = vpop.f32.mrf.mxu0  ;;  %v1799_v44 = vpop.f32.mrf.mxu1 }
 0x449   : > { %2234 = vmax.xlane.f32.xlu1 %v4164_v4 }
 0x44a   : > { %v4167_v33 = vpop.f32.mrf.mxu0  ;;  %v4169_v2 = vpop.f32.mrf.mxu1 }
 0x44c   : > { %v4171_v36 = vpop.f32.mrf.mxu0  ;;  %v1803_v5 = vpop.f32.mrf.mxu1 }
 0x44d   : > { %2236 = vmax.xlane.f32.xlu1 %v4171_v36 }
 0x44e   : > { %v1707_v53 = vpop.f32.mrf.mxu0  ;;  %v4174_v58 = vpop.f32.mrf.mxu1 }
 0x44f   : > { %v1850_v47 = vadd.f32 %v1789_v59, %v1707_v53 }
 0x450   : > { %v4176_v51 = vpop.f32.mrf.mxu0  ;;  %v1809_v27 = vpop.f32.mrf.mxu1 }
 0x451   : > { %v4178_v0 = vmul.f32 0.5, %v1850_v47  ;;  %2238 = vmax.xlane.f32.xlu1 %v4176_v51 }
 0x452   : > { %v1711_v31 = vpop.f32.mrf.mxu0  ;;  %v4181_v8 = vpop.f32.mrf.mxu1 }
 0x453   : > { %v1851_v45 = vadd.f32 %v1793_v21, %v1711_v31  ;;  %1886 = vmax.xlane.f32.xlu0 %v4178_v0 }
 0x454   : > { %v4184_v22 = vpop.f32.mrf.mxu0  ;;  %v1813_v26 = vpop.f32.mrf.mxu1 }
 0x455   : > { %v4186_v32 = vmul.f32 0.5, %v1851_v45 }
 0x456   : > { %v1717_v46 = vpop.f32.mrf.mxu0  ;;  %v4188_v52 = vpop.f32.mrf.mxu1 }
 0x457   : > { %v1852_v56 = vadd.f32 %v1799_v44, %v1717_v46  ;;  %1888 = vmax.xlane.f32.xlu1 %v4186_v32 }
 0x458   : > { %v4191_v28 = vpop.f32.mrf.mxu0  ;;  %v1819_v50 = vpop.f32.mrf.mxu1 }
 0x459   : > { %v4193_v43 = vmul.f32 0.5, %v1852_v56 }
 0x45a   : > { %v1721_v54 = vpop.f32.mrf.mxu0  ;;  %v4195_v42 = vpop.f32.mrf.mxu1 }
 0x45b   : > { %v1853_v48 = vadd.f32 %v1803_v5, %v1721_v54  ;;  %1890 = vmax.xlane.f32.xlu0 %v4193_v43 }
 0x45c   : > { %v4198_v12 = vpop.f32.mrf.mxu0  ;;  %v1823_v13 = vpop.f32.mrf.mxu1 }
 0x45d   : > { %v4200_v35 = vmul.f32 0.5, %v1853_v48 }
 0x45e   : > { %v1727_v57 = vpop.f32.mrf.mxu0  ;;  %v4202_v6 = vpop.f32.mrf.mxu1 }
 0x45f   : > { %v1854_v38 = vadd.f32 %v1809_v27, %v1727_v57  ;;  %1892 = vmax.xlane.f32.xlu1 %v4200_v35 }
 0x460   : > { %v4205_v30 = vpop.f32.mrf.mxu0  ;;  %v1829_v20 = vpop.f32.mrf.mxu1 }
 0x461   : > { %v4207_v19 = vmul.f32 0.5, %v1854_v38 }
 0x462   : > { %v1731_v23 = vpop.f32.mrf.mxu0  ;;  %v4214_v34 = vpop.f32.mrf.mxu1 }
 0x463   : > { %v1855_v16 = vadd.f32 %v1813_v26, %v1731_v23  ;;  %1894 = vmax.xlane.f32.xlu0 %v4207_v19 }
 0x464   : > { %v4210_v9 = vpop.f32.mrf.mxu0  ;;  %v1833_v10 = vpop.f32.mrf.mxu1 }
 0x465   : > { %v4212_v1 = vmul.f32 0.5, %v1855_v16 }
 0x466   : > { %v1737_v15 = vpop.f32.mrf.mxu0  ;;  %v4226_v7 = vpop.f32.mrf.mxu1 }
 0x467   : > { %v1856_v18 = vadd.f32 %v1819_v50, %v1737_v15  ;;  %1896 = vmax.xlane.f32.xlu1 %v4212_v1 }
 0x468   : > { %v4217_v40 = vpop.f32.mrf.mxu0  ;;  %v1839_v21 = vpop.f32.mrf.mxu1 }
 0x469   : > { %v4219_v29 = vmul.f32 0.5, %v1856_v18 }
 0x46a   : > { %v1741_v37 = vpop.f32.mrf.mxu0  ;;  %v4238_v27 = vpop.f32.mrf.mxu1 }
 0x46b   : > { %v1857_v11 = vadd.f32 %v1823_v13, %v1741_v37  ;;  %1898 = vmax.xlane.f32.xlu0 %v4219_v29 }
 0x46c   : > { %v4222_v61 = vpop.f32.mrf.mxu0  ;;  %v1843_v56 = vpop.f32.mrf.mxu1 }
 0x46d   : > { %v4224_v14 = vmul.f32 0.5, %v1857_v11 }
 0x46e   : > { %v1747_v39 = vpop.f32.mrf.mxu0 }
 0x46f   : > { %v1858_v49 = vadd.f32 %v1829_v20, %v1747_v39  ;;  %1900 = vmax.xlane.f32.xlu1 %v4224_v14 }
 0x470   : > { %v4229_v17 = vpop.f32.mrf.mxu0 }
 0x471   : > { %v4231_v59 = vmul.f32 0.5, %v1858_v49 }
 0x472   : > { %v1751_v44 = vpop.f32.mrf.mxu0 }
 0x473   : > { %v1859_v5 = vadd.f32 %v1833_v10, %v1751_v44  ;;  %1902 = vmax.xlane.f32.xlu0 %v4231_v59 }
 0x474   : > { %v4234_v53 = vpop.f32.mrf.mxu0 }
 0x475   : > { %v4236_v47 = vmul.f32 0.5, %v1859_v5 }
 0x476   : > { %v1757_v31 = vpop.f32.mrf.mxu0 }
 0x477   : > { %v1860_v45 = vadd.f32 %v1839_v21, %v1757_v31  ;;  %1904 = vmax.xlane.f32.xlu1 %v4236_v47 }
 0x478   : > { %v4241_v26 = vpop.f32.mrf.mxu0 }
 0x479   : > { %v4243_v46 = vmul.f32 0.5, %v1860_v45 }
 0x47a   : > { %v1761_v50 = vpop.f32.mrf.mxu0 }
 0x47b   : > { %v1861_v54 = vadd.f32 %v1843_v56, %v1761_v50  ;;  %1906 = vmax.xlane.f32.xlu0 %v4243_v46 }
 0x47c   : > { %v4246_v48 = vpop.f32.mrf.mxu0 }
 0x47d   : > { %v4248_v13 = vmul.f32 0.5, %v1861_v54 }
 0x47e   : > { %v4250_v57 = vpop.f32.mrf.mxu0 }
 0x47f   : > { %1908 = vmax.xlane.f32.xlu1 %v4248_v13  ;;  %2022 = vmax.xlane.f32.xlu0 %v4250_v57 }
 0x480   : > { %v1769_v38 = vpop.f32.mrf.mxu0 }
 0x481   : > { %v1846_v20 = vadd.f32 %v1769_v38, %v4144_v41 }
 0x482   : > { %v4255_v23 = vpop.f32.mrf.mxu0 }
 0x483   : > { %v4257_v16 = vmul.f32 0.5, %v1846_v20  ;;  %2024 = vmax.xlane.f32.xlu1 %v4255_v23 }
 0x484   : > { %v1773_v15 = vpop.f32.mrf.mxu0 }
 0x485   : > { %v1847_v18 = vadd.f32 %v1773_v15, %v4151_v63  ;;  %1878 = vmax.xlane.f32.xlu0 %v4257_v16 }
 0x486   : > { %v4262_v10 = vpop.f32.mrf.mxu0 }
 0x487   : > { %v4264_v37 = vmul.f32 0.5, %v1847_v18 }
 0x488   : > { %v1779_v11 = vpop.f32.mrf.mxu0 }
 0x489   : > { %1880 = vmax.xlane.f32.xlu1 %v4264_v37  ;;  %2026 = vmax.xlane.f32.xlu0 %v4262_v10  ;;  %v1848_v39 = vadd.f32 %v1779_v11, %v4159_v3 }
 0x48a   : > { %v4268_v41 = vpop.f32.mrf.mxu0 }
 0x48b   : > { %v4273_v63 = vmul.f32 0.5, %v1848_v39 }
 0x48c   : > { %v1783_v49 = vpop.f32.mrf.mxu0 }
 0x48d   : > { %v1849_v21 = vadd.f32 %v1783_v49, %v4167_v33  ;;  %2028 = vmax.xlane.f32.xlu0 %v4268_v41 }
 0x48f   : > { %v4275_v44 = vmul.f32 0.5, %v1849_v21 }
 0x491   : > { %1882 = vmax.xlane.f32.xlu0 %v4273_v63  ;;  %1884 = vmax.xlane.f32.xlu1 %v4275_v44 }
 0x495   : > { %2034 = vmax.xlane.f32.xlu0 %v4161_v55  ;;  %2240 = vmax.xlane.f32.xlu1 %v4184_v22 }
 0x499   : > { %2036 = vmax.xlane.f32.xlu0 %v4169_v2  ;;  %2242 = vmax.xlane.f32.xlu1 %v4191_v28 }
 0x49d   : > { %2038 = vmax.xlane.f32.xlu0 %v4174_v58  ;;  %2244 = vmax.xlane.f32.xlu1 %v4198_v12 }
 0x4a1   : > { %2040 = vmax.xlane.f32.xlu0 %v4181_v8  ;;  %2246 = vmax.xlane.f32.xlu1 %v4205_v30 }
 0x4a5   : > { %2042 = vmax.xlane.f32.xlu0 %v4188_v52  ;;  %2248 = vmax.xlane.f32.xlu1 %v4210_v9 }
 0x4a9   : > { %2044 = vmax.xlane.f32.xlu0 %v4195_v42  ;;  %2250 = vmax.xlane.f32.xlu1 %v4217_v40 }
 0x4ad   : > { %2046 = vmax.xlane.f32.xlu0 %v4202_v6  ;;  %2252 = vmax.xlane.f32.xlu1 %v4222_v61 }
 0x4b1   : > { %2048 = vmax.xlane.f32.xlu0 %v4214_v34  ;;  %2254 = vmax.xlane.f32.xlu1 %v4229_v17 }
 0x4b5   : > { %2050 = vmax.xlane.f32.xlu0 %v4226_v7  ;;  %2256 = vmax.xlane.f32.xlu1 %v4234_v53 }
 0x4b9   : > { %2052 = vmax.xlane.f32.xlu0 %v4238_v27  ;;  %2258 = vmax.xlane.f32.xlu1 %v4241_v26 }
 0x4bd   : > { %2260 = vmax.xlane.f32.xlu1 %v4246_v48 }
 0x4c8   : > { %v4300_v3 = vpop.xlane.xlu0 %2030 }
 0x4cc   : > { %v2231_v33 = vpop.xlane.xlu0 %2230 }
 0x4cd   : > { %v4303_v5 = vsub.f32 %v4149_v62, %v2231_v33 }
 0x4ce   : > { %v2233_v31 = vpop.xlane.xlu1 %2232 }
 0x4cf   : > { %v2278_v45 = vmul.f32 1.442695, %v4303_v5  ;;  %v4307_v56 = vsub.f32 %v4156_v25, %v2233_v31 }
 0x4d0   : > { %v4316_v62 = vpop.xlane.xlu0 %2032 }
 0x4d1   : > { %3011 = vpow2.f32 %v2278_v45  ;;  %v2280_v50 = vmul.f32 1.442695, %v4307_v56 }
 0x4d2   : > { %v2235_v54 = vpop.xlane.xlu1 %2234 }
 0x4d3   : > { %3013 = vpow2.f32 %v2280_v50  ;;  %v4311_v38 = vsub.f32 %v4164_v4, %v2235_v54 }
 0x4d5   : > { %4629 = vst [vmem:[#allocation2_spill] sm:$0xff] %v4311_v38  ;;  %v2282_v20 = vmul.f32 1.442695, %v4311_v38 }
 0x4d6   : > { %v4314_v15 = vpop.xlane.xlu1 %2236 }
 0x4d7   : > { %3015 = vpow2.f32 %v2282_v20 }
 0x4da   : > { %v4318_v18 = vpop.xlane.xlu1 %2238 }
 0x4dc   : > { %v1887_v11 = vpop.xlane.xlu0 %1886 }
 0x4dd   : > { %v1914_v25 = vsub.f32 %v4178_v0, %v1887_v11 }
 0x4de   : > { %v3012_v39 = vpop.eup %3011 }
 0x4df   : > { %v1934_v49 = vmul.f32 1.442695, %v1914_v25  ;;  %2310 = vadd.xlane.f32.xlu0 %v3012_v39 }
 0x4e0   : > { %v3014_v21 = vpop.eup %3013  ;;  %v1889_v33 = vpop.xlane.xlu1 %1888 }
 0x4e1   : > { %3017 = vpow2.f32 %v1934_v49  ;;  %v1915_v4 = vsub.f32 %v4186_v32, %v1889_v33  ;;  %2312 = vadd.xlane.f32.xlu1 %v3014_v21 }
 0x4e3   : > { %v1936_v31 = vmul.f32 1.442695, %v1915_v4 }
 0x4e4   : > { %v3016_v45 = vpop.eup %3015  ;;  %v1891_v50 = vpop.xlane.xlu0 %1890 }
 0x4e5   : > { %3019 = vpow2.f32 %v1936_v31  ;;  %v1916_v54 = vsub.f32 %v4193_v43, %v1891_v50  ;;  %2314 = vadd.xlane.f32.xlu1 %v3016_v45 }
 0x4e7   : > { %v1938_v20 = vmul.f32 1.442695, %v1916_v54 }
 0x4e8   : > { %v1893_v38 = vpop.xlane.xlu1 %1892 }
 0x4e9   : > { %3021 = vpow2.f32 %v1938_v20  ;;  %v1917_v0 = vsub.f32 %v4200_v35, %v1893_v38 }
 0x4eb   : > { %v1940_v11 = vmul.f32 1.442695, %v1917_v0 }
 0x4ec   : > { %v1895_v25 = vpop.xlane.xlu0 %1894 }
 0x4ed   : > { %3023 = vpow2.f32 %v1940_v11  ;;  %v1918_v39 = vsub.f32 %v4207_v19, %v1895_v25 }
 0x4ee   : > { %v4325_v49 = vpop.eup %3017 }
 0x4ef   : > { %v1942_v32 = vmul.f32 1.442695, %v1918_v39  ;;  %1966 = vadd.xlane.f32.xlu0 %v4325_v49 }
 0x4f0   : > { %v1897_v21 = vpop.xlane.xlu1 %1896 }
 0x4f1   : > { %3025 = vpow2.f32 %v1942_v32  ;;  %v1919_v43 = vsub.f32 %v4212_v1, %v1897_v21 }
 0x4f2   : > { %v4329_v33 = vpop.eup %3019 }
 0x4f3   : > { %v1944_v4 = vmul.f32 1.442695, %v1919_v43  ;;  %1968 = vadd.xlane.f32.xlu1 %v4329_v33 }
 0x4f4   : > { %v1899_v35 = vpop.xlane.xlu0 %1898 }
 0x4f5   : > { %3027 = vpow2.f32 %v1944_v4  ;;  %v1920_v38 = vsub.f32 %v4219_v29, %v1899_v35 }
 0x4f6   : > { %v4333_v31 = vpop.eup %3021 }
 0x4f7   : > { %v1946_v19 = vmul.f32 1.442695, %v1920_v38  ;;  %1970 = vadd.xlane.f32.xlu0 %v4333_v31 }
 0x4f8   : > { %v1901_v45 = vpop.xlane.xlu1 %1900 }
 0x4f9   : > { %3029 = vpow2.f32 %v1946_v19  ;;  %v1921_v50 = vsub.f32 %v4224_v14, %v1901_v45 }
 0x4fa   : > { %v4337_v54 = vpop.eup %3023 }
 0x4fb   : > { %v1948_v1 = vmul.f32 1.442695, %v1921_v50  ;;  %1972 = vadd.xlane.f32.xlu1 %v4337_v54 }
 0x4fc   : > { %v1903_v20 = vpop.xlane.xlu0 %1902 }
 0x4fd   : > { %3031 = vpow2.f32 %v1948_v1  ;;  %v1922_v0 = vsub.f32 %v4231_v59, %v1903_v20 }
 0x4fe   : > { %v4341_v11 = vpop.eup %3025 }
 0x4ff   : > { %v1950_v29 = vmul.f32 1.442695, %v1922_v0  ;;  %1974 = vadd.xlane.f32.xlu0 %v4341_v11 }
 0x500   : > { %v1905_v25 = vpop.xlane.xlu1 %1904 }
 0x501   : > { %3033 = vpow2.f32 %v1950_v29  ;;  %v1923_v39 = vsub.f32 %v4236_v47, %v1905_v25 }
 0x502   : > { %v4345_v32 = vpop.eup %3027 }
 0x503   : > { %v1952_v14 = vmul.f32 1.442695, %v1923_v39  ;;  %1976 = vadd.xlane.f32.xlu1 %v4345_v32 }
 0x504   : > { %v1907_v21 = vpop.xlane.xlu0 %1906 }
 0x505   : > { %3035 = vpow2.f32 %v1952_v14  ;;  %v1924_v43 = vsub.f32 %v4243_v46, %v1907_v21 }
 0x506   : > { %v4349_v4 = vpop.eup %3029 }
 0x507   : > { %v1954_v59 = vmul.f32 1.442695, %v1924_v43  ;;  %1978 = vadd.xlane.f32.xlu0 %v4349_v4 }
 0x508   : > { %v1909_v35 = vpop.xlane.xlu1 %1908  ;;  %v2023_v38 = vpop.xlane.xlu0 %2022 }
 0x509   : > { %3037 = vpow2.f32 %v1954_v59  ;;  %v1925_v19 = vsub.f32 %v4248_v13, %v1909_v35  ;;  %v4354_v47 = vsub.f32 %v4250_v57, %v2023_v38 }
 0x50a   : > { %v4356_v45 = vpop.eup %3031 }
 0x50b   : > { %v1956_v50 = vmul.f32 1.442695, %v1925_v19  ;;  %v2070_v1 = vmul.f32 1.442695, %v4354_v47  ;;  %1980 = vadd.xlane.f32.xlu1 %v4356_v45 }
 0x50c   : > { %v2025_v46 = vpop.xlane.xlu1 %2024 }
 0x50d   : > { %3039 = vpow2.f32 %v1956_v50  ;;  %v4361_v20 = vsub.f32 %v4255_v23, %v2025_v46 }
 0x50e   : > { %v4363_v0 = vpop.eup %3033  ;;  %3041 = vpow2.f32 %v2070_v1  ;;  %v1879_v29 = vpop.xlane.xlu0 %1878 }
 0x50f   : > { %v2072_v13 = vmul.f32 1.442695, %v4361_v20  ;;  %v1910_v57 = vsub.f32 %v4257_v16, %v1879_v29  ;;  %1982 = vadd.xlane.f32.xlu0 %v4363_v0  ;;  %v4387_v29 = vsub.f32 %v4146_v60, %v4300_v3  ;;  %v4399_v3 = vsub.f32 %v4153_v24, %v4316_v62 }
 0x511   : > { %3043 = vpow2.f32 %v2072_v13  ;;  %v1926_v25 = vmul.f32 1.442695, %v1910_v57  ;;  %v4394_v57 = vsub.f32 %v4171_v36, %v4314_v15  ;;  %v2078_v60 = vmul.f32 1.442695, %v4387_v29 }
 0x512   : > { %v4368_v39 = vpop.eup %3035  ;;  %v1881_v14 = vpop.xlane.xlu1 %1880  ;;  %v4406_v36 = vsub.f32 %v4176_v51, %v4318_v18 }
 0x513   : > { %v2027_v21 = vpop.xlane.xlu0 %2026  ;;  %3045 = vpow2.f32 %v1926_v25  ;;  %v1911_v23 = vsub.f32 %v4264_v37, %v1881_v14  ;;  %1984 = vadd.xlane.f32.xlu1 %v4368_v39 }
 0x514   : > { %v4372_v43 = vsub.f32 %v4262_v10, %v2027_v21 }
 0x515   : > { %v1928_v59 = vmul.f32 1.442695, %v1911_v23 }
 0x516   : > { %v2074_v35 = vmul.f32 1.442695, %v4372_v43  ;;  %v4376_v16 = vpop.eup %3037 }
 0x517   : > { %v2029_v38 = vpop.xlane.xlu0 %2028  ;;  %3047 = vpow2.f32 %v1928_v59  ;;  %1986 = vadd.xlane.f32.xlu0 %v4376_v16 }
 0x518   : > { %v4379_v19 = vsub.f32 %v4268_v41, %v2029_v38  ;;  %3049 = vpow2.f32 %v2074_v35  ;;  %v2080_v38 = vmul.f32 1.442695, %v4399_v3 }
 0x51a   : > { %v2076_v37 = vmul.f32 1.442695, %v4379_v19  ;;  %v4383_v50 = vpop.eup %3039  ;;  %v1885_v1 = vpop.xlane.xlu1 %1884 }
 0x51b   : > { %v1883_v10 = vpop.xlane.xlu0 %1882  ;;  %v3042_v46 = vpop.eup %3041  ;;  %v1913_v41 = vsub.f32 %v4275_v44, %v1885_v1  ;;  %1988 = vadd.xlane.f32.xlu1 %v4383_v50  ;;  %v2284_v44 = vmul.f32 1.442695, %v4394_v57 }
 0x51c   : > { %3051 = vpow2.f32 %v2076_v37  ;;  %v1912_v13 = vsub.f32 %v4273_v63, %v1883_v10  ;;  %2102 = vadd.xlane.f32.xlu0 %v3042_v46  ;;  %v2286_v37 = vmul.f32 1.442695, %v4406_v36 }
 0x51d   : > { %v1932_v14 = vmul.f32 1.442695, %v1913_v41 }
 0x51e   : > { %v1930_v25 = vmul.f32 1.442695, %v1912_v13  ;;  %v3044_v21 = vpop.eup %3043  ;;  %v2241_v59 = vpop.xlane.xlu1 %2240 }
 0x51f   : > { %v2035_v23 = vpop.xlane.xlu0 %2034  ;;  %2104 = vadd.xlane.f32.xlu1 %v3044_v21  ;;  %v4417_v10 = vsub.f32 %v4184_v22, %v2241_v59 }
 0x520   : > { %3053 = vpow2.f32 %v1930_v25  ;;  %v4401_v63 = vpop.eup %3045  ;;  %v4411_v24 = vsub.f32 %v4161_v55, %v2035_v23 }
 0x521   : > { %3055 = vpow2.f32 %v1932_v14  ;;  %1958 = vadd.xlane.f32.xlu0 %v4401_v63  ;;  %4630 = vst [vmem:[#allocation3_spill] sm:$0xff] %v4417_v10  ;;  %v2288_v41 = vmul.f32 1.442695, %v4417_v10 }
 0x522   : > { %v2243_v35 = vpop.xlane.xlu1 %2242  ;;  %3057 = vpow2.f32 %v2078_v60  ;;  %v2082_v46 = vmul.f32 1.442695, %v4411_v24 }
 0x523   : > { %v2037_v15 = vpop.xlane.xlu0 %2036  ;;  %3059 = vpow2.f32 %v2284_v44  ;;  %v4426_v25 = vsub.f32 %v4191_v28, %v2243_v35 }
 0x524   : > { %v4413_v62 = vpop.eup %3047  ;;  %3061 = vpow2.f32 %v2080_v38  ;;  %v4422_v55 = vsub.f32 %v4169_v2, %v2037_v15 }
 0x525   : > { %v3050_v51 = vpop.eup %3049  ;;  %1960 = vadd.xlane.f32.xlu1 %v4413_v62  ;;  %3063 = vpow2.f32 %v2286_v37  ;;  %4631 = vst [vmem:[#allocation4_spill] sm:$0xff] %v4426_v25  ;;  %v2290_v2 = vmul.f32 1.442695, %v4426_v25 }
 0x526   : > { %2106 = vadd.xlane.f32.xlu0 %v3050_v51  ;;  %v2245_v1 = vpop.xlane.xlu1 %2244  ;;  %3065 = vpow2.f32 %v2082_v46  ;;  %v2084_v21 = vmul.f32 1.442695, %v4422_v55 }
 0x527   : > { %v2039_v18 = vpop.xlane.xlu0 %2038  ;;  %3067 = vpow2.f32 %v2288_v41  ;;  %v4436_v60 = vsub.f32 %v4198_v12, %v2245_v1 }
 0x528   : > { %v4430_v23 = vsub.f32 %v4174_v58, %v2039_v18  ;;  %3069 = vpow2.f32 %v2084_v21 }
 0x529   : > { %v3052_v13 = vpop.eup %3051  ;;  %4632 = vst [vmem:[#allocation5_spill] sm:$0xff] %v4436_v60  ;;  %3071 = vpow2.f32 %v2290_v2  ;;  %v2292_v37 = vmul.f32 1.442695, %v4436_v60 }
 0x52a   : > { %2108 = vadd.xlane.f32.xlu0 %v3052_v13  ;;  %v2247_v14 = vpop.xlane.xlu1 %2246  ;;  %v2086_v58 = vmul.f32 1.442695, %v4430_v23 }
 0x52b   : > { %v2041_v22 = vpop.xlane.xlu0 %2040  ;;  %v4448_v12 = vsub.f32 %v4205_v30, %v2247_v14 }
 0x52c   : > { %v4444_v35 = vsub.f32 %v4181_v8, %v2041_v22  ;;  %3073 = vpow2.f32 %v2086_v58 }
 0x52d   : > { %v4432_v59 = vpop.eup %3053  ;;  %4633 = vst [vmem:[#allocation6_spill] sm:$0xff] %v4448_v12  ;;  %3075 = vpow2.f32 %v2292_v37  ;;  %v2294_v41 = vmul.f32 1.442695, %v4448_v12 }
 0x52e   : > { %v4438_v44 = vpop.eup %3055  ;;  %1962 = vadd.xlane.f32.xlu0 %v4432_v59  ;;  %v2249_v15 = vpop.xlane.xlu1 %2248  ;;  %v2088_v46 = vmul.f32 1.442695, %v4444_v35 }
 0x52f   : > { %1964 = vadd.xlane.f32.xlu1 %v4438_v44  ;;  %v2043_v28 = vpop.xlane.xlu0 %2042  ;;  %v3058_v38 = vpop.eup %3057  ;;  %v4456_v22 = vsub.f32 %v4210_v9, %v2249_v15 }
 0x530   : > { %v3060_v51 = vpop.eup %3059  ;;  %v4452_v13 = vsub.f32 %v4188_v52, %v2043_v28  ;;  %3077 = vpow2.f32 %v2088_v46 }
 0x531   : > { %v3062_v8 = vpop.eup %3061  ;;  %4634 = vst [vmem:[#allocation7_spill] sm:$0xff] %v4456_v22  ;;  %3079 = vpow2.f32 %v2294_v41  ;;  %v2296_v28 = vmul.f32 1.442695, %v4456_v22 }
 0x532   : > { %2110 = vadd.xlane.f32.xlu0 %v3058_v38  ;;  %v2251_v1 = vpop.xlane.xlu1 %2250  ;;  %v3064_v30 = vpop.eup %3063  ;;  %v2090_v2 = vmul.f32 1.442695, %v4452_v13 }
 0x533   : > { %2316 = vadd.xlane.f32.xlu1 %v3060_v51  ;;  %v2045_v18 = vpop.xlane.xlu0 %2044  ;;  %v3066_v52 = vpop.eup %3065  ;;  %v4464_v38 = vsub.f32 %v4217_v40, %v2251_v1 }
 0x534   : > { %v4460_v58 = vsub.f32 %v4195_v42, %v2045_v18  ;;  %v3068_v9 = vpop.eup %3067  ;;  %3081 = vpow2.f32 %v2090_v2 }
 0x535   : > { %4635 = vst [vmem:[#allocation8_spill] sm:$0xff] %v4464_v38  ;;  %v3070_v42 = vpop.eup %3069  ;;  %3083 = vpow2.f32 %v2296_v28  ;;  %v2298_v18 = vmul.f32 1.442695, %v4464_v38 }
 0x536   : > { %2112 = vadd.xlane.f32.xlu0 %v3062_v8  ;;  %v2253_v21 = vpop.xlane.xlu1 %2252  ;;  %v2092_v51 = vmul.f32 1.442695, %v4460_v58  ;;  %v3072_v40 = vpop.eup %3071 }
 0x537   : > { %2318 = vadd.xlane.f32.xlu1 %v3064_v30  ;;  %v2047_v14 = vpop.xlane.xlu0 %2046  ;;  %v4472_v8 = vsub.f32 %v4222_v61, %v2253_v21 }
 0x538   : > { %v4468_v46 = vsub.f32 %v4202_v6, %v2047_v14  ;;  %3085 = vpow2.f32 %v2092_v51 }
 0x539   : > { %4636 = vst [vmem:[#allocation9_spill] sm:$0xff] %v4472_v8  ;;  %v3074_v6 = vpop.eup %3073  ;;  %3087 = vpow2.f32 %v2298_v18  ;;  %v2300_v14 = vmul.f32 1.442695, %v4472_v8 }
 0x53a   : > { %2114 = vadd.xlane.f32.xlu0 %v3066_v52  ;;  %v2255_v37 = vpop.xlane.xlu1 %2254  ;;  %v2094_v30 = vmul.f32 1.442695, %v4468_v46  ;;  %v3076_v61 = vpop.eup %3075 }
 0x53b   : > { %2320 = vadd.xlane.f32.xlu1 %v3068_v9  ;;  %v2049_v15 = vpop.xlane.xlu0 %2048  ;;  %v4480_v52 = vsub.f32 %v4229_v17, %v2255_v37 }
 0x53c   : > { %v4476_v2 = vsub.f32 %v4214_v34, %v2049_v15  ;;  %3089 = vpow2.f32 %v2094_v30 }
 0x53d   : > { %4637 = vst [vmem:[#allocation10_spill] sm:$0xff] %v4480_v52  ;;  %v3078_v51 = vpop.eup %3077  ;;  %3091 = vpow2.f32 %v2300_v14  ;;  %v2302_v34 = vmul.f32 1.442695, %v4480_v52 }
 0x53e   : > { %2116 = vadd.xlane.f32.xlu0 %v3070_v42  ;;  %v2257_v41 = vpop.xlane.xlu1 %2256  ;;  %v2096_v21 = vmul.f32 1.442695, %v4476_v2  ;;  %v3080_v17 = vpop.eup %3079 }
 0x53f   : > { %2322 = vadd.xlane.f32.xlu1 %v3072_v40  ;;  %v2051_v1 = vpop.xlane.xlu0 %2050  ;;  %v4488_v15 = vsub.f32 %v4234_v53, %v2257_v41 }
 0x540   : > { %v4484_v28 = vsub.f32 %v4226_v7, %v2051_v1  ;;  %3093 = vpow2.f32 %v2096_v21 }
 0x541   : > { %4639 = vst [vmem:[#allocation12_spill] sm:$0xff] %v4488_v15  ;;  %v3082_v7 = vpop.eup %3081  ;;  %3095 = vpow2.f32 %v2302_v34  ;;  %v2304_v40 = vmul.f32 1.442695, %v4488_v15 }
 0x542   : > { %2118 = vadd.xlane.f32.xlu0 %v3074_v6  ;;  %4638 = vst [vmem:[#allocation11_spill] sm:$0xff] %v4484_v28  ;;  %v2259_v9 = vpop.xlane.xlu1 %2258  ;;  %v2098_v37 = vmul.f32 1.442695, %v4484_v28  ;;  %v3084_v30 = vpop.eup %3083 }
 0x543   : > { %2324 = vadd.xlane.f32.xlu1 %v3076_v61  ;;  %v2053_v42 = vpop.xlane.xlu0 %2052  ;;  %v4496_v1 = vsub.f32 %v4241_v26, %v2259_v9 }
 0x544   : > { %v4492_v18 = vsub.f32 %v4238_v27, %v2053_v42  ;;  %3097 = vpow2.f32 %v2098_v37 }
 0x545   : > { %4641 = vst [vmem:[#allocation14_spill] sm:$0xff] %v4496_v1  ;;  %v3086_v6 = vpop.eup %3085  ;;  %3099 = vpow2.f32 %v2304_v40  ;;  %v2306_v14 = vmul.f32 1.442695, %v4496_v1 }
 0x546   : > { %2120 = vadd.xlane.f32.xlu0 %v3078_v51  ;;  %4640 = vst [vmem:[#allocation13_spill] sm:$0xff] %v4492_v18  ;;  %v2261_v53 = vpop.xlane.xlu1 %2260  ;;  %v2100_v41 = vmul.f32 1.442695, %v4492_v18  ;;  %v3088_v61 = vpop.eup %3087 }
 0x547   : > { %2326 = vadd.xlane.f32.xlu1 %v3080_v17  ;;  %v4501_v27 = vsub.f32 %v4246_v48, %v2261_v53 }
 0x548   : > { %3101 = vpow2.f32 %v2100_v41 }
 0x549   : > { %4642 = vst [vmem:[#allocation15_spill] sm:$0xff] %v4501_v27  ;;  %v3090_v26 = vpop.eup %3089  ;;  %3103 = vpow2.f32 %v2306_v14  ;;  %v2308_v21 = vmul.f32 1.442695, %v4501_v27 }
 0x54a   : > { %2122 = vadd.xlane.f32.xlu0 %v3082_v7  ;;  %v3092_v9 = vpop.eup %3091 }
 0x54b   : > { %2328 = vadd.xlane.f32.xlu1 %v3084_v30  ;;  %3105 = vpow2.f32 %v2308_v21 }
 0x54d   : > { %v3094_v51 = vpop.eup %3093 }
 0x54e   : > { %2124 = vadd.xlane.f32.xlu0 %v3086_v6  ;;  %v3096_v34 = vpop.eup %3095 }
 0x54f   : > { %2330 = vadd.xlane.f32.xlu1 %v3088_v61 }
 0x551   : > { %v3098_v42 = vpop.eup %3097 }
 0x552   : > { %2126 = vadd.xlane.f32.xlu0 %v3090_v26  ;;  %v3100_v17 = vpop.eup %3099 }
 0x553   : > { %2332 = vadd.xlane.f32.xlu1 %v3092_v9 }
 0x555   : > { %v3102_v48 = vpop.eup %3101 }
 0x556   : > { %2128 = vadd.xlane.f32.xlu0 %v3094_v51  ;;  %v3104_v37 = vpop.eup %3103 }
 0x557   : > { %2334 = vadd.xlane.f32.xlu1 %v3096_v34 }
 0x558   : > { %v3106_v7 = vpop.eup %3105 }
 0x55a   : > { %2130 = vadd.xlane.f32.xlu0 %v3098_v42 }
 0x55b   : > { %2336 = vadd.xlane.f32.xlu1 %v3100_v17 }
 0x55e   : > { %2132 = vadd.xlane.f32.xlu0 %v3102_v48 }
 0x55f   : > { %2338 = vadd.xlane.f32.xlu1 %v3104_v37 }
 0x563   : > { %2340 = vadd.xlane.f32.xlu1 %v3106_v7 }
 0x568   : > { %v4506_v30 = vpop.xlane.xlu0 %2310 }
 0x56a   : > { %v4504_v40 = vpop.xlane.xlu1 %2312 }
 0x56e   : > { %v4508_v53 = vpop.xlane.xlu1 %2314 }
 0x578   : > { %v1967_v41 = vpop.xlane.xlu0 %1966 }
 0x57c   : > { %v1969_v6 = vpop.xlane.xlu1 %1968 }
 0x580   : > { %v1971_v14 = vpop.xlane.xlu0 %1970 }
 0x584   : > { %v4510_v61 = vpop.xlane.xlu1 %1972 }
 0x588   : > { %v4512_v26 = vpop.xlane.xlu0 %1974 }
 0x58c   : > { %v4514_v21 = vpop.xlane.xlu1 %1976 }
 0x590   : > { %v4516_v9 = vpop.xlane.xlu0 %1978 }
 0x594   : > { %v4518_v51 = vpop.xlane.xlu1 %1980 }
 0x598   : > { %v4520_v34 = vpop.xlane.xlu0 %1982 }
 0x59c   : > { %v4522_v42 = vpop.xlane.xlu1 %1984 }
 0x5a0   : > { %v4524_v17 = vpop.xlane.xlu0 %1986 }
 0x5a4   : > { %v4526_v48 = vpop.xlane.xlu1 %1988 }
 0x5a5   : > { %v2103_v37 = vpop.xlane.xlu0 %2102 }
 0x5a6   : > { %3107 = vlog2.f32 %v2103_v37 }
 0x5a8   : > { %v2105_v7 = vpop.xlane.xlu1 %2104 }
 0x5a9   : > { %3109 = vlog2.f32 %v2105_v7 }
 0x5aa   : > { %v1959_v27 = vpop.xlane.xlu0 %1958 }
 0x5ab   : > { %3111 = vrcp.f32 %v1959_v27 }
 0x5ae   : > { %v1961_v1 = vpop.xlane.xlu1 %1960 }
 0x5af   : > { %v2107_v18 = vpop.xlane.xlu0 %2106  ;;  %3113 = vrcp.f32 %v1961_v1 }
 0x5b0   : > { %3115 = vlog2.f32 %v2107_v18 }
 0x5b3   : > { %v3108_v15 = vpop.eup %3107  ;;  %v2109_v28 = vpop.xlane.xlu0 %2108 }
 0x5b4   : > { %v2135_v52 = vmul.f32 0.6931472, %v3108_v15  ;;  %3117 = vlog2.f32 %v2109_v28 }
 0x5b6   : > { %v3110_v8 = vpop.eup %3109  ;;  %v2166_v7 = vsub.f32 %v4354_v47, %v2135_v52 }
 0x5b7   : > { %v1963_v38 = vpop.xlane.xlu0 %1962  ;;  %v2137_v60 = vmul.f32 0.6931472, %v3110_v8 }
 0x5b8   : > { %v1965_v22 = vpop.xlane.xlu1 %1964  ;;  %v3112_v12 = vpop.eup %3111  ;;  %3119 = vrcp.f32 %v1963_v38 }
 0x5b9   : > { %3121 = vrcp.f32 %v1965_v22  ;;  %v1991_v37 = vmul.f32 %v3112_v12, %v4401_v63  ;;  %v2167_v28 = vsub.f32 %v4361_v20, %v2137_v60 }
 0x5bb   : > { %v2111_v27 = vpop.xlane.xlu0 %2110  ;;  %2390 = vxpose.xlu0.b32.start [1/16] %v1991_v37, 128  ;;  %v2182_v25 = vmul.f32 %v2166_v7, %v1991_v37 }
 0x5bc   : > { %v3114_v1 = vpop.eup %3113  ;;  %3123 = vlog2.f32 %v2111_v27 }
 0x5bd   : > { %2198 = vadd.xlane.f32.xlu1 %v2182_v25  ;;  %v1993_v15 = vmul.f32 %v3114_v1, %v4413_v62  ;;  %3125 = vrcp.f32 %v1967_v41  ;;  %v3116_v18 = vpop.eup %3115 }
 0x5be   : > { %v2139_v63 = vmul.f32 0.6931472, %v3116_v18 }
 0x5bf   : > { %v2113_v10 = vpop.xlane.xlu0 %2112  ;;  %2391 = vxpose.xlu0.b32.cont [2/16] %v1993_v15, 128  ;;  %v2183_v38 = vmul.f32 %v2167_v28, %v1993_v15 }
 0x5c0   : > { %3127 = vlog2.f32 %v2113_v10  ;;  %v2168_v20 = vsub.f32 %v4372_v43, %v2139_v63 }
 0x5c1   : > { %2200 = vadd.xlane.f32.xlu1 %v2183_v38  ;;  %3129 = vrcp.f32 %v1969_v6  ;;  %v3118_v47 = vpop.eup %3117 }
 0x5c2   : > { %v2141_v25 = vmul.f32 0.6931472, %v3118_v47 }
 0x5c3   : > { %v2115_v12 = vpop.xlane.xlu0 %2114 }
 0x5c4   : > { %3131 = vlog2.f32 %v2115_v12  ;;  %v2169_v37 = vsub.f32 %v4379_v19, %v2141_v25 }
 0x5c5   : > { %v3120_v22 = vpop.eup %3119  ;;  %3133 = vrcp.f32 %v1971_v14 }
 0x5c6   : > { %v3122_v8 = vpop.eup %3121  ;;  %v1995_v62 = vmul.f32 %v3120_v22, %v4432_v59 }
 0x5c7   : > { %v2117_v60 = vpop.xlane.xlu0 %2116  ;;  %v1997_v10 = vmul.f32 %v3122_v8, %v4438_v44 }
 0x5c8   : > { %3135 = vlog2.f32 %v2117_v60  ;;  %2392 = vxpose.xlu0.b32.cont [3/16] %v1995_v62, 128  ;;  %v2184_v52 = vmul.f32 %v2168_v20, %v1995_v62 }
 0x5c9   : > { %v3124_v41 = vpop.eup %3123  ;;  %3137 = vrcp.f32 %v4510_v61  ;;  %v2185_v59 = vmul.f32 %v2169_v37, %v1997_v10 }
 0x5ca   : > { %v2143_v6 = vmul.f32 0.6931472, %v3124_v41  ;;  %2202 = vadd.xlane.f32.xlu1 %v2184_v52  ;;  %v3126_v7 = vpop.eup %3125 }
 0x5cb   : > { %v2119_v14 = vpop.xlane.xlu0 %2118  ;;  %v1999_v44 = vmul.f32 %v3126_v7, %v4325_v49 }
 0x5cc   : > { %3139 = vlog2.f32 %v2119_v14  ;;  %2393 = vxpose.xlu0.b32.cont [4/16] %v1997_v10, 128  ;;  %v2170_v43 = vsub.f32 %v4387_v29, %v2143_v6 }
 0x5cd   : > { %v3128_v27 = vpop.eup %3127  ;;  %3141 = vrcp.f32 %v4512_v26 }
 0x5ce   : > { %v2145_v1 = vmul.f32 0.6931472, %v3128_v27  ;;  %2204 = vadd.xlane.f32.xlu1 %v2185_v59  ;;  %v3130_v15 = vpop.eup %3129  ;;  %v2186_v28 = vmul.f32 %v2170_v43, %v1999_v44 }
 0x5cf   : > { %v2121_v61 = vpop.xlane.xlu0 %2120  ;;  %v2001_v29 = vmul.f32 %v3130_v15, %v4329_v33 }
 0x5d0   : > { %3143 = vlog2.f32 %v2121_v61  ;;  %2394 = vxpose.xlu0.b32.cont [5/16] %v1999_v44, 128  ;;  %v2171_v19 = vsub.f32 %v4399_v3, %v2145_v1 }
 0x5d1   : > { %v3132_v18 = vpop.eup %3131  ;;  %3145 = vrcp.f32 %v4514_v21 }
 0x5d2   : > { %v2147_v38 = vmul.f32 0.6931472, %v3132_v18  ;;  %2206 = vadd.xlane.f32.xlu1 %v2186_v28  ;;  %v3134_v63 = vpop.eup %3133  ;;  %v2187_v47 = vmul.f32 %v2171_v19, %v2001_v29 }
 0x5d3   : > { %v2123_v26 = vpop.xlane.xlu0 %2122  ;;  %v2003_v3 = vmul.f32 %v3134_v63, %v4333_v31 }
 0x5d4   : > { %3147 = vlog2.f32 %v2123_v26  ;;  %2395 = vxpose.xlu0.b32.cont [6/16] %v2001_v29, 128  ;;  %v2172_v49 = vsub.f32 %v4411_v24, %v2147_v38 }
 0x5d5   : > { %v3136_v12 = vpop.eup %3135  ;;  %3149 = vrcp.f32 %v4516_v9 }
 0x5d6   : > { %v2149_v22 = vmul.f32 0.6931472, %v3136_v12  ;;  %2208 = vadd.xlane.f32.xlu1 %v2187_v47  ;;  %v3138_v8 = vpop.eup %3137  ;;  %v2188_v25 = vmul.f32 %v2172_v49, %v2003_v3  ;;  %v2317_v47 = vpop.xlane.xlu1 %2316 }
 0x5d7   : > { %v2125_v21 = vpop.xlane.xlu0 %2124  ;;  %v2005_v24 = vmul.f32 %v3138_v8, %v4337_v54 }
 0x5d8   : > { %3151 = vlog2.f32 %v2125_v21  ;;  %2396 = vxpose.xlu0.b32.cont [7/16] %v2003_v3, 128  ;;  %v2173_v33 = vsub.f32 %v4422_v55, %v2149_v22 }
 0x5d9   : > { %v3140_v62 = vpop.eup %3139  ;;  %3153 = vrcp.f32 %v4518_v51 }
 0x5da   : > { %v2151_v20 = vmul.f32 0.6931472, %v3140_v62  ;;  %2210 = vadd.xlane.f32.xlu1 %v2188_v25  ;;  %v3142_v60 = vpop.eup %3141  ;;  %v2189_v52 = vmul.f32 %v2173_v33, %v2005_v24 }
 0x5db   : > { %v2127_v9 = vpop.xlane.xlu0 %2126  ;;  %v2007_v55 = vmul.f32 %v3142_v60, %v4341_v11 }
 0x5dc   : > { %3155 = vlog2.f32 %v2127_v9  ;;  %2397 = vxpose.xlu0.b32.cont [8/16] %v2005_v24, 128  ;;  %v2174_v31 = vsub.f32 %v4430_v23, %v2151_v20 }
 0x5dd   : > { %v3144_v10 = vpop.eup %3143  ;;  %3157 = vrcp.f32 %v4520_v34 }
 0x5de   : > { %v2153_v41 = vmul.f32 0.6931472, %v3144_v10  ;;  %2212 = vadd.xlane.f32.xlu1 %v2189_v52  ;;  %v3146_v6 = vpop.eup %3145  ;;  %v2190_v37 = vmul.f32 %v2174_v31, %v2007_v55  ;;  %v4643_v10 = vld [vmem:[#allocation2_spill] sm:$0xff] }
 0x5df   : > { %v2129_v51 = vpop.xlane.xlu0 %2128  ;;  %v2009_v23 = vmul.f32 %v3146_v6, %v4345_v32 }
 0x5e0   : > { %3159 = vlog2.f32 %v2129_v51  ;;  %2398 = vxpose.xlu0.b32.cont [9/16] %v2007_v55, 128  ;;  %v2175_v54 = vsub.f32 %v4444_v35, %v2153_v41 }
 0x5e1   : > { %v3148_v7 = vpop.eup %3147  ;;  %3161 = vrcp.f32 %v4522_v42 }
 0x5e2   : > { %v2155_v14 = vmul.f32 0.6931472, %v3148_v7  ;;  %2214 = vadd.xlane.f32.xlu1 %v2190_v37  ;;  %v3150_v59 = vpop.eup %3149  ;;  %v2191_v34 = vmul.f32 %v2175_v54, %v2009_v23  ;;  %3163 = vrcp.f32 %v4524_v17 }
 0x5e3   : > { %v2011_v1 = vmul.f32 %v3150_v59, %v4349_v4  ;;  %3165 = vrcp.f32 %v4526_v48 }
 0x5e4   : > { %2399 = vxpose.xlu0.b32.cont [10/16] %v2009_v23, 128  ;;  %v2176_v43 = vsub.f32 %v4452_v13, %v2155_v14  ;;  %3167 = vlog2.f32 %v4506_v30 }
 0x5e5   : > { %v3152_v11 = vpop.eup %3151  ;;  %3169 = vlog2.f32 %v4504_v40 }
 0x5e6   : > { %v2157_v27 = vmul.f32 0.6931472, %v3152_v11  ;;  %2216 = vadd.xlane.f32.xlu1 %v2191_v34  ;;  %v3154_v35 = vpop.eup %3153  ;;  %v2192_v44 = vmul.f32 %v2176_v43, %v2011_v1  ;;  %3171 = vlog2.f32 %v4508_v53 }
 0x5e7   : > { %v2013_v61 = vmul.f32 %v3154_v35, %v4356_v45  ;;  %3173 = vlog2.f32 %v2317_v47  ;;  %v4644_v35 = vld [vmem:[#allocation3_spill] sm:$0xff] }
 0x5e8   : > { %2400 = vxpose.xlu0.b32.cont [11/16] %v2011_v1, 128  ;;  %v2177_v42 = vsub.f32 %v4460_v58, %v2157_v27 }
 0x5e9   : > { %v3156_v15 = vpop.eup %3155 }
 0x5ea   : > { %v2159_v32 = vmul.f32 0.6931472, %v3156_v15  ;;  %2218 = vadd.xlane.f32.xlu1 %v2192_v44  ;;  %v3158_v13 = vpop.eup %3157  ;;  %v2193_v28 = vmul.f32 %v2177_v42, %v2013_v61 }
 0x5eb   : > { %v2015_v4 = vmul.f32 %v3158_v13, %v4363_v0  ;;  %v4645_v13 = vld [vmem:[#allocation4_spill] sm:$0xff] }
 0x5ec   : > { %2401 = vxpose.xlu0.b32.cont [12/16] %v2013_v61, 128  ;;  %v2178_v17 = vsub.f32 %v4468_v46, %v2159_v32 }
 0x5ed   : > { %v3160_v19 = vpop.eup %3159 }
 0x5ee   : > { %v2161_v18 = vmul.f32 0.6931472, %v3160_v19  ;;  %2220 = vadd.xlane.f32.xlu1 %v2193_v28  ;;  %v3162_v38 = vpop.eup %3161  ;;  %v2194_v58 = vmul.f32 %v2178_v17, %v2015_v4 }
 0x5ef   : > { %v2017_v48 = vmul.f32 %v3162_v38, %v4368_v39  ;;  %v3164_v63 = vpop.eup %3163 }
 0x5f0   : > { %2402 = vxpose.xlu0.b32.cont [13/16] %v2015_v4, 128  ;;  %v2179_v29 = vsub.f32 %v4476_v2, %v2161_v18  ;;  %v4566_v26 = vmul.f32 %v3164_v63, %v4376_v16  ;;  %v3166_v46 = vpop.eup %3165  ;;  %v2319_v2 = vpop.xlane.xlu1 %2318  ;;  %v4646_v4 = vld [vmem:[#allocation5_spill] sm:$0xff] }
 0x5f1   : > { %v4570_v0 = vmul.f32 %v3166_v46, %v4383_v50  ;;  %v4576_v16 = vpop.xlane.xlu0 %2130  ;;  %v3168_v12 = vpop.eup %3167  ;;  %3175 = vlog2.f32 %v2319_v2  ;;  %v4647_v46 = vld [vmem:[#allocation6_spill] sm:$0xff] }
 0x5f2   : > { %2222 = vadd.xlane.f32.xlu1 %v2194_v58  ;;  %v2195_v45 = vmul.f32 %v2179_v29, %v2017_v48  ;;  %v2343_v3 = vmul.f32 0.6931472, %v3168_v12  ;;  %v3170_v50 = vpop.eup %3169 }
 0x5f3   : > { %v2345_v25 = vmul.f32 0.6931472, %v3170_v50  ;;  %v3172_v33 = vpop.eup %3171 }
 0x5f4   : > { %2403 = vxpose.xlu0.b32.cont [14/16] %v2017_v48, 128  ;;  %v2321_v39 = vpop.xlane.xlu1 %2320  ;;  %v2374_v30 = vsub.f32 %v4303_v5, %v2343_v3  ;;  %v2347_v20 = vmul.f32 0.6931472, %v3172_v33  ;;  %v3174_v24 = vpop.eup %3173  ;;  %v4648_v3 = vld [vmem:[#allocation7_spill] sm:$0xff]  ;;  %v4649_v33 = vld [vmem:[#allocation8_spill] sm:$0xff] }
 0x5f5   : > { %v4578_v8 = vpop.xlane.xlu0 %2132  ;;  %3177 = vlog2.f32 %v2321_v39  ;;  %v2375_v53 = vsub.f32 %v4307_v56, %v2345_v25  ;;  %v2349_v31 = vmul.f32 0.6931472, %v3174_v24 }
 0x5f6   : > { %2224 = vadd.xlane.f32.xlu1 %v2195_v45  ;;  %v2376_v41 = vsub.f32 %v4643_v10, %v2347_v20 }
 0x5f7   : > { %v2377_v54 = vsub.f32 %v4394_v57, %v2349_v31 }
 0x5f8   : > { %2404 = vxpose.xlu0.b32.cont [15/16] %v4566_v26, 128  ;;  %v2323_v49 = vpop.xlane.xlu1 %2322 }
 0x5f9   : > { %3179 = vlog2.f32 %v2323_v49 }
 0x5fc   : > { %2405 = vxpose.xlu0.b32.end [16/16] %v4570_v0, 128  ;;  %v2325_v22 = vpop.xlane.xlu1 %2324 }
 0x5fd   : > { %3181 = vlog2.f32 %v2325_v22 }
 0x5fe   : > { %v3176_v55 = vpop.eup %3175 }
 0x5ff   : > { %v2351_v37 = vmul.f32 0.6931472, %v3176_v55 }
 0x600   : > { %v2327_v21 = vpop.xlane.xlu1 %2326 }
 0x601   : > { %3183 = vlog2.f32 %v2327_v21  ;;  %v2378_v59 = vsub.f32 %v4406_v36, %v2351_v37 }
 0x602   : > { %v3178_v56 = vpop.eup %3177 }
 0x603   : > { %v2353_v23 = vmul.f32 0.6931472, %v3178_v56 }
 0x604   : > { %v2329_v60 = vpop.xlane.xlu1 %2328 }
 0x605   : > { %3185 = vlog2.f32 %v2329_v60  ;;  %v2379_v44 = vsub.f32 %v4644_v35, %v2353_v23  ;;  %v4654_v35 = vld [vmem:[#allocation13_spill] sm:$0xff] }
 0x606   : > { %v3180_v34 = vpop.eup %3179 }
 0x607   : > { %v2355_v1 = vmul.f32 0.6931472, %v3180_v34 }
 0x608   : > { %v2331_v51 = vpop.xlane.xlu1 %2330 }
 0x609   : > { %3187 = vlog2.f32 %v2331_v51  ;;  %v2380_v28 = vsub.f32 %v4645_v13, %v2355_v1  ;;  %v4651_v51 = vld [vmem:[#allocation10_spill] sm:$0xff] }
 0x60a   : > { %v3182_v42 = vpop.eup %3181  ;;  %v4655_v13 = vld [vmem:[#allocation14_spill] sm:$0xff] }
 0x60b   : > { %v2357_v61 = vmul.f32 0.6931472, %v3182_v42 }
 0x60c   : > { %v2333_v43 = vpop.xlane.xlu1 %2332 }
 0x60d   : > { %3189 = vlog2.f32 %v2333_v43  ;;  %v2381_v38 = vsub.f32 %v4646_v4, %v2357_v61 }
 0x60e   : > { %v3184_v17 = vpop.eup %3183 }
 0x60f   : > { %v2359_v18 = vmul.f32 0.6931472, %v3184_v17 }
 0x610   : > { %v2335_v32 = vpop.xlane.xlu1 %2334 }
 0x611   : > { %3191 = vlog2.f32 %v2335_v32  ;;  %v2382_v47 = vsub.f32 %v4647_v46, %v2359_v18  ;;  %v4656_v18 = vld [vmem:[#allocation15_spill] sm:$0xff] }
 0x612   : > { %v3186_v58 = vpop.eup %3185  ;;  %3193 = vlog2.f32 %v4576_v16 }
 0x613   : > { %v2361_v45 = vmul.f32 0.6931472, %v3186_v58 }
 0x614   : > { %v2337_v29 = vpop.xlane.xlu1 %2336 }
 0x615   : > { %3195 = vlog2.f32 %v2337_v29  ;;  %v2383_v50 = vsub.f32 %v4648_v3, %v2361_v45 }
 0x616   : > { %v3188_v2 = vpop.eup %3187  ;;  %3197 = vlog2.f32 %v4578_v8 }
 0x617   : > { %v2363_v22 = vmul.f32 0.6931472, %v3188_v2 }
 0x618   : > { %v2339_v12 = vpop.xlane.xlu1 %2338 }
 0x619   : > { %3199 = vlog2.f32 %v2339_v12 }
 0x61a   : > { %v3190_v21 = vpop.eup %3189 }
 0x61b   : > { %v2365_v16 = vmul.f32 0.6931472, %v3190_v21 }
 0x63c   : > { %v2406_v40 = vpop.trf.xlu0 }
 0x63d   : > { %v2422_v62 = vmul.f32 %v2406_v40, %v2374_v30  ;;  %v2384_v40 = vsub.f32 %v4649_v33, %v2363_v22 }
 0x63f   : > { %2438 = vadd.xlane.f32.xlu1 %v2422_v62  ;;  %v3192_v62 = vpop.eup %3191 }
 0x640   : > { %v2407_v9 = vpop.trf.xlu0  ;;  %v3194_v60 = vpop.eup %3193  ;;  %v2367_v8 = vmul.f32 0.6931472, %v3192_v62 }
 0x641   : > { %v2423_v52 = vmul.f32 %v2407_v9, %v2375_v53  ;;  %v2341_v53 = vpop.xlane.xlu1 %2340  ;;  %v4650_v9 = vld [vmem:[#allocation9_spill] sm:$0xff]  ;;  %v3196_v31 = vpop.eup %3195 }
 0x642   : > { %3201 = vlog2.f32 %v2341_v53  ;;  %v2386_v37 = vsub.f32 %v4651_v51, %v2367_v8 }
 0x643   : > { %2440 = vadd.xlane.f32.xlu1 %v2423_v52  ;;  %v2385_v52 = vsub.f32 %v4650_v9, %v2365_v16 }
 0x644   : > { %v2408_v5 = vpop.trf.xlu0 }
 0x645   : > { %v2424_v6 = vmul.f32 %v2408_v5, %v2376_v41  ;;  %v2163_v41 = vmul.f32 0.6931472, %v3194_v60  ;;  %v3198_v5 = vpop.eup %3197 }
 0x646   : > { %v2165_v56 = vmul.f32 0.6931472, %v3198_v5  ;;  %v3200_v43 = vpop.eup %3199  ;;  %v2199_v17 = vpop.xlane.xlu1 %2198 }
 0x647   : > { %2442 = vadd.xlane.f32.xlu1 %v2424_v6  ;;  %v2369_v6 = vmul.f32 0.6931472, %v3196_v31  ;;  %v2371_v42 = vmul.f32 0.6931472, %v3200_v43 }
 0x648   : > { %v2409_v7 = vpop.trf.xlu0 }
 0x649   : > { %v2425_v14 = vmul.f32 %v2409_v7, %v2377_v54 }
 0x64b   : > { %2444 = vadd.xlane.f32.xlu1 %v2425_v14  ;;  %v4652_v14 = vld [vmem:[#allocation11_spill] sm:$0xff] }
 0x64c   : > { %v2410_v11 = vpop.trf.xlu0  ;;  %v2180_v23 = vsub.f32 %v4652_v14, %v2163_v41 }
 0x64d   : > { %v2426_v27 = vmul.f32 %v2410_v11, %v2378_v59  ;;  %v4653_v59 = vld [vmem:[#allocation12_spill] sm:$0xff] }
 0x64e   : > { %v2387_v34 = vsub.f32 %v4653_v59, %v2369_v6  ;;  %v2196_v1 = vmul.f32 %v2180_v23, %v4566_v26 }
 0x64f   : > { %2446 = vadd.xlane.f32.xlu1 %v2426_v27 }
 0x650   : > { %v2411_v15 = vpop.trf.xlu0 }
 0x651   : > { %v2427_v57 = vmul.f32 %v2411_v15, %v2379_v44  ;;  %v2181_v44 = vsub.f32 %v4654_v35, %v2165_v56  ;;  %v3202_v15 = vpop.eup %3201 }
 0x652   : > { %v2373_v61 = vmul.f32 0.6931472, %v3202_v15 }
 0x653   : > { %2448 = vadd.xlane.f32.xlu1 %v2427_v57  ;;  %v2197_v32 = vmul.f32 %v2181_v44, %v4570_v0 }
 0x654   : > { %v2412_v36 = vpop.trf.xlu0  ;;  %v2389_v4 = vsub.f32 %v4656_v18, %v2373_v61 }
 0x655   : > { %v2428_v19 = vmul.f32 %v2412_v36, %v2380_v28  ;;  %v2388_v28 = vsub.f32 %v4655_v13, %v2371_v42 }
 0x657   : > { %2450 = vadd.xlane.f32.xlu1 %v2428_v19 }
 0x658   : > { %v2413_v48 = vpop.trf.xlu0 }
 0x659   : > { %v2429_v63 = vmul.f32 %v2413_v48, %v2381_v38  ;;  %v2201_v38 = vpop.xlane.xlu1 %2200 }
 0x65b   : > { %2452 = vadd.xlane.f32.xlu1 %v2429_v63 }
 0x65c   : > { %v2414_v39 = vpop.trf.xlu0 }
 0x65d   : > { %v2430_v49 = vmul.f32 %v2414_v39, %v2382_v47  ;;  %v2203_v58 = vpop.xlane.xlu1 %2202 }
 0x65f   : > { %2454 = vadd.xlane.f32.xlu1 %v2430_v49 }
 0x660   : > { %v2415_v30 = vpop.trf.xlu0 }
 0x661   : > { %v2431_v25 = vmul.f32 %v2415_v30, %v2383_v50  ;;  %v2205_v29 = vpop.xlane.xlu1 %2204 }
 0x663   : > { %2456 = vadd.xlane.f32.xlu1 %v2431_v25 }
 0x664   : > { %v2416_v20 = vpop.trf.xlu0 }
 0x665   : > { %v2432_v24 = vmul.f32 %v2416_v20, %v2384_v40  ;;  %v2207_v48 = vpop.xlane.xlu1 %2206 }
 0x667   : > { %2458 = vadd.xlane.f32.xlu1 %v2432_v24 }
 0x668   : > { %v2417_v10 = vpop.trf.xlu0 }
 0x669   : > { %v2433_v55 = vmul.f32 %v2417_v10, %v2385_v52  ;;  %v2209_v63 = vpop.xlane.xlu1 %2208 }
 0x66b   : > { %2460 = vadd.xlane.f32.xlu1 %v2433_v55 }
 0x66c   : > { %v2418_v54 = vpop.trf.xlu0 }
 0x66d   : > { %v2434_v7 = vmul.f32 %v2418_v54, %v2386_v37  ;;  %v2211_v45 = vpop.xlane.xlu1 %2210 }
 0x66f   : > { %2462 = vadd.xlane.f32.xlu1 %v2434_v7 }
 0x670   : > { %v2419_v11 = vpop.trf.xlu0 }
 0x671   : > { %v2435_v27 = vmul.f32 %v2419_v11, %v2387_v34  ;;  %v2213_v46 = vpop.xlane.xlu1 %2212 }
 0x673   : > { %2226 = vadd.xlane.f32.xlu1 %v2196_v1  ;;  %2464 = vadd.xlane.f32.xlu0 %v2435_v27 }
 0x674   : > { %v2420_v57 = vpop.trf.xlu0 }
 0x675   : > { %v2436_v36 = vmul.f32 %v2420_v57, %v2388_v28  ;;  %v2215_v0 = vpop.xlane.xlu1 %2214 }
 0x677   : > { %2228 = vadd.xlane.f32.xlu1 %v2197_v32 }
 0x678   : > { %v2421_v19 = vpop.trf.xlu0 }
 0x679   : > { %v2437_v26 = vmul.f32 %v2421_v19, %v2389_v4  ;;  %v2217_v47 = vpop.xlane.xlu1 %2216 }
 0x67b   : > { %2466 = vadd.xlane.f32.xlu1 %v2436_v36 }
 0x67d   : > { %v2219_v2 = vpop.xlane.xlu1 %2218 }
 0x67f   : > { %2468 = vadd.xlane.f32.xlu1 %v2437_v26 }
 0x681   : > { %v2221_v39 = vpop.xlane.xlu1 %2220 }
 0x685   : > { %v2223_v49 = vpop.xlane.xlu1 %2222 }
 0x689   : > { %v2225_v12 = vpop.xlane.xlu1 %2224 }
 0x6c8   : > { %v2439_v22 = vpop.xlane.xlu1 %2438 }
 0x6c9   : > { %v2470_v62 = vadd.f32 %v2439_v22, %v2199_v17 }
 0x6cc   : > { %v2441_v3 = vpop.xlane.xlu1 %2440 }
 0x6cd   : > { %v2471_v33 = vadd.f32 %v2441_v3, %v2201_v38 }
 0x6cf   : > { %v2486_v20 = vadd.f32 %v2471_v33, %v2470_v62 }
 0x6d0   : > { %v2443_v50 = vpop.xlane.xlu1 %2442 }
 0x6d1   : > { %v2472_v53 = vadd.f32 %v2443_v50, %v2203_v58 }
 0x6d3   : > { %v2487_v8 = vadd.f32 %v2486_v20, %v2472_v53 }
 0x6d4   : > { %v2445_v21 = vpop.xlane.xlu1 %2444 }
 0x6d5   : > { %v2473_v24 = vadd.f32 %v2445_v21, %v2205_v29 }
 0x6d7   : > { %v2488_v52 = vadd.f32 %v2487_v8, %v2473_v24 }
 0x6d8   : > { %v2447_v30 = vpop.xlane.xlu1 %2446 }
 0x6d9   : > { %v2474_v9 = vadd.f32 %v2447_v30, %v2207_v48 }
 0x6db   : > { %v2489_v41 = vadd.f32 %v2488_v52, %v2474_v9 }
 0x6dc   : > { %v2449_v25 = vpop.xlane.xlu1 %2448 }
 0x6dd   : > { %v2475_v31 = vadd.f32 %v2449_v25, %v2209_v63 }
 0x6df   : > { %v2490_v5 = vadd.f32 %v2489_v41, %v2475_v31 }
 0x6e0   : > { %v2451_v16 = vpop.xlane.xlu1 %2450 }
 0x6e1   : > { %v2476_v55 = vadd.f32 %v2451_v16, %v2211_v45 }
 0x6e3   : > { %v2491_v37 = vadd.f32 %v2490_v5, %v2476_v55 }
 0x6e4   : > { %v2453_v40 = vpop.xlane.xlu1 %2452 }
 0x6e5   : > { %v2477_v6 = vadd.f32 %v2453_v40, %v2213_v46 }
 0x6e7   : > { %v2492_v56 = vadd.f32 %v2491_v37, %v2477_v6 }
 0x6e8   : > { %v2455_v60 = vpop.xlane.xlu1 %2454 }
 0x6e9   : > { %v2478_v54 = vadd.f32 %v2455_v60, %v2215_v0 }
 0x6eb   : > { %v2493_v23 = vadd.f32 %v2492_v56, %v2478_v54 }
 0x6ec   : > { %v2457_v10 = vpop.xlane.xlu1 %2456 }
 0x6ed   : > { %v2479_v7 = vadd.f32 %v2457_v10, %v2217_v47 }
 0x6ef   : > { %v2494_v34 = vadd.f32 %v2493_v23, %v2479_v7 }
 0x6f0   : > { %v2459_v51 = vpop.xlane.xlu1 %2458 }
 0x6f1   : > { %v2480_v59 = vadd.f32 %v2459_v51, %v2219_v2 }
 0x6f3   : > { %v2495_v27 = vadd.f32 %v2494_v34, %v2480_v59 }
 0x6f4   : > { %v2461_v14 = vpop.xlane.xlu1 %2460 }
 0x6f5   : > { %v2481_v43 = vadd.f32 %v2461_v14, %v2221_v39 }
 0x6f7   : > { %v2496_v35 = vadd.f32 %v2495_v27, %v2481_v43 }
 0x6f8   : > { %v2463_v11 = vpop.xlane.xlu1 %2462 }
 0x6f9   : > { %v2482_v1 = vadd.f32 %v2463_v11, %v2223_v49 }
 0x6fb   : > { %v2497_v15 = vadd.f32 %v2496_v35, %v2482_v1 }
 0x6fc   : > { %v2465_v44 = vpop.xlane.xlu0 %2464  ;;  %v2227_v42 = vpop.xlane.xlu1 %2226 }
 0x6fd   : > { %v2483_v57 = vadd.f32 %v2465_v44, %v2225_v12 }
 0x6ff   : > { %v2498_v32 = vadd.f32 %v2497_v15, %v2483_v57 }
 0x700   : > { %v2229_v61 = vpop.xlane.xlu1 %2228 }
 0x704   : > { %v2467_v13 = vpop.xlane.xlu1 %2466 }
 0x705   : > { %v2484_v28 = vadd.f32 %v2467_v13, %v2227_v42 }
 0x707   : > { %v2499_v36 = vadd.f32 %v2498_v32, %v2484_v28 }
 0x708   : > { %v2469_v17 = vpop.xlane.xlu1 %2468 }
 0x709   : > { %v2485_v19 = vadd.f32 %v2469_v17, %v2229_v61 }
 0x70b   : > { %v2500_v18 = vadd.f32 %v2499_v36, %v2485_v19 }
 0x70d   : > { %v2501_v4 = vrot.slane %v2500_v18, 4 }
 0x70f   : > { %v2502_v26 = vadd.f32 %v2501_v4, %v2500_v18 }
 0x711   : > { %v2503_v38 = vrot.slane %v2502_v26, 2 }
 0x713   : > { %v2504_v58 = vadd.f32 %v2503_v38, %v2502_v26 }
 0x715   : > { %v2505_v29 = vrot.slane %v2504_v58, 1 }
 0x717   : > { %v2506_v48 = vadd.f32 %v2505_v29, %v2504_v58 }
 0x719   : > { %v2507_v63 = vmul.f32 -0.00390625, %v2506_v48 }
 0x71b   : > { %2508 = vst [vmem:[%s242_s26] sm:$0xff] %v2507_v63 }
 0x71c PF: > { %s15_s18 = sadd.s32 1, %s3210_s18  }
 0x71d   : > { %p12_p4 = scmp.ge.s32.totalorder %s15_s18, 6  }
 0x71f   :  { %14 = sbr.rel (!%p12_p4) target bundleno = 1 (0x1), region = 74 }

</bundles_post_ra>
